<compile_context>
chip_gen: v7x
topology: tpu7x:2x2x1
jax: 0.10.0
libtpu: 0.0.40
codegen_flags: <defaults>
</compile_context>

<pallas_src>
import functools

import jax
import jax.numpy as jnp
from jax import lax
from jax.experimental import pallas as pl
from jax.experimental.pallas import tpu as pltpu

LANE = 128


def _round_up(x, m):
    return (x + m - 1) // m * m


def _device_kind():
    try:
        return jax.devices()[0].device_kind.lower()
    except Exception:
        return ""


def _mxu_tile_n():
    """MXU column width: 128 on <=v5 (and unknown), 256 on v6e / v7x."""
    kind = _device_kind()
    if any(t in kind for t in ("v2", "v3", "v4", "v5")):
        return 128
    if any(t in kind for t in ("v6", "v7")):
        return 256
    return 128


def _vmem_capacity_bytes():
    try:
        return int(pltpu.get_tpu_info().vmem_capacity_bytes)
    except Exception:
        pass
    kind = _device_kind()
    return (64 if "v7" in kind else 128) * 1024 * 1024


def _dwconv_kernel(xp_ref, dw_w_ref, dw_b_ref, pw_w_ref, pw_b_ref,
                   o_ref, y_ref, *, k, rb):
    # xp_ref : (1, Hp, Wp, Cp)   padded bf16 input (one batch element)
    # dw_w_ref: (k, k, Cp)        depthwise weights, f32, BN scale pre-folded
    # dw_b_ref: (1, Cp)           folded BN bias for depthwise stage (f32)
    # pw_w_ref: (Cp, Tco)         pointwise (1x1) weight tile, bf16, BN scale pre-folded
    # pw_b_ref: (1, Tco)          folded BN bias tile (f32)
    # o_ref  : (1, Ho, Wo, Tco)   bf16 output tile
    # y_ref  : (Ho*Wo, Cp)        bf16 VMEM scratch: depthwise+BN+SiLU result
    _, ho, wo, tco = o_ref.shape
    hw, cin_p = y_ref.shape
    n_chunks = ho // rb

    # Depthwise stage depends only on the batch index; compute it once per image and cache
    # it in VMEM.  CORRECTNESS: this relies on the cout-tile grid axis (axis 1) being the
    # innermost, sequentially iterated ("arbitrary") axis so each image starts at j == 0 on
    # its core before any pointwise tile is computed.  Do NOT mark it "parallel".
    @pl.when(pl.program_id(1) == 0)
    def _depthwise():
        dw_w = dw_w_ref[...]          # (k, k, Cp) f32  (hoisted out of the chunk loop)
        dw_b = dw_b_ref[...]          # (1, Cp)    f32

        def row_chunk(i):
            r = i * rb
            if not isinstance(r, int):
                r = pl.multiple_of(r, rb)
            # rows [r, r + rb + k - 1) of the padded input produce rb output rows
            xc = xp_ref[0, pl.ds(r, rb + k - 1), :, :]            # (rb+k-1, Wp, Cp) bf16
            # Precompute the k width-shifted slabs ONCE (k copies instead of k*k
            # sublane-unaligned value slices); reuse them across the dy taps.
            xs = [xc[:, dx:dx + wo, :] for dx in range(k)]        # each (rb+k-1, Wo, Cp)
            # Unrolled k*k taps on the VPU; bf16 slab * f32 weight promotes to f32, so the
            # accumulation chain stays f32.  First tap initializes the accumulator.
            acc = xs[0][0:rb] * dw_w[0, 0]
            for t in range(1, k * k):
                dy, dx = t // k, t % k
                acc = acc + xs[dx][dy:dy + rb] * dw_w[dy, dx]
            y = acc + dw_b                                        # BN scale already in dw_w
            y = y * jax.nn.sigmoid(y)                             # SiLU (sigmoid on the EUP)
            dst = r * wo
            if not isinstance(dst, int):
                dst = pl.multiple_of(dst, rb * wo)
            # Wo % 8 == 0 and Cp % 128 == 0 -> layout-preserving reshape.
            y_ref[pl.ds(dst, rb * wo), :] = (
                y.reshape(rb * wo, cin_p).astype(y_ref.dtype))

        if n_chunks <= 4:
            for i in range(n_chunks):           # fully visible to the LLO scheduler
                row_chunk(i)
        else:
            def body(i, carry):                 # bounds live ranges for large images
                row_chunk(i)
                return carry
            lax.fori_loop(0, n_chunks, body, jnp.int32(0))

    # Pointwise 1x1 conv == (Ho*Wo, Cp) @ (Cp, Tco) matmul: bf16 operands, f32 acc (MXU).
    z = jnp.dot(y_ref[...], pw_w_ref[...], preferred_element_type=jnp.float32)
    z = z + pw_b_ref[...]                       # BN scale already folded into pw_w columns
    z = z * jax.nn.sigmoid(z)
    o_ref[...] = z.reshape(1, ho, wo, tco).astype(o_ref.dtype)


def _fold_bn(gamma, beta, mean, var, eps=1e-5):
    scale = gamma / jnp.sqrt(var + eps)
    bias = beta - mean * scale
    return scale, bias


@functools.partial(jax.jit, static_argnames=("ksize", "return_nhwc_bf16"))
def dwconv_forward(x_nchw, params, ksize=3, return_nhwc_bf16=False):
    """DWConv forward. x_nchw: (N, Cin, H, W) float32. Returns (N, Cout, H, W) float32
    (or cropped NHWC bf16 when return_nhwc_bf16=True)."""
    dw_w, dw_gamma, dw_beta, dw_mean, dw_var, \
        pw_w, pw_gamma, pw_beta, pw_mean, pw_var = params

    n, cin, h, w = x_nchw.shape
    cout = pw_w.shape[0]
    k = ksize
    pad = (k - 1) // 2

    rb = 8                               # depthwise row chunk (multiple of the 8-sublane)
    ho = _round_up(h, rb)                # pad rows so chunks divide evenly
    wo = _round_up(w, 8)                 # pad cols so in-kernel reshapes are layout-preserving
    hp, wp = ho + 2 * pad, wo + 2 * pad

    cin_p = _round_up(cin, LANE)
    cout_p = _round_up(cout, LANE)
    # Generation-aware MXU tile width: 256 on v6e/v7x, 128 on v5e / unknown.
    mxu_n = _mxu_tile_n()
    tco = mxu_n if cout_p % mxu_n == 0 else LANE
    n_cout_tiles = cout_p // tco

    # Single fused boundary repack (one half-precision HBM pass): NCHW -> NHWC, bf16,
    # channel pad to a lane multiple, halo + alignment spatial pad.
    x = jnp.transpose(x_nchw, (0, 2, 3, 1)).astype(jnp.bfloat16)                # (N, H, W, Cin)
    xp = jnp.pad(x, ((0, 0), (pad, pad + ho - h), (pad, pad + wo - w),
                     (0, cin_p - cin)))                                         # (N, Hp, Wp, Cp)

    # Fold BN into per-channel scale/bias; fold the SCALES straight into the conv weights.
    dw_s, dw_b = _fold_bn(dw_gamma, dw_beta, dw_mean, dw_var)
    pw_s, pw_b = _fold_bn(pw_gamma, pw_beta, pw_mean, pw_var)

    dw_w_k = jnp.transpose(dw_w[:, 0, :, :], (1, 2, 0)).astype(jnp.float32) * dw_s   # (k,k,Cin)
    dw_w_k = jnp.pad(dw_w_k, ((0, 0), (0, 0), (0, cin_p - cin)))
    dw_b_k = jnp.pad(dw_b, (0, cin_p - cin)).reshape(1, cin_p)

    pw_w_k = jnp.transpose(pw_w[:, :, 0, 0], (1, 0)) * pw_s                           # (Cin,Cout) f32
    pw_w_k = jnp.pad(pw_w_k.astype(jnp.bfloat16), ((0, cin_p - cin), (0, cout_p - cout)))
    pw_b_k = jnp.pad(pw_b, (0, cout_p - cout)).reshape(1, cout_p)

    # Generation-aware VMEM budget (v7x: 64 MiB/core, v5e/v6e: 128 MiB), minus headroom
    # for Mosaic internal scratch.
    vmem_cap = _vmem_capacity_bytes()
    budget = vmem_cap - (6 << 20)

    bytes_in = hp * wp * cin_p * 2
    bytes_w = k * k * cin_p * 4 + cin_p * 4 + cin_p * tco * 2 + tco * 4
    bytes_out = ho * wo * tco * 2
    bytes_y = ho * wo * cin_p * 2
    bytes_dw_tmp = k * (rb + k - 1) * wo * cin_p * 2 + 2 * rb * wo * cin_p * 4
    bytes_pw_tmp = 2 * ho * wo * tco * 4 + ho * wo * cin_p * 2

    def _vmem_needed(in_bufs):
        return (in_bufs * bytes_in + 2 * (bytes_w + bytes_out) + bytes_y
                + max(bytes_dw_tmp, bytes_pw_tmp) + (4 << 20))

    # The padded input is only read at j == 0 but would normally stay double-buffered for
    # the whole cout loop; when VMEM-tight, single-buffer it (one exposed DMA per image).
    single_buf_in = _vmem_needed(2) > budget
    vmem_limit = int(min(_vmem_needed(1 if single_buf_in else 2), max(budget, 8 << 20)))

    x_idx = lambda b, j: (b, 0, 0, 0)
    if single_buf_in:
        x_spec = pl.BlockSpec((1, hp, wp, cin_p), x_idx, pipeline_mode=pl.Buffered(1))
    else:
        x_spec = pl.BlockSpec((1, hp, wp, cin_p), x_idx)

    out_nhwc = pl.pallas_call(
        functools.partial(_dwconv_kernel, k=k, rb=rb),
        out_shape=jax.ShapeDtypeStruct((n, ho, wo, cout_p), jnp.bfloat16),
        grid_spec=pltpu.PrefetchScalarGridSpec(
            num_scalar_prefetch=0,
            grid=(n, n_cout_tiles),
            in_specs=[
                x_spec,
                pl.BlockSpec((k, k, cin_p), lambda b, j: (0, 0, 0)),
                pl.BlockSpec((1, cin_p), lambda b, j: (0, 0)),
                pl.BlockSpec((cin_p, tco), lambda b, j: (0, j)),
                pl.BlockSpec((1, tco), lambda b, j: (0, j)),
            ],
            out_specs=pl.BlockSpec((1, ho, wo, tco), lambda b, j: (b, 0, 0, j)),
            scratch_shapes=[pltpu.VMEM((ho * wo, cin_p), jnp.bfloat16)],
        ),
        compiler_params=pltpu.CompilerParams(
            # Batch axis "parallel" (megacore).  The cout-tile axis MUST remain "arbitrary"
            # (sequential, innermost): the depthwise result cached in y_ref at j == 0 is
            # reused by every j > 0 tile of the same image.
            dimension_semantics=("parallel", "arbitrary"),
            vmem_limit_bytes=vmem_limit),
    )(xp, dw_w_k, dw_b_k, pw_w_k, pw_b_k)

    out = out_nhwc[:, :h, :w, :cout]                 # crop padded rows/cols/cout lanes
    if return_nhwc_bf16:
        # Skip the NCHW/f32 repack (a full extra HBM pass) when the consumer takes NHWC bf16.
        return out
    return jnp.transpose(out, (0, 3, 1, 2)).astype(jnp.float32)     # back to NCHW f32


def _reference(x_nchw, params, ksize=3):
    """Pure-JAX f32 reference (lax.conv) for correctness checking."""
    dw_w, dw_gamma, dw_beta, dw_mean, dw_var, \
        pw_w, pw_gamma, pw_beta, pw_mean, pw_var = params
    cin = x_nchw.shape[1]
    pad = (ksize - 1) // 2
    eps = 1e-5

    y = lax.conv_general_dilated(
        x_nchw, dw_w, window_strides=(1, 1), padding=((pad, pad), (pad, pad)),
        dimension_numbers=("NCHW", "OIHW", "NCHW"), feature_group_count=cin)
    y = (y - dw_mean[None, :, None, None]) / jnp.sqrt(dw_var + eps)[None, :, None, None]
    y = y * dw_gamma[None, :, None, None] + dw_beta[None, :, None, None]
    y = y * jax.nn.sigmoid(y)

    z = lax.conv_general_dilated(
        y, pw_w, window_strides=(1, 1), padding=((0, 0), (0, 0)),
        dimension_numbers=("NCHW", "OIHW", "NCHW"))
    z = (z - pw_mean[None, :, None, None]) / jnp.sqrt(pw_var + eps)[None, :, None, None]
    z = z * pw_gamma[None, :, None, None] + pw_beta[None, :, None, None]
    z = z * jax.nn.sigmoid(z)
    return z


def init_params(key, in_channels, out_channels, ksize):
    ks = jax.random.split(key, 8)
    dw_w = 0.1 * jax.random.normal(ks[0], (in_channels, 1, ksize, ksize), jnp.float32)
    dw_gamma = 1.0 + 0.1 * jax.random.normal(ks[1], (in_channels,), jnp.float32)
    dw_beta = 0.1 * jax.random.normal(ks[2], (in_channels,), jnp.float32)
    dw_mean = 0.05 * jax.random.normal(ks[3], (in_channels,), jnp.float32)
    dw_var = 0.5 + jnp.abs(jax.random.normal(ks[4], (in_channels,), jnp.float32))

    pw_w = 0.1 * jax.random.normal(ks[5], (out_channels, in_channels, 1, 1), jnp.float32)
    pw_gamma = 1.0 + 0.1 * jax.random.normal(ks[6], (out_channels,), jnp.float32)
    pw_beta = 0.1 * jax.random.normal(ks[7], (out_channels,), jnp.float32)
    pw_mean = jnp.zeros((out_channels,), jnp.float32)
    pw_var = jnp.ones((out_channels,), jnp.float32)

    return (dw_w, dw_gamma, dw_beta, dw_mean, dw_var,
            pw_w, pw_gamma, pw_beta, pw_mean, pw_var)


if __name__ == "__main__":
    key = jax.random.PRNGKey(0)

    # (N, C_IN, C_OUT, H, W, K) -- second config exercises non-multiple-of-8 spatial dims
    # (alignment padding path) and a 5x5 depthwise kernel.
    configs = [(2, 4, 8, 16, 16, 3),
               (1, 3, 8, 10, 12, 5)]

    for (N, C_IN, C_OUT, H, W, K) in configs:
        key, k_x, k_p = jax.random.split(key, 3)
        x = jax.random.normal(k_x, (N, C_IN, H, W), jnp.float32)
        params = init_params(k_p, C_IN, C_OUT, K)

        out = dwconv_forward(x, params, ksize=K)
        out = jax.block_until_ready(out)

        ref = _reference(x, params, ksize=K)
        assert out.shape == (N, C_OUT, H, W)
        # bf16 activations / weights / output -> loosened tolerance vs. the f32 reference.
        assert jnp.allclose(out, ref, atol=5e-2, rtol=5e-2), \
            f"config {(N, C_IN, C_OUT, H, W, K)}: max abs err {jnp.max(jnp.abs(out - ref))}"

    print("KERNEL_OK")
</pallas_src>

<mosaic_0001>
module attributes {stable_mosaic.version = 11 : i64} {
  func.func @_dwconv_kernel(%arg0: i32, %arg1: i32, %arg2: memref<1x18x18x128xbf16, #tpu.memory_space<vmem>>, %arg3: memref<3x3x128xf32, #tpu.memory_space<vmem>>, %arg4: memref<1x128xf32, #tpu.memory_space<vmem>>, %arg5: memref<128x128xbf16, #tpu.memory_space<vmem>>, %arg6: memref<1x128xf32, #tpu.memory_space<vmem>>, %arg7: memref<1x16x16x128xbf16, #tpu.memory_space<vmem>>, %arg8: memref<256x128xbf16, #tpu.memory_space<vmem>>) attributes {dimension_semantics = [#tpu.dimension_semantics<parallel>, #tpu.dimension_semantics<arbitrary>], iteration_bounds = array<i64: 2, 1>, scalar_prefetch = 0 : i64, scratch_operands = 1 : i64, tpu.core_type = #tpu.core_type<tc>, window_params = [{transform_indices = @transform_0, window_bounds = array<i64: 1, 18, 18, 128>}, {pipeline_mode = #tpu.pipeline_mode<synchronous>, transform_indices = @transform_1, window_bounds = array<i64: 3, 3, 128>}, {pipeline_mode = #tpu.pipeline_mode<synchronous>, transform_indices = @transform_2, window_bounds = array<i64: 1, 128>}, {transform_indices = @transform_3, window_bounds = array<i64: 128, 128>}, {transform_indices = @transform_4, window_bounds = array<i64: 1, 128>}, {transform_indices = @transform_5, window_bounds = array<i64: 1, 16, 16, 128>}]} {
    %c0_i32 = arith.constant 0 : i32
    %0 = arith.cmpi eq, %arg1, %c0_i32 : i32
    %1 = arith.extui %0 : i1 to i32
    %c0_i32_0 = arith.constant 0 : i32
    %2 = arith.cmpi ne, %1, %c0_i32_0 : i32
    scf.if %2 {
      %c0_11 = arith.constant 0 : index
      %c0_12 = arith.constant 0 : index
      %c0_13 = arith.constant 0 : index
      %18 = vector.load %arg3[%c0_11, %c0_12, %c0_13] : memref<3x3x128xf32, #tpu.memory_space<vmem>>, vector<3x3x128xf32>
      %c0_14 = arith.constant 0 : index
      %c0_15 = arith.constant 0 : index
      %19 = vector.load %arg4[%c0_14, %c0_15] : memref<1x128xf32, #tpu.memory_space<vmem>>, vector<1x128xf32>
      %c0_16 = arith.constant 0 : index
      %c0_17 = arith.constant 0 : index
      %c0_18 = arith.constant 0 : index
      %c0_19 = arith.constant 0 : index
      %20 = vector.load %arg2[%c0_16, %c0_17, %c0_18, %c0_19] : memref<1x18x18x128xbf16, #tpu.memory_space<vmem>>, vector<1x10x18x128xbf16>
      %21 = vector.shape_cast %20 : vector<1x10x18x128xbf16> to vector<10x18x128xbf16>
      %22 = vector.extract_strided_slice %21 {offsets = [0, 0, 0], sizes = [10, 16, 128], strides = [1, 1, 1]} : vector<10x18x128xbf16> to vector<10x16x128xbf16>
      %23 = vector.extract_strided_slice %21 {offsets = [0, 1, 0], sizes = [10, 16, 128], strides = [1, 1, 1]} : vector<10x18x128xbf16> to vector<10x16x128xbf16>
      %24 = vector.extract_strided_slice %21 {offsets = [0, 2, 0], sizes = [10, 16, 128], strides = [1, 1, 1]} : vector<10x18x128xbf16> to vector<10x16x128xbf16>
      %25 = vector.extract_strided_slice %22 {offsets = [0, 0, 0], sizes = [8, 16, 128], strides = [1, 1, 1]} : vector<10x16x128xbf16> to vector<8x16x128xbf16>
      %26 = vector.extract_strided_slice %18 {offsets = [0, 0, 0], sizes = [1, 1, 128], strides = [1, 1, 1]} : vector<3x3x128xf32> to vector<1x1x128xf32>
      %27 = vector.shape_cast %26 : vector<1x1x128xf32> to vector<128xf32>
      %28 = arith.extf %25 : vector<8x16x128xbf16> to vector<8x16x128xf32>
      %29 = vector.shape_cast %27 : vector<128xf32> to vector<1x1x128xf32>
      %30 = vector.broadcast %29 : vector<1x1x128xf32> to vector<8x16x128xf32>
      %31 = arith.mulf %28, %30 : vector<8x16x128xf32>
      %32 = vector.extract_strided_slice %23 {offsets = [0, 0, 0], sizes = [8, 16, 128], strides = [1, 1, 1]} : vector<10x16x128xbf16> to vector<8x16x128xbf16>
      %33 = vector.extract_strided_slice %18 {offsets = [0, 1, 0], sizes = [1, 1, 128], strides = [1, 1, 1]} : vector<3x3x128xf32> to vector<1x1x128xf32>
      %34 = vector.shape_cast %33 : vector<1x1x128xf32> to vector<128xf32>
      %35 = arith.extf %32 : vector<8x16x128xbf16> to vector<8x16x128xf32>
      %36 = vector.shape_cast %34 : vector<128xf32> to vector<1x1x128xf32>
      %37 = vector.broadcast %36 : vector<1x1x128xf32> to vector<8x16x128xf32>
      %38 = arith.mulf %35, %37 : vector<8x16x128xf32>
      %39 = arith.addf %31, %38 : vector<8x16x128xf32>
      %40 = vector.extract_strided_slice %24 {offsets = [0, 0, 0], sizes = [8, 16, 128], strides = [1, 1, 1]} : vector<10x16x128xbf16> to vector<8x16x128xbf16>
      %41 = vector.extract_strided_slice %18 {offsets = [0, 2, 0], sizes = [1, 1, 128], strides = [1, 1, 1]} : vector<3x3x128xf32> to vector<1x1x128xf32>
      %42 = vector.shape_cast %41 : vector<1x1x128xf32> to vector<128xf32>
      %43 = arith.extf %40 : vector<8x16x128xbf16> to vector<8x16x128xf32>
      %44 = vector.shape_cast %42 : vector<128xf32> to vector<1x1x128xf32>
      %45 = vector.broadcast %44 : vector<1x1x128xf32> to vector<8x16x128xf32>
      %46 = arith.mulf %43, %45 : vector<8x16x128xf32>
      %47 = arith.addf %39, %46 : vector<8x16x128xf32>
      %48 = vector.extract_strided_slice %22 {offsets = [1, 0, 0], sizes = [8, 16, 128], strides = [1, 1, 1]} : vector<10x16x128xbf16> to vector<8x16x128xbf16>
      %49 = vector.extract_strided_slice %18 {offsets = [1, 0, 0], sizes = [1, 1, 128], strides = [1, 1, 1]} : vector<3x3x128xf32> to vector<1x1x128xf32>
      %50 = vector.shape_cast %49 : vector<1x1x128xf32> to vector<128xf32>
      %51 = arith.extf %48 : vector<8x16x128xbf16> to vector<8x16x128xf32>
      %52 = vector.shape_cast %50 : vector<128xf32> to vector<1x1x128xf32>
      %53 = vector.broadcast %52 : vector<1x1x128xf32> to vector<8x16x128xf32>
      %54 = arith.mulf %51, %53 : vector<8x16x128xf32>
      %55 = arith.addf %47, %54 : vector<8x16x128xf32>
      %56 = vector.extract_strided_slice %23 {offsets = [1, 0, 0], sizes = [8, 16, 128], strides = [1, 1, 1]} : vector<10x16x128xbf16> to vector<8x16x128xbf16>
      %57 = vector.extract_strided_slice %18 {offsets = [1, 1, 0], sizes = [1, 1, 128], strides = [1, 1, 1]} : vector<3x3x128xf32> to vector<1x1x128xf32>
      %58 = vector.shape_cast %57 : vector<1x1x128xf32> to vector<128xf32>
      %59 = arith.extf %56 : vector<8x16x128xbf16> to vector<8x16x128xf32>
      %60 = vector.shape_cast %58 : vector<128xf32> to vector<1x1x128xf32>
      %61 = vector.broadcast %60 : vector<1x1x128xf32> to vector<8x16x128xf32>
      %62 = arith.mulf %59, %61 : vector<8x16x128xf32>
      %63 = arith.addf %55, %62 : vector<8x16x128xf32>
      %64 = vector.extract_strided_slice %24 {offsets = [1, 0, 0], sizes = [8, 16, 128], strides = [1, 1, 1]} : vector<10x16x128xbf16> to vector<8x16x128xbf16>
      %65 = vector.extract_strided_slice %18 {offsets = [1, 2, 0], sizes = [1, 1, 128], strides = [1, 1, 1]} : vector<3x3x128xf32> to vector<1x1x128xf32>
      %66 = vector.shape_cast %65 : vector<1x1x128xf32> to vector<128xf32>
      %67 = arith.extf %64 : vector<8x16x128xbf16> to vector<8x16x128xf32>
      %68 = vector.shape_cast %66 : vector<128xf32> to vector<1x1x128xf32>
      %69 = vector.broadcast %68 : vector<1x1x128xf32> to vector<8x16x128xf32>
      %70 = arith.mulf %67, %69 : vector<8x16x128xf32>
      %71 = arith.addf %63, %70 : vector<8x16x128xf32>
      %72 = vector.extract_strided_slice %22 {offsets = [2, 0, 0], sizes = [8, 16, 128], strides = [1, 1, 1]} : vector<10x16x128xbf16> to vector<8x16x128xbf16>
      %73 = vector.extract_strided_slice %18 {offsets = [2, 0, 0], sizes = [1, 1, 128], strides = [1, 1, 1]} : vector<3x3x128xf32> to vector<1x1x128xf32>
      %74 = vector.shape_cast %73 : vector<1x1x128xf32> to vector<128xf32>
      %75 = arith.extf %72 : vector<8x16x128xbf16> to vector<8x16x128xf32>
      %76 = vector.shape_cast %74 : vector<128xf32> to vector<1x1x128xf32>
      %77 = vector.broadcast %76 : vector<1x1x128xf32> to vector<8x16x128xf32>
      %78 = arith.mulf %75, %77 : vector<8x16x128xf32>
      %79 = arith.addf %71, %78 : vector<8x16x128xf32>
      %80 = vector.extract_strided_slice %23 {offsets = [2, 0, 0], sizes = [8, 16, 128], strides = [1, 1, 1]} : vector<10x16x128xbf16> to vector<8x16x128xbf16>
      %81 = vector.extract_strided_slice %18 {offsets = [2, 1, 0], sizes = [1, 1, 128], strides = [1, 1, 1]} : vector<3x3x128xf32> to vector<1x1x128xf32>
      %82 = vector.shape_cast %81 : vector<1x1x128xf32> to vector<128xf32>
      %83 = arith.extf %80 : vector<8x16x128xbf16> to vector<8x16x128xf32>
      %84 = vector.shape_cast %82 : vector<128xf32> to vector<1x1x128xf32>
      %85 = vector.broadcast %84 : vector<1x1x128xf32> to vector<8x16x128xf32>
      %86 = arith.mulf %83, %85 : vector<8x16x128xf32>
      %87 = arith.addf %79, %86 : vector<8x16x128xf32>
      %88 = vector.extract_strided_slice %24 {offsets = [2, 0, 0], sizes = [8, 16, 128], strides = [1, 1, 1]} : vector<10x16x128xbf16> to vector<8x16x128xbf16>
      %89 = vector.extract_strided_slice %18 {offsets = [2, 2, 0], sizes = [1, 1, 128], strides = [1, 1, 1]} : vector<3x3x128xf32> to vector<1x1x128xf32>
      %90 = vector.shape_cast %89 : vector<1x1x128xf32> to vector<128xf32>
      %91 = arith.extf %88 : vector<8x16x128xbf16> to vector<8x16x128xf32>
      %92 = vector.shape_cast %90 : vector<128xf32> to vector<1x1x128xf32>
      %93 = vector.broadcast %92 : vector<1x1x128xf32> to vector<8x16x128xf32>
      %94 = arith.mulf %91, %93 : vector<8x16x128xf32>
      %95 = arith.addf %87, %94 : vector<8x16x128xf32>
      %96 = vector.shape_cast %19 : vector<1x128xf32> to vector<1x1x128xf32>
      %97 = vector.broadcast %96 : vector<1x1x128xf32> to vector<8x16x128xf32>
      %98 = arith.addf %95, %97 : vector<8x16x128xf32>
      %99 = arith.negf %98 : vector<8x16x128xf32>
      %100 = math.exp %99 : vector<8x16x128xf32>
      %cst_20 = arith.constant 1.000000e+00 : f32
      %101 = vector.broadcast %cst_20 : f32 to vector<8x16x128xf32>
      %102 = arith.addf %101, %100 : vector<8x16x128xf32>
      %103 = arith.divf %101, %102 : vector<8x16x128xf32>
      %104 = arith.mulf %98, %103 : vector<8x16x128xf32>
      %105 = vector.shape_cast %104 : vector<8x16x128xf32> to vector<128x128xf32>
      %106 = arith.truncf %105 : vector<128x128xf32> to vector<128x128xbf16>
      %c0_21 = arith.constant 0 : index
      %c0_22 = arith.constant 0 : index
      %107 = vector.load %arg8[%c0_21, %c0_22] : memref<256x128xbf16, #tpu.memory_space<vmem>>, vector<128x128xbf16>
      tpu.vector_store %arg8[%c0_21, %c0_22], %106 {strides = array<i32>} : memref<256x128xbf16, #tpu.memory_space<vmem>>, vector<128x128xbf16>,
      %c0_23 = arith.constant 0 : index
      %c8 = arith.constant 8 : index
      %c0_24 = arith.constant 0 : index
      %c0_25 = arith.constant 0 : index
      %108 = vector.load %arg2[%c0_23, %c8, %c0_24, %c0_25] : memref<1x18x18x128xbf16, #tpu.memory_space<vmem>>, vector<1x10x18x128xbf16>
      %109 = vector.shape_cast %108 : vector<1x10x18x128xbf16> to vector<10x18x128xbf16>
      %110 = vector.extract_strided_slice %109 {offsets = [0, 0, 0], sizes = [10, 16, 128], strides = [1, 1, 1]} : vector<10x18x128xbf16> to vector<10x16x128xbf16>
      %111 = vector.extract_strided_slice %109 {offsets = [0, 1, 0], sizes = [10, 16, 128], strides = [1, 1, 1]} : vector<10x18x128xbf16> to vector<10x16x128xbf16>
      %112 = vector.extract_strided_slice %109 {offsets = [0, 2, 0], sizes = [10, 16, 128], strides = [1, 1, 1]} : vector<10x18x128xbf16> to vector<10x16x128xbf16>
      %113 = vector.extract_strided_slice %110 {offsets = [0, 0, 0], sizes = [8, 16, 128], strides = [1, 1, 1]} : vector<10x16x128xbf16> to vector<8x16x128xbf16>
      %114 = vector.extract_strided_slice %18 {offsets = [0, 0, 0], sizes = [1, 1, 128], strides = [1, 1, 1]} : vector<3x3x128xf32> to vector<1x1x128xf32>
      %115 = vector.shape_cast %114 : vector<1x1x128xf32> to vector<128xf32>
      %116 = arith.extf %113 : vector<8x16x128xbf16> to vector<8x16x128xf32>
      %117 = vector.shape_cast %115 : vector<128xf32> to vector<1x1x128xf32>
      %118 = vector.broadcast %117 : vector<1x1x128xf32> to vector<8x16x128xf32>
      %119 = arith.mulf %116, %118 : vector<8x16x128xf32>
      %120 = vector.extract_strided_slice %111 {offsets = [0, 0, 0], sizes = [8, 16, 128], strides = [1, 1, 1]} : vector<10x16x128xbf16> to vector<8x16x128xbf16>
      %121 = vector.extract_strided_slice %18 {offsets = [0, 1, 0], sizes = [1, 1, 128], strides = [1, 1, 1]} : vector<3x3x128xf32> to vector<1x1x128xf32>
      %122 = vector.shape_cast %121 : vector<1x1x128xf32> to vector<128xf32>
      %123 = arith.extf %120 : vector<8x16x128xbf16> to vector<8x16x128xf32>
      %124 = vector.shape_cast %122 : vector<128xf32> to vector<1x1x128xf32>
      %125 = vector.broadcast %124 : vector<1x1x128xf32> to vector<8x16x128xf32>
      %126 = arith.mulf %123, %125 : vector<8x16x128xf32>
      %127 = arith.addf %119, %126 : vector<8x16x128xf32>
      %128 = vector.extract_strided_slice %112 {offsets = [0, 0, 0], sizes = [8, 16, 128], strides = [1, 1, 1]} : vector<10x16x128xbf16> to vector<8x16x128xbf16>
      %129 = vector.extract_strided_slice %18 {offsets = [0, 2, 0], sizes = [1, 1, 128], strides = [1, 1, 1]} : vector<3x3x128xf32> to vector<1x1x128xf32>
      %130 = vector.shape_cast %129 : vector<1x1x128xf32> to vector<128xf32>
      %131 = arith.extf %128 : vector<8x16x128xbf16> to vector<8x16x128xf32>
      %132 = vector.shape_cast %130 : vector<128xf32> to vector<1x1x128xf32>
      %133 = vector.broadcast %132 : vector<1x1x128xf32> to vector<8x16x128xf32>
      %134 = arith.mulf %131, %133 : vector<8x16x128xf32>
      %135 = arith.addf %127, %134 : vector<8x16x128xf32>
      %136 = vector.extract_strided_slice %110 {offsets = [1, 0, 0], sizes = [8, 16, 128], strides = [1, 1, 1]} : vector<10x16x128xbf16> to vector<8x16x128xbf16>
      %137 = vector.extract_strided_slice %18 {offsets = [1, 0, 0], sizes = [1, 1, 128], strides = [1, 1, 1]} : vector<3x3x128xf32> to vector<1x1x128xf32>
      %138 = vector.shape_cast %137 : vector<1x1x128xf32> to vector<128xf32>
      %139 = arith.extf %136 : vector<8x16x128xbf16> to vector<8x16x128xf32>
      %140 = vector.shape_cast %138 : vector<128xf32> to vector<1x1x128xf32>
      %141 = vector.broadcast %140 : vector<1x1x128xf32> to vector<8x16x128xf32>
      %142 = arith.mulf %139, %141 : vector<8x16x128xf32>
      %143 = arith.addf %135, %142 : vector<8x16x128xf32>
      %144 = vector.extract_strided_slice %111 {offsets = [1, 0, 0], sizes = [8, 16, 128], strides = [1, 1, 1]} : vector<10x16x128xbf16> to vector<8x16x128xbf16>
      %145 = vector.extract_strided_slice %18 {offsets = [1, 1, 0], sizes = [1, 1, 128], strides = [1, 1, 1]} : vector<3x3x128xf32> to vector<1x1x128xf32>
      %146 = vector.shape_cast %145 : vector<1x1x128xf32> to vector<128xf32>
      %147 = arith.extf %144 : vector<8x16x128xbf16> to vector<8x16x128xf32>
      %148 = vector.shape_cast %146 : vector<128xf32> to vector<1x1x128xf32>
      %149 = vector.broadcast %148 : vector<1x1x128xf32> to vector<8x16x128xf32>
      %150 = arith.mulf %147, %149 : vector<8x16x128xf32>
      %151 = arith.addf %143, %150 : vector<8x16x128xf32>
      %152 = vector.extract_strided_slice %112 {offsets = [1, 0, 0], sizes = [8, 16, 128], strides = [1, 1, 1]} : vector<10x16x128xbf16> to vector<8x16x128xbf16>
      %153 = vector.extract_strided_slice %18 {offsets = [1, 2, 0], sizes = [1, 1, 128], strides = [1, 1, 1]} : vector<3x3x128xf32> to vector<1x1x128xf32>
      %154 = vector.shape_cast %153 : vector<1x1x128xf32> to vector<128xf32>
      %155 = arith.extf %152 : vector<8x16x128xbf16> to vector<8x16x128xf32>
      %156 = vector.shape_cast %154 : vector<128xf32> to vector<1x1x128xf32>
      %157 = vector.broadcast %156 : vector<1x1x128xf32> to vector<8x16x128xf32>
      %158 = arith.mulf %155, %157 : vector<8x16x128xf32>
      %159 = arith.addf %151, %158 : vector<8x16x128xf32>
      %160 = vector.extract_strided_slice %110 {offsets = [2, 0, 0], sizes = [8, 16, 128], strides = [1, 1, 1]} : vector<10x16x128xbf16> to vector<8x16x128xbf16>
      %161 = vector.extract_strided_slice %18 {offsets = [2, 0, 0], sizes = [1, 1, 128], strides = [1, 1, 1]} : vector<3x3x128xf32> to vector<1x1x128xf32>
      %162 = vector.shape_cast %161 : vector<1x1x128xf32> to vector<128xf32>
      %163 = arith.extf %160 : vector<8x16x128xbf16> to vector<8x16x128xf32>
      %164 = vector.shape_cast %162 : vector<128xf32> to vector<1x1x128xf32>
      %165 = vector.broadcast %164 : vector<1x1x128xf32> to vector<8x16x128xf32>
      %166 = arith.mulf %163, %165 : vector<8x16x128xf32>
      %167 = arith.addf %159, %166 : vector<8x16x128xf32>
      %168 = vector.extract_strided_slice %111 {offsets = [2, 0, 0], sizes = [8, 16, 128], strides = [1, 1, 1]} : vector<10x16x128xbf16> to vector<8x16x128xbf16>
      %169 = vector.extract_strided_slice %18 {offsets = [2, 1, 0], sizes = [1, 1, 128], strides = [1, 1, 1]} : vector<3x3x128xf32> to vector<1x1x128xf32>
      %170 = vector.shape_cast %169 : vector<1x1x128xf32> to vector<128xf32>
      %171 = arith.extf %168 : vector<8x16x128xbf16> to vector<8x16x128xf32>
      %172 = vector.shape_cast %170 : vector<128xf32> to vector<1x1x128xf32>
      %173 = vector.broadcast %172 : vector<1x1x128xf32> to vector<8x16x128xf32>
      %174 = arith.mulf %171, %173 : vector<8x16x128xf32>
      %175 = arith.addf %167, %174 : vector<8x16x128xf32>
      %176 = vector.extract_strided_slice %112 {offsets = [2, 0, 0], sizes = [8, 16, 128], strides = [1, 1, 1]} : vector<10x16x128xbf16> to vector<8x16x128xbf16>
      %177 = vector.extract_strided_slice %18 {offsets = [2, 2, 0], sizes = [1, 1, 128], strides = [1, 1, 1]} : vector<3x3x128xf32> to vector<1x1x128xf32>
      %178 = vector.shape_cast %177 : vector<1x1x128xf32> to vector<128xf32>
      %179 = arith.extf %176 : vector<8x16x128xbf16> to vector<8x16x128xf32>
      %180 = vector.shape_cast %178 : vector<128xf32> to vector<1x1x128xf32>
      %181 = vector.broadcast %180 : vector<1x1x128xf32> to vector<8x16x128xf32>
      %182 = arith.mulf %179, %181 : vector<8x16x128xf32>
      %183 = arith.addf %175, %182 : vector<8x16x128xf32>
      %184 = vector.shape_cast %19 : vector<1x128xf32> to vector<1x1x128xf32>
      %185 = vector.broadcast %184 : vector<1x1x128xf32> to vector<8x16x128xf32>
      %186 = arith.addf %183, %185 : vector<8x16x128xf32>
      %187 = arith.negf %186 : vector<8x16x128xf32>
      %188 = math.exp %187 : vector<8x16x128xf32>
      %cst_26 = arith.constant 1.000000e+00 : f32
      %189 = vector.broadcast %cst_26 : f32 to vector<8x16x128xf32>
      %190 = arith.addf %189, %188 : vector<8x16x128xf32>
      %191 = arith.divf %189, %190 : vector<8x16x128xf32>
      %192 = arith.mulf %186, %191 : vector<8x16x128xf32>
      %193 = vector.shape_cast %192 : vector<8x16x128xf32> to vector<128x128xf32>
      %194 = arith.truncf %193 : vector<128x128xf32> to vector<128x128xbf16>
      %c128 = arith.constant 128 : index
      %c0_27 = arith.constant 0 : index
      %195 = vector.load %arg8[%c128, %c0_27] : memref<256x128xbf16, #tpu.memory_space<vmem>>, vector<128x128xbf16>
      tpu.vector_store %arg8[%c128, %c0_27], %194 {strides = array<i32>} : memref<256x128xbf16, #tpu.memory_space<vmem>>, vector<128x128xbf16>,
    } else {
    }
    %c0 = arith.constant 0 : index
    %c0_1 = arith.constant 0 : index
    %3 = vector.load %arg8[%c0, %c0_1] : memref<256x128xbf16, #tpu.memory_space<vmem>>, vector<256x128xbf16>
    %c0_2 = arith.constant 0 : index
    %c0_3 = arith.constant 0 : index
    %4 = vector.load %arg5[%c0_2, %c0_3] : memref<128x128xbf16, #tpu.memory_space<vmem>>, vector<128x128xbf16>
    %cst = arith.constant dense<0.000000e+00> : vector<256x128xf32>
    %5 = tpu.matmul %3, %4, %cst {dimension_numbers = #tpu.dot_dimension_numbers<[1], [0], [0], [1], [0, 0, 1, 1], [], []>} : vector<256x128xbf16>, vector<128x128xbf16>, vector<256x128xf32> -> vector<256x128xf32>
    %c0_4 = arith.constant 0 : index
    %c0_5 = arith.constant 0 : index
    %6 = vector.load %arg6[%c0_4, %c0_5] : memref<1x128xf32, #tpu.memory_space<vmem>>, vector<1x128xf32>
    %7 = vector.broadcast %6 : vector<1x128xf32> to vector<256x128xf32>
    %8 = arith.addf %5, %7 : vector<256x128xf32>
    %9 = arith.negf %8 : vector<256x128xf32>
    %10 = math.exp %9 : vector<256x128xf32>
    %cst_6 = arith.constant 1.000000e+00 : f32
    %11 = vector.broadcast %cst_6 : f32 to vector<256x128xf32>
    %12 = arith.addf %11, %10 : vector<256x128xf32>
    %13 = arith.divf %11, %12 : vector<256x128xf32>
    %14 = arith.mulf %8, %13 : vector<256x128xf32>
    %15 = vector.shape_cast %14 : vector<256x128xf32> to vector<1x16x16x128xf32>
    %16 = arith.truncf %15 : vector<1x16x16x128xf32> to vector<1x16x16x128xbf16>
    %c0_7 = arith.constant 0 : index
    %c0_8 = arith.constant 0 : index
    %c0_9 = arith.constant 0 : index
    %c0_10 = arith.constant 0 : index
    %17 = vector.load %arg7[%c0_7, %c0_8, %c0_9, %c0_10] : memref<1x16x16x128xbf16, #tpu.memory_space<vmem>>, vector<1x16x16x128xbf16>
    tpu.vector_store %arg7[%c0_7, %c0_8, %c0_9, %c0_10], %16 {strides = array<i32>} : memref<1x16x16x128xbf16, #tpu.memory_space<vmem>>, vector<1x16x16x128xbf16>,
    return
  }
  func.func @transform_0(%arg0: i32, %arg1: i32) -> (i32, i32, i32, i32) {
    %c0_i32 = arith.constant 0 : i32
    %c0_i32_0 = arith.constant 0 : i32
    %c0_i32_1 = arith.constant 0 : i32
    %c0_i32_2 = arith.constant 0 : i32
    return %arg0, %c0_i32, %c0_i32_0, %c0_i32_1 : i32, i32, i32, i32
  }
  func.func @transform_1(%arg0: i32, %arg1: i32) -> (i32, i32, i32) {
    %c0_i32 = arith.constant 0 : i32
    %c0_i32_0 = arith.constant 0 : i32
    %c0_i32_1 = arith.constant 0 : i32
    %c0_i32_2 = arith.constant 0 : i32
    return %c0_i32, %c0_i32_0, %c0_i32_1 : i32, i32, i32
  }
  func.func @transform_2(%arg0: i32, %arg1: i32) -> (i32, i32) {
    %c0_i32 = arith.constant 0 : i32
    %c0_i32_0 = arith.constant 0 : i32
    %c0_i32_1 = arith.constant 0 : i32
    return %c0_i32, %c0_i32_0 : i32, i32
  }
  func.func @transform_3(%arg0: i32, %arg1: i32) -> (i32, i32) {
    %c0_i32 = arith.constant 0 : i32
    %c0_i32_0 = arith.constant 0 : i32
    return %c0_i32, %arg1 : i32, i32
  }
  func.func @transform_4(%arg0: i32, %arg1: i32) -> (i32, i32) {
    %c0_i32 = arith.constant 0 : i32
    %c0_i32_0 = arith.constant 0 : i32
    return %c0_i32, %arg1 : i32, i32
  }
  func.func @transform_5(%arg0: i32, %arg1: i32) -> (i32, i32, i32, i32) {
    %c0_i32 = arith.constant 0 : i32
    %c0_i32_0 = arith.constant 0 : i32
    %c0_i32_1 = arith.constant 0 : i32
    return %arg0, %c0_i32, %c0_i32_0, %arg1 : i32, i32, i32, i32
  }
}

</mosaic_0001>

<bundles_post_ra>
// kernel: dwconv_forward.1
= control target key start
LH: loop header
LB: loop body
LE: loop exit
PB: predicated region body
PF: predicated region fallthrough
CT: control target
= control target key end

     0   :  { %s3833_s18 = smov 0   ;;  %s3835_s19 = smov 0   ;;  %s5283_s0 = inlined_call_operand.vmem [shape: bf16[2,18,18,128], index: 0, kind: input, shape index: {}]   ;;  %s5284_s1 = inlined_call_operand.vmem [shape: f32[3,3,128], index: 1, kind: input, shape index: {}]   ;;  %s5285_s2 = inlined_call_operand.vmem [shape: f32[1,128], index: 2, kind: input, shape index: {}]   ;;  %s5286_s3 = inlined_call_operand.vmem [shape: bf16[128,128], index: 3, kind: input, shape index: {}]   ;;  %s5287_s4 = inlined_call_operand.vmem [shape: f32[1,128], index: 4, kind: input, shape index: {}]   ;;  %s5288_s5 = inlined_call_operand.vmem [shape: bf16[2,16,16,128], index: 5, kind: output, shape index: {}]  }
   0x1   :  { %s3837_s20 = smov 0  }
   0x2 LB: > { %s27_s21 = sadd.s32 1, %s3797_s19  ;;  %p3081_p0 = scmp.ge.s32.totalorder %s3801_s20, 1  ;;  %s3801_s20 = sphi %s3837_s20, %s15_s20   ;;  %s3797_s19 = sphi %s3835_s19, %s5290_s19   ;;  %s3793_s18 = sphi %s3833_s18, %s5289_s18  }
   0x3   : > { %p29_p1 = scmp.ge.s32.totalorder %s27_s21, 2  ;;  %p218_p2 = scmp.lt.s32.totalorder %s3801_s20, 3 }
   0x5   : > { %s5292_s21 = smov (%p29_p1, %s27_s21), 0  ;;  %p219_p3 = pnand %p3081_p0, %p218_p2 }
   0x6   : > { %v3513_v0 = vld [vmem:[%s5286_s3] sm:$0xff] (!%p219_p3)   ;;  %p256_p4 = scmp.lt.s32.totalorder (!%p219_p3), %s3793_s18, 1  ;;  %v331_v1 = vlaneseq (!%p219_p3)  ;;  %v3514_v2 = vld [vmem:[%s5286_s3 + $0x8] sm:$0xff] (!%p219_p3)   ;;  %v3515_v4 = vld [vmem:[%s5286_s3 + $0x10] sm:$0xff] (!%p219_p3)   ;;  %vm411_vm0 = vcmask (!%p219_p3), 1046528   ;;  %vm536_vm1 = vcmask (!%p219_p3), 1045504  }
   0x7   : > { %222 = sbr.rel (%p219_p3) target bundleno = 646 (0x286), region = 40  ;;  %3424 = vmatprep.subr.bf16.mxu0 (!%p219_p3), %v3513_v0  ;;  %3472 = vmatprep.subr.bf16.mxu1 (!%p219_p3), %v3513_v0  ;;  %v3516_v8 = vld [vmem:[%s5286_s3 + $0x18] sm:$0xff] (!%p219_p3)   ;;  %v281_v9 = vld [vmem:[%s5284_s1] sm:$0x7] (!%p219_p3)  ;;  %v282_v10 = vld [vmem:[%s5284_s1 + $0x4] sm:$0x7] (!%p219_p3) }
   0x8   : > { %3425 = vmatpush3.bf16.msra.mxu0 (!%p219_p3), %v3513_v0  ;;  %3480 = vmatpush3.bf16.msra.mxu1 (!%p219_p3), %v3513_v0  ;;  %v332_v3 = vshrl.u32 (!%p219_p3), %v331_v1, 7  ;;  %v3517_v28 = vld [vmem:[%s5286_s3 + $0x20] sm:$0xff] (!%p219_p3)   ;;  %v3925_v37 = vld [vmem:[%s5284_s1 + $0x8] sm:$0x7] (!%p219_p3)  ;;  %v3519_v0 = vld [vmem:[%s5286_s3 + $0x30] sm:$0xff] (!%p219_p3)  }
   0x9   : > { %3426 = vmatprep.subr.bf16.mxu0 (!%p219_p3), %v3514_v2  ;;  %3473 = vmatprep.subr.bf16.mxu1 (!%p219_p3), %v3514_v2  ;;  %v3518_v46 = vld [vmem:[%s5286_s3 + $0x28] sm:$0xff] (!%p219_p3)  }
   0xa   : > { %v3863_v5 = vsub.s32 (!%p219_p3), 0, %v332_v3  ;;  %v3870_v6 = vsub.s32 (!%p219_p3), 1, %v332_v3  ;;  %v3872_v7 = vsub.s32 (!%p219_p3), 2, %v332_v3 }
   0xc   : > { %3427 = vmatpush3.bf16.msra.mxu0 (!%p219_p3), %v3514_v2  ;;  %3481 = vmatpush3.bf16.msra.mxu1 (!%p219_p3), %v3514_v2  ;;  %v3886_v13 = vrot.slane (!%p219_p3), %v281_v9, %v3863_v5  ;;  %v3889_v14 = vrot.slane (!%p219_p3), %v281_v9, %v3870_v6  ;;  %v3892_v15 = vrot.slane (!%p219_p3), %v281_v9, %v3872_v7 }
   0xd   : > { %3428 = vmatprep.subr.bf16.mxu0 (!%p219_p3), %v3515_v4  ;;  %3474 = vmatprep.subr.bf16.mxu1 (!%p219_p3), %v3515_v4  ;;  %v3898_v22 = vrot.slane (!%p219_p3), %v282_v10, %v3863_v5  ;;  %v3937_v49 = vrot.slane (!%p219_p3), %v282_v10, %v3870_v6  ;;  %v3940_v50 = vrot.slane (!%p219_p3), %v282_v10, %v3872_v7 }
   0xe   : > { %s5294_s18 = smov (!%p256_p4, %s3793_s18), 1  ;;  %v3947_v54 = vrot.slane %v3925_v37, %v3863_v5  ;;  %v3951_v55 = vrot.slane %v3925_v37, %v3870_v6 }
   0xf   : > { %s3488_s28 = smul.u32 216, %s5294_s18  ;;  %s3223_s10 = sshll.u32 %s5294_s18, 7 }
  0x10   : > { %3429 = vmatpush3.bf16.msra.mxu0 %v3515_v4  ;;  %3482 = vmatpush3.bf16.msra.mxu1 %v3515_v4  ;;  %s5227_s13 = scalar_lea.vmem %s5288_s5, %s3223_s10 }
  0x11   : > { %s3868_s6 = scalar_lea.vmem %s5283_s0, %s3488_s28  ;;  %3430 = vmatprep.subr.bf16.mxu0 %v3516_v8  ;;  %3475 = vmatprep.subr.bf16.mxu1 %v3516_v8 }
  0x12   : > { %v3257_v11 = vld [vmem:[%s3868_s6] sm:$0xff]   ;;  %v287_v12 = vld [vmem:[%s3868_s6 + $0x8] sm:$0x1]  ;;  %v288_v18 = vld [vmem:[%s3868_s6 + $0xc] sm:$0xff]  }
  0x13   : > { %v3258_v16 = vunpack.c.l.bf16 %v3257_v11  ;;  %v3259_v17 = vunpack.c.h.bf16 %v3257_v11  ;;  %v290_v19 = vld [vmem:[%s3868_s6 + $0x14] sm:$0x1]  ;;  %v3376_v20 = vld [vmem:[%s3868_s6 + $0x18] sm:$0xff]   ;;  %v351_v21 = vunpack.c.l.bf16 %v287_v12  ;;  %v293_v25 = vld [vmem:[%s3868_s6 + $0x20] sm:$0x1]  ;;  %v3905_v26 = vunpack.c.l.bf16 %v288_v18 }
  0x14   : > { %v3900_v23 = vunpack.c.l.bf16 %v3376_v20  ;;  %v3902_v24 = vunpack.c.h.bf16 %v3376_v20  ;;  %v3907_v27 = vunpack.c.h.bf16 %v288_v18  ;;  %v3914_v31 = vunpack.c.l.bf16 %v290_v19  ;;  %3431 = vmatpush3.bf16.msra.mxu0 %v3516_v8  ;;  %3483 = vmatpush3.bf16.msra.mxu1 %v3516_v8  ;;  %v3380_v51 = vld [vmem:[%s3868_s6 + $0x60] sm:$0xff]  }
  0x15   : > { %v335_v29 = vmul.f32 %v3258_v16, %v3886_v13  ;;  %v336_v30 = vmul.f32 %v3259_v17, %v3886_v13  ;;  %v3916_v32 = vunpack.c.l.bf16 %v293_v25  ;;  %v363_v33 = vmul.f32 %v3258_v16, %v3889_v14  ;;  %3432 = vmatprep.subr.bf16.mxu0 %v3517_v28  ;;  %3476 = vmatprep.subr.bf16.mxu1 %v3517_v28  ;;  %v3520_v25 = vld [vmem:[%s5286_s3 + $0x38] sm:$0xff]  }
  0x16   : > { %v364_v34 = vmul.f32 %v3259_v17, %v3889_v14  ;;  %v365_v35 = vmul.f32 %v3889_v14, %v351_v21  ;;  %v488_v36 = vmul.f32 %v3258_v16, %v3892_v15  ;;  %v489_v38 = vmul.f32 %v3259_v17, %v3892_v15 }
  0x17   : > { %v490_v39 = vmul.f32 %v3892_v15, %v351_v21  ;;  %v615_v40 = vmul.f32 %v3898_v22, %v3905_v26  ;;  %v616_v41 = vmul.f32 %v3898_v22, %v3907_v27  ;;  %v412_v42 = vrot.slane %v363_v33, 1  ;;  %v3381_v21 = vld [vmem:[%s3868_s6 + $0x78] sm:$0xff]  }
  0x18   : > { %v413_v43 = vrot.slane %v364_v34, 1  ;;  %v415_v44 = vrot.slane %v365_v35, 1  ;;  %v537_v45 = vrot.slane %v488_v36, 2  ;;  %v538_v47 = vrot.slane %v489_v38, 2  ;;  %3433 = vmatpush3.bf16.msra.mxu0 %v3517_v28  ;;  %3484 = vmatpush3.bf16.msra.mxu1 %v3517_v28 }
  0x19   : > { %v540_v48 = vrot.slane %v490_v39, 2  ;;  %v652_v60 = vmul.f32 %v3937_v49, %v3905_v26  ;;  %v653_v61 = vmul.f32 %v3937_v49, %v3907_v27  ;;  %v654_v62 = vmul.f32 %v3937_v49, %v3914_v31  ;;  %3434 = vmatprep.subr.bf16.mxu0 %v3518_v46  ;;  %3477 = vmatprep.subr.bf16.mxu1 %v3518_v46 }
  0x1a   : > { %v414_v52 = vsel %vm411_vm0, %v412_v42, %v413_v43  ;;  %v416_v53 = vsel %vm411_vm0, %v413_v43, %v415_v44  ;;  %v539_v58 = vsel %vm536_vm1, %v537_v45, %v538_v47  ;;  %v3961_v63 = vunpack.c.l.bf16 %v3380_v51 }
  0x1b   : > { %v468_v56 = vadd.f32 %v414_v52, %v335_v29  ;;  %v469_v57 = vadd.f32 %v416_v53, %v336_v30  ;;  %v541_v59 = vsel %vm536_vm1, %v538_v47, %v540_v48  ;;  %v776_v3 = vmul.f32 %v3940_v50, %v3905_v26  ;;  %v3105_v47 = vld [vmem:[%s3868_s6 + $0x6c] sm:$0xff]  }
  0x1c   : > { %v3968_v4 = vunpack.c.h.bf16 %v3380_v51  ;;  %v700_v5 = vrot.slane %v652_v60, 1  ;;  %v701_v6 = vrot.slane %v653_v61, 1  ;;  %v703_v8 = vrot.slane %v654_v62, 1  ;;  %3435 = vmatpush3.bf16.msra.mxu0 %v3518_v46  ;;  %3485 = vmatpush3.bf16.msra.mxu1 %v3518_v46 }
  0x1d   : > { %v593_v1 = vadd.f32 %v539_v58, %v468_v56  ;;  %v594_v2 = vadd.f32 %v541_v59, %v469_v57  ;;  %v777_v9 = vmul.f32 %v3940_v50, %v3907_v27  ;;  %v778_v12 = vmul.f32 %v3940_v50, %v3914_v31  ;;  %3436 = vmatprep.subr.bf16.mxu0 %v3519_v0  ;;  %v3104_v58 = vld [vmem:[%s3868_s6 + $0x68] sm:$0x1]  ;;  %v3107_v59 = vld [vmem:[%s3868_s6 + $0x74] sm:$0x1] }
  0x1e   : > { %v824_v16 = vrot.slane %v776_v3, 2  ;;  %v702_v17 = vsel %vm411_vm0, %v700_v5, %v701_v6  ;;  %v704_v18 = vsel %vm411_vm0, %v701_v6, %v703_v8  ;;  %v902_v20 = vmul.f32 %v3900_v23, %v3947_v54  ;;  %3478 = vmatprep.subr.bf16.mxu1 %v3519_v0  ;;  %v4021_v8 = vld [vmem:[%s5285_s2] ss:$0 sm:$0xff] }
  0x1f   : > { %v631_v10 = vadd.f32 %v615_v40, %v593_v1  ;;  %v632_v11 = vadd.f32 %v616_v41, %v594_v2  ;;  %v825_v19 = vrot.slane %v777_v9, 2  ;;  %v827_v30 = vrot.slane %v778_v12, 2 }
  0x20   : > { %v903_v33 = vmul.f32 %v3902_v24, %v3947_v54  ;;  %v939_v35 = vmul.f32 %v3900_v23, %v3951_v55  ;;  %v940_v36 = vmul.f32 %v3902_v24, %v3951_v55  ;;  %v941_v38 = vmul.f32 %v3951_v55, %v3916_v32  ;;  %3437 = vmatpush3.bf16.msra.mxu0 %v3519_v0 }
  0x21   : > { %v756_v28 = vadd.f32 %v702_v17, %v631_v10  ;;  %v757_v29 = vadd.f32 %v704_v18, %v632_v11  ;;  %v826_v34 = vsel %vm536_vm1, %v824_v16, %v825_v19  ;;  %v828_v39 = vsel %vm536_vm1, %v825_v19, %v827_v30  ;;  %3486 = vmatpush3.bf16.msra.mxu1 %v3519_v0  ;;  %v3110_v0 = vld [vmem:[%s3868_s6 + $0x80] sm:$0x1] }
  0x22   : > { %v3994_v41 = vrot.slane %v3925_v37, %v3872_v7  ;;  %v3996_v42 = vunpack.c.l.bf16 %v3381_v21  ;;  %v987_v44 = vrot.slane %v939_v35, 1  ;;  %v988_v45 = vrot.slane %v940_v36, 1  ;;  %3438 = vmatprep.subr.bf16.mxu0 %v3520_v25  ;;  %3479 = vmatprep.subr.bf16.mxu1 %v3520_v25 }
  0x23   : > { %v880_v40 = vadd.f32 %v826_v34, %v756_v28  ;;  %v881_v43 = vadd.f32 %v828_v39, %v757_v29  ;;  %v990_v46 = vrot.slane %v941_v38, 1  ;;  %v4003_v37 = vunpack.c.h.bf16 %v3381_v21 }
  0x24   : > { %v1063_v51 = vmul.f32 %v3900_v23, %v3994_v41  ;;  %v1064_v7 = vmul.f32 %v3902_v24, %v3994_v41  ;;  %v989_v53 = vsel %vm411_vm0, %v987_v44, %v988_v45  ;;  %v1065_v57 = vmul.f32 %v3994_v41, %v3916_v32  ;;  %3439 = vmatpush3.bf16.msra.mxu0 %v3520_v25 }
  0x25   : > { %v918_v48 = vadd.f32 %v902_v20, %v880_v40  ;;  %v919_v52 = vadd.f32 %v903_v33, %v881_v43  ;;  %v991_v56 = vsel %vm411_vm0, %v988_v45, %v990_v46  ;;  %v4012_v1 = vunpack.c.l.bf16 %v3105_v47  ;;  %3487 = vmatpush3.bf16.msra.mxu1 %v3520_v25 }
  0x26   : > { %v1111_v61 = vrot.slane %v1063_v51, 2  ;;  %v1112_v62 = vrot.slane %v1064_v7, 2  ;;  %v1114_v3 = vrot.slane %v1065_v57, 2  ;;  %v4014_v5 = vunpack.c.h.bf16 %v3105_v47 }
  0x27   : > { %v1043_v60 = vadd.f32 %v989_v53, %v918_v48  ;;  %v1044_v2 = vadd.f32 %v991_v56, %v919_v52  ;;  %v1380_v6 = vmul.f32 %v3961_v63, %v3886_v13  ;;  %v1381_v10 = vmul.f32 %v3968_v4, %v3886_v13 }
  0x28   : > { %v1113_v9 = vsel %vm536_vm1, %v1111_v61, %v1112_v62  ;;  %v1396_v11 = vunpack.c.l.bf16 %v3104_v58  ;;  %v4026_v12 = vunpack.c.l.bf16 %v3107_v59  ;;  %v1115_v16 = vsel %vm536_vm1, %v1112_v62, %v1114_v3 }
  0x29   : > { %v1167_v17 = vadd.f32 %v1113_v9, %v1043_v60  ;;  %v4029_v18 = vunpack.c.l.bf16 %v3110_v0  ;;  %v1404_v19 = vmul.f32 %v3961_v63, %v3889_v14  ;;  %v1168_v20 = vadd.f32 %v1115_v16, %v1044_v2 }
  0x2a   : > { %v1405_v21 = vmul.f32 %v3968_v4, %v3889_v14  ;;  %v1406_v25 = vmul.f32 %v1396_v11, %v3889_v14  ;;  %v1524_v28 = vmul.f32 %v3961_v63, %v3892_v15  ;;  %v1525_v33 = vmul.f32 %v3968_v4, %v3892_v15 }
  0x2b   : > { %v4039_v29 = vadd.f32 %v4021_v8, %v1167_v17  ;;  %v1452_v30 = vrot.slane %v1404_v19, 1  ;;  %v1526_v34 = vmul.f32 %v1396_v11, %v3892_v15  ;;  %v4045_v35 = vadd.f32 %v4021_v8, %v1168_v20 }
  0x2c   : > { %v1453_v36 = vrot.slane %v1405_v21, 1  ;;  %v1455_v38 = vrot.slane %v1406_v25, 1  ;;  %v1572_v39 = vrot.slane %v1524_v28, 2  ;;  %v1573_v43 = vrot.slane %v1525_v33, 2 }
  0x2d   : > { %v3086_v40 = vmul.f32 -1.442695, %v4039_v29  ;;  %v1575_v44 = vrot.slane %v1526_v34, 2  ;;  %v1646_v63 = vmul.f32 %v4012_v1, %v3898_v22  ;;  %v3087_v45 = vmul.f32 -1.442695, %v4045_v35 }
  0x2e   : > { %v1454_v46 = vsel %vm411_vm0, %v1452_v30, %v1453_v36  ;;  %v1456_v4 = vsel %vm411_vm0, %v1453_v36, %v1455_v38  ;;  %v1647_v47 = vmul.f32 %v4014_v5, %v3898_v22  ;;  %v1574_v7 = vsel %vm536_vm1, %v1572_v39, %v1573_v43  ;;  %v294_v38 = vld [vmem:[%s3868_s6 + $0x24] sm:$0xff]  }
  0x2f   : > { %3521 = vpow2.f32 %v3086_v40  ;;  %v1508_v48 = vadd.f32 %v1454_v46, %v1380_v6  ;;  %v1509_v51 = vadd.f32 %v1456_v4, %v1381_v10  ;;  %v1576_v52 = vsel %vm536_vm1, %v1573_v43, %v1575_v44 }
  0x30   : > { %3523 = vpow2.f32 %v3087_v45  ;;  %v1679_v53 = vmul.f32 %v4012_v1, %v3937_v49  ;;  %v1680_v56 = vmul.f32 %v4014_v5, %v3937_v49  ;;  %v1681_v59 = vmul.f32 %v4026_v12, %v3937_v49 }
  0x31   : > { %v1628_v57 = vadd.f32 %v1574_v7, %v1508_v48  ;;  %v1629_v58 = vadd.f32 %v1576_v52, %v1509_v51  ;;  %v1799_v60 = vmul.f32 %v4012_v1, %v3940_v50  ;;  %v1800_v0 = vmul.f32 %v4014_v5, %v3940_v50 }
  0x32   : > { %v1727_v61 = vrot.slane %v1679_v53, 1  ;;  %v1728_v62 = vrot.slane %v1680_v56, 1  ;;  %v1801_v2 = vmul.f32 %v4026_v12, %v3940_v50  ;;  %v1730_v9 = vrot.slane %v1681_v59, 1 }
  0x33   : > { %v1662_v3 = vadd.f32 %v1646_v63, %v1628_v57  ;;  %v1663_v6 = vadd.f32 %v1647_v47, %v1629_v58  ;;  %v1847_v10 = vrot.slane %v1799_v60, 2  ;;  %v1848_v16 = vrot.slane %v1800_v0, 2 }
  0x34   : > { %v1729_v11 = vsel %vm411_vm0, %v1727_v61, %v1728_v62  ;;  %v1850_v17 = vrot.slane %v1801_v2, 2  ;;  %v1921_v19 = vmul.f32 %v3996_v42, %v3947_v54  ;;  %v1731_v20 = vsel %vm411_vm0, %v1728_v62, %v1730_v9  ;;  %v296_v2 = vld [vmem:[%s3868_s6 + $0x2c] sm:$0x1] }
  0x35   : > { %v1783_v21 = vadd.f32 %v1729_v11, %v1662_v3  ;;  %v1922_v25 = vmul.f32 %v4003_v37, %v3947_v54  ;;  %v1954_v28 = vmul.f32 %v3996_v42, %v3951_v55  ;;  %v1784_v30 = vadd.f32 %v1731_v20, %v1663_v6 }
  0x36   : > { %v1849_v33 = vsel %vm536_vm1, %v1847_v10, %v1848_v16  ;;  %v1851_v34 = vsel %vm536_vm1, %v1848_v16, %v1850_v17  ;;  %v1955_v36 = vmul.f32 %v4003_v37, %v3951_v55  ;;  %v1956_v40 = vmul.f32 %v4029_v18, %v3951_v55 }
  0x37   : > { %v1903_v39 = vadd.f32 %v1849_v33, %v1783_v21  ;;  %v2002_v43 = vrot.slane %v1954_v28, 1  ;;  %v2074_v44 = vmul.f32 %v3996_v42, %v3994_v41  ;;  %v1904_v63 = vadd.f32 %v1851_v34, %v1784_v30 }
  0x38   : > { %v2003_v45 = vrot.slane %v1955_v36, 1  ;;  %v2075_v46 = vmul.f32 %v4003_v37, %v3994_v41  ;;  %v2076_v4 = vmul.f32 %v4029_v18, %v3994_v41  ;;  %v2005_v51 = vrot.slane %v1956_v40, 1 }
  0x39   : > { %v3522_v47 = vpop.eup %3521  ;;  %v1937_v48 = vadd.f32 %v1921_v19, %v1903_v39  ;;  %v2122_v7 = vrot.slane %v2074_v44, 2  ;;  %v4090_v52 = vunpack.c.l.bf16 %v294_v38  ;;  %v1938_v57 = vadd.f32 %v1922_v25, %v1904_v63 }
  0x3a   : > { %v3524_v53 = vpop.eup %3523  ;;  %v1253_v56 = vadd.f32 1.0, %v3522_v47  ;;  %v2004_v58 = vsel %vm411_vm0, %v2002_v43, %v2003_v45  ;;  %v2123_v59 = vrot.slane %v2075_v46, 2  ;;  %v2006_v61 = vsel %vm411_vm0, %v2003_v45, %v2005_v51 }
  0x3b   : > { %v1254_v60 = vadd.f32 1.0, %v3524_v53  ;;  %v2058_v62 = vadd.f32 %v2004_v58, %v1937_v48  ;;  %v2125_v0 = vrot.slane %v2076_v4, 2  ;;  %v2059_v3 = vadd.f32 %v2006_v61, %v1938_v57 }
  0x3c   : > { %3525 = vrcp.f32 %v1253_v56  ;;  %v2124_v6 = vsel %vm536_vm1, %v2122_v7, %v2123_v59  ;;  %v4096_v9 = vunpack.c.h.bf16 %v294_v38  ;;  %v337_v16 = vmul.f32 %v3886_v13, %v3905_v26 }
  0x3d   : > { %3527 = vrcp.f32 %v1254_v60  ;;  %v2126_v10 = vsel %vm536_vm1, %v2123_v59, %v2125_v0  ;;  %v2178_v11 = vadd.f32 %v2124_v6, %v2058_v62  ;;  %v338_v19 = vmul.f32 %v3886_v13, %v3907_v27 }
  0x3e   : > { %v2179_v17 = vadd.f32 %v2126_v10, %v2059_v3  ;;  %v4103_v20 = vunpack.c.l.bf16 %v296_v2  ;;  %v366_v21 = vmul.f32 %v3889_v14, %v3905_v26  ;;  %v367_v28 = vmul.f32 %v3889_v14, %v3907_v27 }
  0x3f   : > { %v4108_v25 = vadd.f32 %v4021_v8, %v2178_v11  ;;  %v368_v30 = vmul.f32 %v3889_v14, %v3914_v31  ;;  %v491_v33 = vmul.f32 %v3892_v15, %v3905_v26  ;;  %v492_v38 = vmul.f32 %v3892_v15, %v3907_v27 }
  0x40   : > { %v4117_v34 = vadd.f32 %v4021_v8, %v2179_v17  ;;  %v417_v36 = vrot.slane %v366_v21, 1  ;;  %v493_v39 = vmul.f32 %v3892_v15, %v3914_v31  ;;  %v418_v43 = vrot.slane %v367_v28, 1 }
  0x41   : > { %v3132_v40 = vmul.f32 -1.442695, %v4108_v25  ;;  %v420_v44 = vrot.slane %v368_v30, 1  ;;  %v542_v63 = vrot.slane %v491_v33, 2  ;;  %v543_v46 = vrot.slane %v492_v38, 2 }
  0x42   : > { %v3133_v45 = vmul.f32 -1.442695, %v4117_v34  ;;  %v545_v4 = vrot.slane %v493_v39, 2  ;;  %v617_v26 = vmul.f32 %v3900_v23, %v3898_v22  ;;  %v419_v47 = vsel %vm411_vm0, %v417_v36, %v418_v43 }
  0x43   : > { %3529 = vpow2.f32 %v3132_v40  ;;  %v421_v27 = vsel %vm411_vm0, %v418_v43, %v420_v44  ;;  %v618_v31 = vmul.f32 %v3902_v24, %v3898_v22  ;;  %v470_v48 = vadd.f32 %v419_v47, %v337_v16 }
  0x44   : > { %3531 = vpow2.f32 %v3133_v45  ;;  %v471_v51 = vadd.f32 %v421_v27, %v338_v19  ;;  %v544_v7 = vsel %vm536_vm1, %v542_v63, %v543_v46  ;;  %v546_v53 = vsel %vm536_vm1, %v543_v46, %v545_v4 }
  0x45   : > { %v655_v56 = vmul.f32 %v3900_v23, %v3937_v49  ;;  %v656_v57 = vmul.f32 %v3902_v24, %v3937_v49  ;;  %v657_v58 = vmul.f32 %v3937_v49, %v3916_v32  ;;  %v595_v60 = vadd.f32 %v544_v7, %v470_v48 }
  0x46   : > { %v3526_v59 = vpop.eup %3525  ;;  %v596_v61 = vadd.f32 %v546_v53, %v471_v51  ;;  %v779_v62 = vmul.f32 %v3900_v23, %v3940_v50  ;;  %v780_v0 = vmul.f32 %v3902_v24, %v3940_v50  ;;  %v781_v21 = vmul.f32 %v3940_v50, %v3916_v32 }
  0x47   : > { %v3528_v2 = vpop.eup %3527  ;;  %v1301_v3 = vmul.f32 %v3526_v59, %v4039_v29  ;;  %v705_v6 = vrot.slane %v655_v56, 1  ;;  %v706_v10 = vrot.slane %v656_v57, 1  ;;  %v708_v11 = vrot.slane %v657_v58, 1 }
  0x48   : > { %v1302_v16 = vmul.f32 %v3528_v2, %v4045_v35  ;;  %v633_v17 = vadd.f32 %v617_v26, %v595_v60  ;;  %v634_v19 = vadd.f32 %v618_v31, %v596_v61  ;;  %v829_v33 = vrot.slane %v779_v62, 2 }
  0x49   : > { %v707_v28 = vsel %vm411_vm0, %v705_v6, %v706_v10  ;;  %v709_v30 = vsel %vm411_vm0, %v706_v10, %v708_v11  ;;  %v830_v36 = vrot.slane %v780_v0, 2  ;;  %v832_v29 = vrot.slane %v781_v21, 2  ;;  %v3111_v0 = vld [vmem:[%s3868_s6 + $0x84] sm:$0xff]   ;;  %v3113_v10 = vld [vmem:[%s3868_s6 + $0x8c] sm:$0x1] }
  0x4a   : > { %v1317_v38 = vpack.c.bf16 %v1302_v16, %v1301_v3  ;;  %v758_v39 = vadd.f32 %v707_v28, %v633_v17  ;;  %v759_v40 = vadd.f32 %v709_v30, %v634_v19  ;;  %v904_v35 = vmul.f32 %v3947_v54, %v4090_v52 }
  0x4b   : > { %v831_v43 = vsel %vm536_vm1, %v829_v33, %v830_v36  ;;  %v905_v44 = vmul.f32 %v3947_v54, %v4096_v9  ;;  %v942_v63 = vmul.f32 %v3951_v55, %v4090_v52  ;;  %v833_v45 = vsel %vm536_vm1, %v830_v36, %v832_v29 }
  0x4c   : > { %3440 = vmatprep.mubr.bf16.mxu0 %v1317_v38  ;;  %v882_v46 = vadd.f32 %v831_v43, %v758_v39  ;;  %v943_v4 = vmul.f32 %v3951_v55, %v4096_v9  ;;  %v944_v26 = vmul.f32 %v3951_v55, %v4103_v20  ;;  %v883_v27 = vadd.f32 %v833_v45, %v759_v40 }
  0x4d   : > { %v3530_v47 = vpop.eup %3529  ;;  %v992_v31 = vrot.slane %v942_v63, 1  ;;  %v1066_v48 = vmul.f32 %v3994_v41, %v4090_v52  ;;  %v1067_v51 = vmul.f32 %v3994_v41, %v4096_v9  ;;  %v1068_v61 = vmul.f32 %v3994_v41, %v4103_v20 }
  0x4e   : > { %v3532_v7 = vpop.eup %3531  ;;  %v2258_v53 = vadd.f32 1.0, %v3530_v47  ;;  %v920_v56 = vadd.f32 %v904_v35, %v882_v46  ;;  %v993_v57 = vrot.slane %v943_v4, 1  ;;  %v995_v58 = vrot.slane %v944_v26, 1 }
  0x4f   : > { %v2259_v59 = vadd.f32 1.0, %v3532_v7  ;;  %v921_v60 = vadd.f32 %v905_v44, %v883_v27  ;;  %v1116_v62 = vrot.slane %v1066_v48, 2  ;;  %v1117_v6 = vrot.slane %v1067_v51, 2 }
  0x50   : > { %3533 = vrcp.f32 %v2258_v53  ;;  %v994_v2 = vsel %vm411_vm0, %v992_v31, %v993_v57  ;;  %v996_v3 = vsel %vm411_vm0, %v993_v57, %v995_v58  ;;  %v1119_v17 = vrot.slane %v1068_v61, 2 }
  0x51   : > { %3535 = vrcp.f32 %v2259_v59  ;;  %v1045_v11 = vadd.f32 %v994_v2, %v920_v56  ;;  %v1046_v16 = vadd.f32 %v996_v3, %v921_v60  ;;  %v1118_v19 = vsel %vm536_vm1, %v1116_v62, %v1117_v6 }
  0x52   : > { %v4172_v21 = vunpack.c.l.bf16 %v3111_v0  ;;  %v4174_v28 = vunpack.c.h.bf16 %v3111_v0  ;;  %v1382_v30 = vmul.f32 %v4012_v1, %v3886_v13  ;;  %v1120_v33 = vsel %vm536_vm1, %v1117_v6, %v1119_v17 }
  0x53   : > { %v1169_v36 = vadd.f32 %v1118_v19, %v1045_v11  ;;  %v1383_v38 = vmul.f32 %v4014_v5, %v3886_v13  ;;  %v4181_v39 = vunpack.c.l.bf16 %v3113_v10  ;;  %v1170_v40 = vadd.f32 %v1120_v33, %v1046_v16 }
  0x54   : > { %v1407_v29 = vmul.f32 %v4012_v1, %v3889_v14  ;;  %v1408_v43 = vmul.f32 %v4014_v5, %v3889_v14  ;;  %v1409_v35 = vmul.f32 %v4026_v12, %v3889_v14  ;;  %v1527_v63 = vmul.f32 %v4012_v1, %v3892_v15 }
  0x55   : > { %v4190_v44 = vadd.f32 %v4021_v8, %v1169_v36  ;;  %v1528_v45 = vmul.f32 %v4014_v5, %v3892_v15  ;;  %v1529_v46 = vmul.f32 %v4026_v12, %v3892_v15  ;;  %v4199_v4 = vadd.f32 %v4021_v8, %v1170_v40 }
  0x56   : > { %v1457_v26 = vrot.slane %v1407_v29, 1  ;;  %v1458_v47 = vrot.slane %v1408_v43, 1  ;;  %v1460_v27 = vrot.slane %v1409_v35, 1  ;;  %v1577_v48 = vrot.slane %v1527_v63, 2 }
  0x57   : > { %v3088_v31 = vmul.f32 -1.442695, %v4190_v44  ;;  %v1578_v51 = vrot.slane %v1528_v45, 2  ;;  %v1580_v7 = vrot.slane %v1529_v46, 2  ;;  %v3089_v53 = vmul.f32 -1.442695, %v4199_v4 }
  0x58   : > { %v1459_v1 = vsel %vm411_vm0, %v1457_v26, %v1458_v47  ;;  %v1461_v5 = vsel %vm411_vm0, %v1458_v47, %v1460_v27  ;;  %v1648_v12 = vmul.f32 %v3996_v42, %v3898_v22  ;;  %v1649_v61 = vmul.f32 %v4003_v37, %v3898_v22 }
  0x59   : > { %3537 = vpow2.f32 %v3088_v31  ;;  %v1510_v56 = vadd.f32 %v1459_v1, %v1382_v30  ;;  %v1511_v57 = vadd.f32 %v1461_v5, %v1383_v38  ;;  %v1579_v58 = vsel %vm536_vm1, %v1577_v48, %v1578_v51 }
  0x5a   : > { %v3534_v59 = vpop.eup %3533  ;;  %3539 = vpow2.f32 %v3089_v53  ;;  %v1581_v60 = vsel %vm536_vm1, %v1578_v51, %v1580_v7  ;;  %v1682_v62 = vmul.f32 %v3996_v42, %v3937_v49  ;;  %v1683_v10 = vmul.f32 %v4003_v37, %v3937_v49 }
  0x5b   : > { %v3536_v0 = vpop.eup %3535  ;;  %v2306_v2 = vmul.f32 %v3534_v59, %v4108_v25  ;;  %v1630_v3 = vadd.f32 %v1579_v58, %v1510_v56  ;;  %v1631_v6 = vadd.f32 %v1581_v60, %v1511_v57  ;;  %v1684_v16 = vmul.f32 %v4029_v18, %v3937_v49 }
  0x5c   : > { %v2307_v11 = vmul.f32 %v3536_v0, %v4117_v34  ;;  %v1732_v17 = vrot.slane %v1682_v62, 1  ;;  %v1802_v19 = vmul.f32 %v3996_v42, %v3940_v50  ;;  %v1733_v36 = vrot.slane %v1683_v10, 1 }
  0x5d   : > { %v1664_v30 = vadd.f32 %v1648_v12, %v1630_v3  ;;  %v1665_v33 = vadd.f32 %v1649_v61, %v1631_v6  ;;  %v1803_v25 = vmul.f32 %v4003_v37, %v3940_v50  ;;  %v1735_v40 = vrot.slane %v1684_v16, 1  ;;  %v3377_v6 = vld [vmem:[%s3868_s6 + $0x30] sm:$0xff]  }
  0x5e   : > { %v2322_v38 = vpack.c.bf16 %v2307_v11, %v2306_v2  ;;  %v1804_v29 = vmul.f32 %v4029_v18, %v3940_v50  ;;  %v1852_v43 = vrot.slane %v1802_v19, 2  ;;  %v1734_v34 = vsel %vm411_vm0, %v1732_v17, %v1733_v36 }
  0x5f   : > { %v1853_v35 = vrot.slane %v1803_v25, 2  ;;  %v1923_v63 = vmul.f32 %v4172_v21, %v3947_v54  ;;  %v1924_v45 = vmul.f32 %v4174_v28, %v3947_v54  ;;  %v1736_v46 = vsel %vm411_vm0, %v1733_v36, %v1735_v40  ;;  %v299_v36 = vld [vmem:[%s3868_s6 + $0x38] sm:$0x1] }
  0x60   : > { %3456 = vmatprep.mubr.bf16.mxu1 %v2322_v38  ;;  %v1785_v26 = vadd.f32 %v1734_v34, %v1664_v30  ;;  %v1855_v47 = vrot.slane %v1804_v29, 2  ;;  %v1957_v27 = vmul.f32 %v4172_v21, %v3951_v55  ;;  %v1786_v31 = vadd.f32 %v1736_v46, %v1665_v33 }
  0x61   : > { %v1854_v48 = vsel %vm536_vm1, %v1852_v43, %v1853_v35  ;;  %v1958_v51 = vmul.f32 %v4174_v28, %v3951_v55  ;;  %v1959_v7 = vmul.f32 %v4181_v39, %v3951_v55  ;;  %v2077_v12 = vmul.f32 %v4172_v21, %v3994_v41 }
  0x62   : > { %v1856_v53 = vsel %vm536_vm1, %v1853_v35, %v1855_v47  ;;  %v1905_v1 = vadd.f32 %v1854_v48, %v1785_v26  ;;  %v2007_v5 = vrot.slane %v1957_v27, 1  ;;  %v2078_v60 = vmul.f32 %v4174_v28, %v3994_v41 }
  0x63   : > { %v3538_v56 = vpop.eup %3537  ;;  %v1906_v57 = vadd.f32 %v1856_v53, %v1786_v31  ;;  %v2008_v58 = vrot.slane %v1958_v51, 1  ;;  %v2010_v59 = vrot.slane %v1959_v7, 1  ;;  %v2079_v2 = vmul.f32 %v4181_v39, %v3994_v41 }
  0x64   : > { %v3540_v61 = vpop.eup %3539  ;;  %v1255_v62 = vadd.f32 1.0, %v3538_v56  ;;  %v1939_v0 = vadd.f32 %v1923_v63, %v1905_v1  ;;  %v2127_v3 = vrot.slane %v2077_v12, 2  ;;  %v2128_v30 = vrot.slane %v2078_v60, 2 }
  0x65   : > { %v1256_v10 = vadd.f32 1.0, %v3540_v61  ;;  %v1940_v11 = vadd.f32 %v1924_v45, %v1906_v57  ;;  %v2009_v16 = vsel %vm411_vm0, %v2007_v5, %v2008_v58  ;;  %v2011_v17 = vsel %vm411_vm0, %v2008_v58, %v2010_v59 }
  0x66   : > { %3541 = vrcp.f32 %v1255_v62  ;;  %v2060_v19 = vadd.f32 %v2009_v16, %v1939_v0  ;;  %v2130_v33 = vrot.slane %v2079_v2, 2  ;;  %v4249_v38 = vunpack.c.l.bf16 %v3377_v6 }
  0x67   : > { %3543 = vrcp.f32 %v1256_v10  ;;  %v2061_v25 = vadd.f32 %v2011_v17, %v1940_v11  ;;  %v4251_v40 = vunpack.c.h.bf16 %v3377_v6  ;;  %v2129_v29 = vsel %vm536_vm1, %v2127_v3, %v2128_v30 }
  0x68   : > { %v2131_v43 = vsel %vm536_vm1, %v2128_v30, %v2130_v33  ;;  %v339_v34 = vmul.f32 %v3900_v23, %v3886_v13  ;;  %v340_v35 = vmul.f32 %v3902_v24, %v3886_v13  ;;  %v2180_v63 = vadd.f32 %v2129_v29, %v2060_v19 }
  0x69   : > { %v2181_v45 = vadd.f32 %v2131_v43, %v2061_v25  ;;  %v4259_v46 = vunpack.c.l.bf16 %v299_v36  ;;  %v369_v26 = vmul.f32 %v3900_v23, %v3889_v14  ;;  %v370_v47 = vmul.f32 %v3902_v24, %v3889_v14 }
  0x6a   : > { %v371_v27 = vmul.f32 %v3889_v14, %v3916_v32  ;;  %v494_v31 = vmul.f32 %v3900_v23, %v3892_v15  ;;  %v495_v48 = vmul.f32 %v3902_v24, %v3892_v15  ;;  %v4272_v51 = vadd.f32 %v4021_v8, %v2180_v63 }
  0x6b   : > { %v4275_v7 = vadd.f32 %v4021_v8, %v2181_v45  ;;  %v422_v53 = vrot.slane %v369_v26, 1  ;;  %v496_v1 = vmul.f32 %v3892_v15, %v3916_v32  ;;  %v423_v5 = vrot.slane %v370_v47, 1 }
  0x6c   : > { %v425_v12 = vrot.slane %v371_v27, 1  ;;  %v547_v56 = vrot.slane %v494_v31, 2  ;;  %v548_v57 = vrot.slane %v495_v48, 2  ;;  %v3134_v58 = vmul.f32 -1.442695, %v4272_v51 }
  0x6d   : > { %v3135_v23 = vmul.f32 -1.442695, %v4275_v7  ;;  %v550_v59 = vrot.slane %v496_v1, 2  ;;  %v619_v24 = vmul.f32 %v3898_v22, %v4090_v52  ;;  %v424_v60 = vsel %vm411_vm0, %v422_v53, %v423_v5 }
  0x6e   : > { %v426_v61 = vsel %vm411_vm0, %v423_v5, %v425_v12  ;;  %v549_v62 = vsel %vm536_vm1, %v547_v56, %v548_v57  ;;  %v620_v32 = vmul.f32 %v3898_v22, %v4096_v9  ;;  %3545 = vpow2.f32 %v3134_v58 }
  0x6f   : > { %v472_v0 = vadd.f32 %v424_v60, %v339_v34  ;;  %v473_v2 = vadd.f32 %v426_v61, %v340_v35  ;;  %v551_v3 = vsel %vm536_vm1, %v548_v57, %v550_v59  ;;  %3547 = vpow2.f32 %v3135_v23 }
  0x70   : > { %v3542_v6 = vpop.eup %3541  ;;  %v658_v10 = vmul.f32 %v3937_v49, %v4090_v52  ;;  %v659_v11 = vmul.f32 %v3937_v49, %v4096_v9  ;;  %v660_v16 = vmul.f32 %v3937_v49, %v4103_v20  ;;  %v782_v36 = vmul.f32 %v3940_v50, %v4090_v52 }
  0x71   : > { %v3544_v17 = vpop.eup %3543  ;;  %v1303_v19 = vmul.f32 %v3542_v6, %v4190_v44  ;;  %v597_v30 = vadd.f32 %v549_v62, %v472_v0  ;;  %v598_v33 = vadd.f32 %v551_v3, %v473_v2  ;;  %v783_v45 = vmul.f32 %v3940_v50, %v4096_v9 }
  0x72   : > { %v1304_v25 = vmul.f32 %v3544_v17, %v4199_v4  ;;  %v710_v29 = vrot.slane %v658_v10, 1  ;;  %v711_v43 = vrot.slane %v659_v11, 1  ;;  %v713_v34 = vrot.slane %v660_v16, 1  ;;  %v3382_v11 = vld [vmem:[%s3868_s6 + $0x90] sm:$0xff]  }
  0x73   : > { %v635_v35 = vadd.f32 %v619_v24, %v597_v30  ;;  %v636_v63 = vadd.f32 %v620_v32, %v598_v33  ;;  %v784_v26 = vmul.f32 %v3940_v50, %v4103_v20  ;;  %v834_v31 = vrot.slane %v782_v36, 2 }
  0x74   : > { %v1318_v47 = vpack.c.bf16 %v1304_v25, %v1303_v19  ;;  %v712_v44 = vsel %vm411_vm0, %v710_v29, %v711_v43  ;;  %v714_v27 = vsel %vm411_vm0, %v711_v43, %v713_v34  ;;  %v835_v4 = vrot.slane %v783_v45, 2  ;;  %v3116_v45 = vld [vmem:[%s3868_s6 + $0x98] sm:$0x1] }
  0x75   : > { %v760_v48 = vadd.f32 %v712_v44, %v635_v35  ;;  %v761_v53 = vadd.f32 %v714_v27, %v636_v63  ;;  %v837_v1 = vrot.slane %v784_v26, 2  ;;  %v906_v5 = vmul.f32 %v4249_v38, %v3947_v54 }
  0x76   : > { %3441 = vmatmul.mubr.bf16.vlgmr.msra.gmra.mrb[0].mxu0 %v1318_v47  ;;  %v907_v12 = vmul.f32 %v4251_v40, %v3947_v54  ;;  %v945_v56 = vmul.f32 %v4249_v38, %v3951_v55  ;;  %v946_v57 = vmul.f32 %v4251_v40, %v3951_v55  ;;  %v836_v58 = vsel %vm536_vm1, %v834_v31, %v835_v4 }
  0x77   : > { %v838_v23 = vsel %vm536_vm1, %v835_v4, %v837_v1  ;;  %v947_v59 = vmul.f32 %v3951_v55, %v4259_v46  ;;  %v1069_v24 = vmul.f32 %v4249_v38, %v3994_v41  ;;  %v884_v60 = vadd.f32 %v836_v58, %v760_v48 }
  0x78   : > { %v885_v61 = vadd.f32 %v838_v23, %v761_v53  ;;  %v997_v62 = vrot.slane %v945_v56, 1  ;;  %v998_v32 = vrot.slane %v946_v57, 1  ;;  %v3546_v0 = vpop.eup %3545  ;;  %v1070_v3 = vmul.f32 %v4251_v40, %v3994_v41 }
  0x79   : > { %v1000_v2 = vrot.slane %v947_v59, 1  ;;  %v1071_v6 = vmul.f32 %v3994_v41, %v4259_v46  ;;  %v1121_v10 = vrot.slane %v1069_v24, 2  ;;  %v3548_v16 = vpop.eup %3547  ;;  %v2260_v17 = vadd.f32 1.0, %v3546_v0 }
  0x7a   : > { %v922_v19 = vadd.f32 %v906_v5, %v884_v60  ;;  %v923_v30 = vadd.f32 %v907_v12, %v885_v61  ;;  %v999_v33 = vsel %vm411_vm0, %v997_v62, %v998_v32  ;;  %v2261_v36 = vadd.f32 1.0, %v3548_v16 }
  0x7b   : > { %v1001_v25 = vsel %vm411_vm0, %v998_v32, %v1000_v2  ;;  %v1122_v29 = vrot.slane %v1070_v3, 2  ;;  %v1124_v43 = vrot.slane %v1071_v6, 2  ;;  %3549 = vrcp.f32 %v2260_v17 }
  0x7c   : > { %v1047_v34 = vadd.f32 %v999_v33, %v922_v19  ;;  %v1048_v35 = vadd.f32 %v1001_v25, %v923_v30  ;;  %v4326_v63 = vunpack.c.l.bf16 %v3382_v11  ;;  %3551 = vrcp.f32 %v2261_v36 }
  0x7d   : > { %v1123_v26 = vsel %vm536_vm1, %v1121_v10, %v1122_v29  ;;  %v1125_v47 = vsel %vm536_vm1, %v1122_v29, %v1124_v43  ;;  %v4331_v44 = vunpack.c.h.bf16 %v3382_v11  ;;  %v1384_v48 = vmul.f32 %v3996_v42, %v3886_v13 }
  0x7e   : > { %v1171_v27 = vadd.f32 %v1123_v26, %v1047_v34  ;;  %v1172_v31 = vadd.f32 %v1125_v47, %v1048_v35  ;;  %v1385_v53 = vmul.f32 %v4003_v37, %v3886_v13  ;;  %v4337_v4 = vunpack.c.l.bf16 %v3116_v45 }
  0x7f   : > { %v1410_v1 = vmul.f32 %v3996_v42, %v3889_v14  ;;  %v1411_v5 = vmul.f32 %v4003_v37, %v3889_v14  ;;  %v1412_v12 = vmul.f32 %v4029_v18, %v3889_v14  ;;  %v1530_v58 = vmul.f32 %v3996_v42, %v3892_v15 }
  0x80   : > { %v4346_v56 = vadd.f32 %v4021_v8, %v1171_v27  ;;  %v4349_v57 = vadd.f32 %v4021_v8, %v1172_v31  ;;  %v1531_v23 = vmul.f32 %v4003_v37, %v3892_v15  ;;  %v1532_v61 = vmul.f32 %v4029_v18, %v3892_v15 }
  0x81   : > { %v1462_v59 = vrot.slane %v1410_v1, 1  ;;  %v1463_v24 = vrot.slane %v1411_v5, 1  ;;  %v1465_v60 = vrot.slane %v1412_v12, 1  ;;  %v1582_v0 = vrot.slane %v1530_v58, 2 }
  0x82   : > { %v3090_v62 = vmul.f32 -1.442695, %v4346_v56  ;;  %v3091_v32 = vmul.f32 -1.442695, %v4349_v57  ;;  %v1583_v2 = vrot.slane %v1531_v23, 2  ;;  %v1585_v42 = vrot.slane %v1532_v61, 2 }
  0x83   : > { %v1464_v3 = vsel %vm411_vm0, %v1462_v59, %v1463_v24  ;;  %v1466_v6 = vsel %vm411_vm0, %v1463_v24, %v1465_v60  ;;  %v1650_v37 = vmul.f32 %v4172_v21, %v3898_v22  ;;  %v1651_v17 = vmul.f32 %v4174_v28, %v3898_v22 }
  0x84   : > { %3553 = vpow2.f32 %v3090_v62  ;;  %v1512_v10 = vadd.f32 %v1464_v3, %v1384_v48  ;;  %v1513_v11 = vadd.f32 %v1466_v6, %v1385_v53  ;;  %v1584_v16 = vsel %vm536_vm1, %v1582_v0, %v1583_v2 }
  0x85   : > { %3555 = vpow2.f32 %v3091_v32  ;;  %v1586_v18 = vsel %vm536_vm1, %v1583_v2, %v1585_v42  ;;  %v1685_v19 = vmul.f32 %v4172_v21, %v3937_v49  ;;  %v3550_v30 = vpop.eup %3549  ;;  %v1686_v25 = vmul.f32 %v4174_v28, %v3937_v49 }
  0x86   : > { %v1632_v33 = vadd.f32 %v1584_v16, %v1512_v10  ;;  %v1633_v36 = vadd.f32 %v1586_v18, %v1513_v11  ;;  %v1687_v29 = vmul.f32 %v4181_v39, %v3937_v49  ;;  %v3552_v43 = vpop.eup %3551  ;;  %v2308_v34 = vmul.f32 %v3550_v30, %v4272_v51 }
  0x87   : > { %v1737_v35 = vrot.slane %v1685_v19, 1  ;;  %v1805_v45 = vmul.f32 %v4172_v21, %v3940_v50  ;;  %v1806_v26 = vmul.f32 %v4174_v28, %v3940_v50  ;;  %v2309_v47 = vmul.f32 %v3552_v43, %v4275_v7 }
  0x88   : > { %v1666_v27 = vadd.f32 %v1650_v37, %v1632_v33  ;;  %v1667_v31 = vadd.f32 %v1651_v17, %v1633_v36  ;;  %v1738_v48 = vrot.slane %v1686_v25, 1  ;;  %v1740_v53 = vrot.slane %v1687_v29, 1  ;;  %v300_v29 = vld [vmem:[%s3868_s6 + $0x3c] sm:$0xff]  }
  0x89   : > { %v1807_v1 = vmul.f32 %v4181_v39, %v3940_v50  ;;  %v1857_v5 = vrot.slane %v1805_v45, 2  ;;  %v1858_v12 = vrot.slane %v1806_v26, 2  ;;  %v2323_v58 = vpack.c.bf16 %v2309_v47, %v2308_v34 }
  0x8a   : > { %v1739_v51 = vsel %vm411_vm0, %v1737_v35, %v1738_v48  ;;  %v1925_v23 = vmul.f32 %v4326_v63, %v3947_v54  ;;  %v1926_v59 = vmul.f32 %v4331_v44, %v3947_v54  ;;  %v1741_v7 = vsel %vm411_vm0, %v1738_v48, %v1740_v53 }
  0x8b   : > { %v1787_v24 = vadd.f32 %v1739_v51, %v1666_v27  ;;  %v1859_v60 = vsel %vm536_vm1, %v1857_v5, %v1858_v12  ;;  %v1860_v61 = vrot.slane %v1807_v1, 2  ;;  %3457 = vmatmul.mubr.bf16.vlgmr.msra.gmra.mrb[0].mxu1 %v2323_v58  ;;  %v1788_v62 = vadd.f32 %v1741_v7, %v1667_v31  ;;  %v302_v31 = vld [vmem:[%s3868_s6 + $0x44] sm:$0x1] }
  0x8c   : > { %v1960_v32 = vmul.f32 %v4326_v63, %v3951_v55  ;;  %v1961_v0 = vmul.f32 %v4331_v44, %v3951_v55  ;;  %v1962_v2 = vmul.f32 %v4337_v4, %v3951_v55  ;;  %v2080_v42 = vmul.f32 %v4326_v63, %v3994_v41 }
  0x8d   : > { %v1861_v3 = vsel %vm536_vm1, %v1858_v12, %v1860_v61  ;;  %v1907_v6 = vadd.f32 %v1859_v60, %v1787_v24  ;;  %v2081_v37 = vmul.f32 %v4331_v44, %v3994_v41  ;;  %v2082_v36 = vmul.f32 %v4337_v4, %v3994_v41 }
  0x8e   : > { %v3554_v10 = vpop.eup %3553  ;;  %v1908_v11 = vadd.f32 %v1861_v3, %v1788_v62  ;;  %v2012_v16 = vrot.slane %v1960_v32, 1  ;;  %v2013_v18 = vrot.slane %v1961_v0, 1  ;;  %v2015_v17 = vrot.slane %v1962_v2, 1 }
  0x8f   : > { %v3556_v19 = vpop.eup %3555  ;;  %v1257_v30 = vadd.f32 1.0, %v3554_v10  ;;  %v1941_v33 = vadd.f32 %v1925_v23, %v1907_v6  ;;  %v2132_v25 = vrot.slane %v2080_v42, 2  ;;  %v2133_v47 = vrot.slane %v2081_v37, 2 }
  0x90   : > { %v1258_v43 = vadd.f32 1.0, %v3556_v19  ;;  %v1942_v34 = vadd.f32 %v1926_v59, %v1908_v11  ;;  %v2014_v35 = vsel %vm411_vm0, %v2012_v16, %v2013_v18  ;;  %v2016_v45 = vsel %vm411_vm0, %v2013_v18, %v2015_v17 }
  0x91   : > { %3557 = vrcp.f32 %v1257_v30  ;;  %v2062_v26 = vadd.f32 %v2014_v35, %v1941_v33  ;;  %v2135_v27 = vrot.slane %v2082_v36, 2  ;;  %v4405_v53 = vunpack.c.l.bf16 %v300_v29 }
  0x92   : > { %3559 = vrcp.f32 %v1258_v43  ;;  %v2063_v48 = vadd.f32 %v2016_v45, %v1942_v34  ;;  %v4407_v1 = vunpack.c.h.bf16 %v300_v29  ;;  %v2134_v5 = vsel %vm536_vm1, %v2132_v25, %v2133_v47 }
  0x93   : > { %v2136_v12 = vsel %vm536_vm1, %v2133_v47, %v2135_v27  ;;  %v341_v58 = vmul.f32 %v3886_v13, %v4090_v52  ;;  %v342_v51 = vmul.f32 %v3886_v13, %v4096_v9  ;;  %v2182_v23 = vadd.f32 %v2134_v5, %v2062_v26 }
  0x94   : > { %v2183_v59 = vadd.f32 %v2136_v12, %v2063_v48  ;;  %v4415_v7 = vunpack.c.l.bf16 %v302_v31  ;;  %v372_v24 = vmul.f32 %v3889_v14, %v4090_v52  ;;  %v373_v60 = vmul.f32 %v3889_v14, %v4096_v9 }
  0x95   : > { %v374_v61 = vmul.f32 %v3889_v14, %v4103_v20  ;;  %v497_v62 = vmul.f32 %v3892_v15, %v4090_v52  ;;  %v498_v32 = vmul.f32 %v3892_v15, %v4096_v9  ;;  %v4428_v0 = vadd.f32 %v4021_v8, %v2182_v23 }
  0x96   : > { %v4431_v2 = vadd.f32 %v4021_v8, %v2183_v59  ;;  %v427_v3 = vrot.slane %v372_v24, 1  ;;  %v499_v6 = vmul.f32 %v3892_v15, %v4103_v20  ;;  %v428_v42 = vrot.slane %v373_v60, 1 }
  0x97   : > { %v430_v37 = vrot.slane %v374_v61, 1  ;;  %v552_v10 = vrot.slane %v497_v62, 2  ;;  %v553_v11 = vrot.slane %v498_v32, 2  ;;  %v3136_v16 = vmul.f32 -1.442695, %v4428_v0 }
  0x98   : > { %v3137_v52 = vmul.f32 -1.442695, %v4431_v2  ;;  %v555_v18 = vrot.slane %v499_v6, 2  ;;  %v621_v9 = vmul.f32 %v4249_v38, %v3898_v22  ;;  %v429_v17 = vsel %vm411_vm0, %v427_v3, %v428_v42 }
  0x99   : > { %v431_v8 = vsel %vm411_vm0, %v428_v42, %v430_v37  ;;  %v554_v19 = vsel %vm536_vm1, %v552_v10, %v553_v11  ;;  %v622_v20 = vmul.f32 %v4251_v40, %v3898_v22  ;;  %3561 = vpow2.f32 %v3136_v16 }
  0x9a   : > { %v474_v30 = vadd.f32 %v429_v17, %v341_v58  ;;  %v475_v33 = vadd.f32 %v431_v8, %v342_v51  ;;  %v556_v36 = vsel %vm536_vm1, %v553_v11, %v555_v18  ;;  %3563 = vpow2.f32 %v3137_v52 }
  0x9b   : > { %v3558_v25 = vpop.eup %3557  ;;  %v661_v29 = vmul.f32 %v4249_v38, %v3937_v49  ;;  %v662_v43 = vmul.f32 %v4251_v40, %v3937_v49  ;;  %v663_v34 = vmul.f32 %v3937_v49, %v4259_v46  ;;  %v785_v27 = vmul.f32 %v4249_v38, %v3940_v50 }
  0x9c   : > { %v3560_v35 = vpop.eup %3559  ;;  %v1305_v45 = vmul.f32 %v3558_v25, %v4346_v56  ;;  %v599_v26 = vadd.f32 %v554_v19, %v474_v30  ;;  %v600_v47 = vadd.f32 %v556_v36, %v475_v33  ;;  %v786_v23 = vmul.f32 %v4251_v40, %v3940_v50 }
  0x9d   : > { %v1306_v31 = vmul.f32 %v3560_v35, %v4349_v57  ;;  %v715_v48 = vrot.slane %v661_v29, 1  ;;  %v716_v5 = vrot.slane %v662_v43, 1  ;;  %v718_v12 = vrot.slane %v663_v34, 1  ;;  %v3117_v29 = vld [vmem:[%s3868_s6 + $0x9c] sm:$0xff]  }
  0x9e   : > { %v637_v58 = vadd.f32 %v621_v9, %v599_v26  ;;  %v638_v51 = vadd.f32 %v622_v20, %v600_v47  ;;  %v787_v59 = vmul.f32 %v3940_v50, %v4259_v46  ;;  %v839_v61 = vrot.slane %v785_v27, 2 }
  0x9f   : > { %v1319_v24 = vpack.c.bf16 %v1306_v31, %v1305_v45  ;;  %v717_v56 = vsel %vm411_vm0, %v715_v48, %v716_v5  ;;  %v719_v60 = vsel %vm411_vm0, %v716_v5, %v718_v12  ;;  %v840_v57 = vrot.slane %v786_v23, 2 }
  0xa0   : > { %v762_v62 = vadd.f32 %v717_v56, %v637_v58  ;;  %v763_v32 = vadd.f32 %v719_v60, %v638_v51  ;;  %v842_v3 = vrot.slane %v787_v59, 2  ;;  %v908_v6 = vmul.f32 %v3947_v54, %v4405_v53  ;;  %v3119_v58 = vld [vmem:[%s3868_s6 + $0xa4] sm:$0x1] }
  0xa1   : > { %3444 = vmatprep.mubr.bf16.mxu0 %v1319_v24  ;;  %v909_v42 = vmul.f32 %v3947_v54, %v4407_v1  ;;  %v948_v37 = vmul.f32 %v3951_v55, %v4405_v53  ;;  %v949_v10 = vmul.f32 %v3951_v55, %v4407_v1  ;;  %v841_v11 = vsel %vm536_vm1, %v839_v61, %v840_v57 }
  0xa2   : > { %v843_v16 = vsel %vm536_vm1, %v840_v57, %v842_v3  ;;  %v950_v52 = vmul.f32 %v3951_v55, %v4415_v7  ;;  %v1072_v18 = vmul.f32 %v3994_v41, %v4405_v53  ;;  %v886_v9 = vadd.f32 %v841_v11, %v762_v62 }
  0xa3   : > { %v887_v17 = vadd.f32 %v843_v16, %v763_v32  ;;  %v1002_v8 = vrot.slane %v948_v37, 1  ;;  %v1003_v19 = vrot.slane %v949_v10, 1  ;;  %v3562_v20 = vpop.eup %3561  ;;  %v1073_v33 = vmul.f32 %v3994_v41, %v4407_v1 }
  0xa4   : > { %v1005_v30 = vrot.slane %v950_v52, 1  ;;  %v1074_v36 = vmul.f32 %v3994_v41, %v4415_v7  ;;  %v1126_v25 = vrot.slane %v1072_v18, 2  ;;  %v3564_v43 = vpop.eup %3563  ;;  %v2262_v34 = vadd.f32 1.0, %v3562_v20 }
  0xa5   : > { %v924_v35 = vadd.f32 %v908_v6, %v886_v9  ;;  %v925_v45 = vadd.f32 %v909_v42, %v887_v17  ;;  %v1004_v26 = vsel %vm411_vm0, %v1002_v8, %v1003_v19  ;;  %v2263_v47 = vadd.f32 1.0, %v3564_v43  ;;  %v4504_v42 = vld [vmem:[%s5285_s2] ss:$0 sm:$0xff] }
  0xa6   : > { %v1006_v27 = vsel %vm411_vm0, %v1003_v19, %v1005_v30  ;;  %v1127_v31 = vrot.slane %v1073_v33, 2  ;;  %v1129_v48 = vrot.slane %v1074_v36, 2  ;;  %3565 = vrcp.f32 %v2262_v34 }
  0xa7   : > { %v1049_v5 = vadd.f32 %v1004_v26, %v924_v35  ;;  %v1050_v12 = vadd.f32 %v1006_v27, %v925_v45  ;;  %v4483_v51 = vunpack.c.l.bf16 %v3117_v29  ;;  %3567 = vrcp.f32 %v2263_v47 }
  0xa8   : > { %v1128_v23 = vsel %vm536_vm1, %v1126_v25, %v1127_v31  ;;  %v1130_v59 = vsel %vm536_vm1, %v1127_v31, %v1129_v48  ;;  %v4487_v24 = vunpack.c.h.bf16 %v3117_v29  ;;  %v1386_v61 = vmul.f32 %v4172_v21, %v3886_v13 }
  0xa9   : > { %v1173_v56 = vadd.f32 %v1128_v23, %v1049_v5  ;;  %v1174_v60 = vadd.f32 %v1130_v59, %v1050_v12  ;;  %v1387_v62 = vmul.f32 %v4174_v28, %v3886_v13  ;;  %v4493_v32 = vunpack.c.l.bf16 %v3119_v58 }
  0xaa   : > { %v1413_v57 = vmul.f32 %v4172_v21, %v3889_v14  ;;  %v1414_v3 = vmul.f32 %v4174_v28, %v3889_v14  ;;  %v1415_v6 = vmul.f32 %v4181_v39, %v3889_v14  ;;  %v1533_v11 = vmul.f32 %v4172_v21, %v3892_v15 }
  0xab   : > { %v4507_v37 = vadd.f32 %v4504_v42, %v1173_v56  ;;  %v4510_v10 = vadd.f32 %v4504_v42, %v1174_v60  ;;  %v1534_v16 = vmul.f32 %v4174_v28, %v3892_v15  ;;  %v1535_v17 = vmul.f32 %v4181_v39, %v3892_v15 }
  0xac   : > { %v1467_v52 = vrot.slane %v1413_v57, 1  ;;  %v1468_v18 = vrot.slane %v1414_v3, 1  ;;  %v1470_v9 = vrot.slane %v1415_v6, 1  ;;  %v1587_v20 = vrot.slane %v1533_v11, 2 }
  0xad   : > { %v3092_v8 = vmul.f32 -1.442695, %v4507_v37  ;;  %v3093_v19 = vmul.f32 -1.442695, %v4510_v10  ;;  %v1588_v30 = vrot.slane %v1534_v16, 2  ;;  %v1590_v21 = vrot.slane %v1535_v17, 2 }
  0xae   : > { %v1469_v33 = vsel %vm411_vm0, %v1467_v52, %v1468_v18  ;;  %v1471_v36 = vsel %vm411_vm0, %v1468_v18, %v1470_v9  ;;  %v1652_v28 = vmul.f32 %v4326_v63, %v3898_v22  ;;  %v1653_v34 = vmul.f32 %v4331_v44, %v3898_v22 }
  0xaf   : > { %3569 = vpow2.f32 %v3092_v8  ;;  %v1514_v25 = vadd.f32 %v1469_v33, %v1386_v61  ;;  %v1515_v29 = vadd.f32 %v1471_v36, %v1387_v62  ;;  %v1589_v43 = vsel %vm536_vm1, %v1587_v20, %v1588_v30 }
  0xb0   : > { %3571 = vpow2.f32 %v3093_v19  ;;  %v1591_v39 = vsel %vm536_vm1, %v1588_v30, %v1590_v21  ;;  %v1688_v35 = vmul.f32 %v4326_v63, %v3937_v49  ;;  %v3566_v45 = vpop.eup %3565  ;;  %v1689_v27 = vmul.f32 %v4331_v44, %v3937_v49 }
  0xb1   : > { %v1634_v26 = vadd.f32 %v1589_v43, %v1514_v25  ;;  %v1635_v47 = vadd.f32 %v1591_v39, %v1515_v29  ;;  %v1690_v31 = vmul.f32 %v4337_v4, %v3937_v49  ;;  %v3568_v48 = vpop.eup %3567  ;;  %v2310_v5 = vmul.f32 %v3566_v45, %v4428_v0 }
  0xb2   : > { %v1742_v12 = vrot.slane %v1688_v35, 1  ;;  %v1808_v58 = vmul.f32 %v4326_v63, %v3940_v50  ;;  %v1809_v23 = vmul.f32 %v4331_v44, %v3940_v50  ;;  %v2311_v59 = vmul.f32 %v3568_v48, %v4431_v2 }
  0xb3   : > { %v1668_v56 = vadd.f32 %v1652_v28, %v1634_v26  ;;  %v1669_v60 = vadd.f32 %v1653_v34, %v1635_v47  ;;  %v1743_v61 = vrot.slane %v1689_v27, 1  ;;  %v1745_v62 = vrot.slane %v1690_v31, 1  ;;  %v3378_v31 = vld [vmem:[%s3868_s6 + $0x48] sm:$0xff]  }
  0xb4   : > { %v1810_v57 = vmul.f32 %v4337_v4, %v3940_v50  ;;  %v1862_v3 = vrot.slane %v1808_v58, 2  ;;  %v1863_v6 = vrot.slane %v1809_v23, 2  ;;  %v2324_v11 = vpack.c.bf16 %v2311_v59, %v2310_v5 }
  0xb5   : > { %v1744_v0 = vsel %vm411_vm0, %v1742_v12, %v1743_v61  ;;  %v1927_v16 = vmul.f32 %v4483_v51, %v3947_v54  ;;  %v1928_v52 = vmul.f32 %v4487_v24, %v3947_v54  ;;  %v1746_v2 = vsel %vm411_vm0, %v1743_v61, %v1745_v62 }
  0xb6   : > { %v1789_v18 = vadd.f32 %v1744_v0, %v1668_v56  ;;  %v1864_v9 = vsel %vm536_vm1, %v1862_v3, %v1863_v6  ;;  %v1865_v17 = vrot.slane %v1810_v57, 2  ;;  %3460 = vmatprep.mubr.bf16.mxu1 %v2324_v11  ;;  %v1790_v8 = vadd.f32 %v1746_v2, %v1669_v60  ;;  %v305_v60 = vld [vmem:[%s3868_s6 + $0x50] sm:$0x1] }
  0xb7   : > { %v1963_v19 = vmul.f32 %v4483_v51, %v3951_v55  ;;  %v1964_v20 = vmul.f32 %v4487_v24, %v3951_v55  ;;  %v1965_v30 = vmul.f32 %v4493_v32, %v3951_v55  ;;  %v2083_v21 = vmul.f32 %v4483_v51, %v3994_v41 }
  0xb8   : > { %v1866_v33 = vsel %vm536_vm1, %v1863_v6, %v1865_v17  ;;  %v1909_v36 = vadd.f32 %v1864_v9, %v1789_v18  ;;  %v2084_v28 = vmul.f32 %v4487_v24, %v3994_v41  ;;  %v2085_v47 = vmul.f32 %v4493_v32, %v3994_v41 }
  0xb9   : > { %v3570_v25 = vpop.eup %3569  ;;  %v1910_v29 = vadd.f32 %v1866_v33, %v1790_v8  ;;  %v2017_v43 = vrot.slane %v1963_v19, 1  ;;  %v2018_v39 = vrot.slane %v1964_v20, 1  ;;  %v2020_v34 = vrot.slane %v1965_v30, 1 }
  0xba   : > { %v3572_v35 = vpop.eup %3571  ;;  %v1259_v45 = vadd.f32 1.0, %v3570_v25  ;;  %v1943_v26 = vadd.f32 %v1927_v16, %v1909_v36  ;;  %v2137_v27 = vrot.slane %v2083_v21, 2  ;;  %v2138_v59 = vrot.slane %v2084_v28, 2 }
  0xbb   : > { %v1260_v48 = vadd.f32 1.0, %v3572_v35  ;;  %v1944_v5 = vadd.f32 %v1928_v52, %v1910_v29  ;;  %v2019_v12 = vsel %vm411_vm0, %v2017_v43, %v2018_v39  ;;  %v2021_v58 = vsel %vm411_vm0, %v2018_v39, %v2020_v34 }
  0xbc   : > { %3573 = vrcp.f32 %v1259_v45  ;;  %v2064_v23 = vadd.f32 %v2019_v12, %v1943_v26  ;;  %v2140_v56 = vrot.slane %v2085_v47, 2  ;;  %v4566_v62 = vunpack.c.l.bf16 %v3378_v31 }
  0xbd   : > { %3575 = vrcp.f32 %v1260_v48  ;;  %v2065_v61 = vadd.f32 %v2021_v58, %v1944_v5  ;;  %v4568_v57 = vunpack.c.h.bf16 %v3378_v31  ;;  %v2139_v3 = vsel %vm536_vm1, %v2137_v27, %v2138_v59 }
  0xbe   : > { %v2141_v6 = vsel %vm536_vm1, %v2138_v59, %v2140_v56  ;;  %v343_v11 = vmul.f32 %v4249_v38, %v3886_v13  ;;  %v344_v0 = vmul.f32 %v4251_v40, %v3886_v13  ;;  %v2184_v16 = vadd.f32 %v2139_v3, %v2064_v23 }
  0xbf   : > { %v2185_v52 = vadd.f32 %v2141_v6, %v2065_v61  ;;  %v4576_v2 = vunpack.c.l.bf16 %v305_v60  ;;  %v375_v18 = vmul.f32 %v4249_v38, %v3889_v14  ;;  %v376_v9 = vmul.f32 %v4251_v40, %v3889_v14 }
  0xc0   : > { %v377_v17 = vmul.f32 %v3889_v14, %v4259_v46  ;;  %v500_v8 = vmul.f32 %v4249_v38, %v3892_v15  ;;  %v501_v19 = vmul.f32 %v4251_v40, %v3892_v15  ;;  %v4589_v20 = vadd.f32 %v4504_v42, %v2184_v16 }
  0xc1   : > { %v4592_v30 = vadd.f32 %v4504_v42, %v2185_v52  ;;  %v432_v33 = vrot.slane %v375_v18, 1  ;;  %v502_v36 = vmul.f32 %v3892_v15, %v4259_v46  ;;  %v433_v21 = vrot.slane %v376_v9, 1 }
  0xc2   : > { %v435_v28 = vrot.slane %v377_v17, 1  ;;  %v557_v25 = vrot.slane %v500_v8, 2  ;;  %v558_v29 = vrot.slane %v501_v19, 2  ;;  %v3138_v43 = vmul.f32 -1.442695, %v4589_v20 }
  0xc3   : > { %v3139_v38 = vmul.f32 -1.442695, %v4592_v30  ;;  %v560_v39 = vrot.slane %v502_v36, 2  ;;  %v623_v40 = vmul.f32 %v3898_v22, %v4405_v53  ;;  %v434_v34 = vsel %vm411_vm0, %v432_v33, %v433_v21 }
  0xc4   : > { %v436_v35 = vsel %vm411_vm0, %v433_v21, %v435_v28  ;;  %v559_v45 = vsel %vm536_vm1, %v557_v25, %v558_v29  ;;  %v624_v46 = vmul.f32 %v3898_v22, %v4407_v1  ;;  %3577 = vpow2.f32 %v3138_v43 }
  0xc5   : > { %v476_v26 = vadd.f32 %v434_v34, %v343_v11  ;;  %v477_v47 = vadd.f32 %v436_v35, %v344_v0  ;;  %v561_v27 = vsel %vm536_vm1, %v558_v29, %v560_v39  ;;  %3579 = vpow2.f32 %v3139_v38 }
  0xc6   : > { %v3574_v31 = vpop.eup %3573  ;;  %v664_v48 = vmul.f32 %v3937_v49, %v4405_v53  ;;  %v665_v5 = vmul.f32 %v3937_v49, %v4407_v1  ;;  %v666_v12 = vmul.f32 %v3937_v49, %v4415_v7  ;;  %v788_v60 = vmul.f32 %v3940_v50, %v4405_v53 }
  0xc7   : > { %v3576_v58 = vpop.eup %3575  ;;  %v1307_v23 = vmul.f32 %v3574_v31, %v4507_v37  ;;  %v601_v59 = vadd.f32 %v559_v45, %v476_v26  ;;  %v602_v56 = vadd.f32 %v561_v27, %v477_v47  ;;  %v789_v52 = vmul.f32 %v3940_v50, %v4407_v1 }
  0xc8   : > { %v1308_v61 = vmul.f32 %v3576_v58, %v4510_v10  ;;  %v720_v3 = vrot.slane %v664_v48, 1  ;;  %v721_v6 = vrot.slane %v665_v5, 1  ;;  %v723_v11 = vrot.slane %v666_v12, 1  ;;  %v3383_v5 = vld [vmem:[%s3868_s6 + $0xa8] sm:$0xff]  }
  0xc9   : > { %v639_v0 = vadd.f32 %v623_v40, %v601_v59  ;;  %v640_v16 = vadd.f32 %v624_v46, %v602_v56  ;;  %v790_v18 = vmul.f32 %v3940_v50, %v4415_v7  ;;  %v844_v8 = vrot.slane %v788_v60, 2 }
  0xca   : > { %v1320_v9 = vpack.c.bf16 %v1308_v61, %v1307_v23  ;;  %v722_v37 = vsel %vm411_vm0, %v720_v3, %v721_v6  ;;  %v724_v17 = vsel %vm411_vm0, %v721_v6, %v723_v11  ;;  %v845_v10 = vrot.slane %v789_v52, 2  ;;  %v3122_v52 = vld [vmem:[%s3868_s6 + $0xb0] sm:$0x1] }
  0xcb   : > { %v764_v19 = vadd.f32 %v722_v37, %v639_v0  ;;  %v765_v33 = vadd.f32 %v724_v17, %v640_v16  ;;  %v847_v36 = vrot.slane %v790_v18, 2  ;;  %v910_v21 = vmul.f32 %v4566_v62, %v3947_v54 }
  0xcc   : > { %3445 = vmatmul.mubr.bf16.gmra.mrb[4].mxu0 %v1320_v9  ;;  %v911_v28 = vmul.f32 %v4568_v57, %v3947_v54  ;;  %v951_v25 = vmul.f32 %v4566_v62, %v3951_v55  ;;  %v952_v29 = vmul.f32 %v4568_v57, %v3951_v55  ;;  %v846_v43 = vsel %vm536_vm1, %v844_v8, %v845_v10 }
  0xcd   : > { %v848_v38 = vsel %vm536_vm1, %v845_v10, %v847_v36  ;;  %v953_v39 = vmul.f32 %v3951_v55, %v4576_v2  ;;  %v1075_v40 = vmul.f32 %v4566_v62, %v3994_v41  ;;  %v888_v34 = vadd.f32 %v846_v43, %v764_v19 }
  0xce   : > { %v889_v35 = vadd.f32 %v848_v38, %v765_v33  ;;  %v1007_v45 = vrot.slane %v951_v25, 1  ;;  %v1008_v46 = vrot.slane %v952_v29, 1  ;;  %v3578_v26 = vpop.eup %3577  ;;  %v1076_v27 = vmul.f32 %v4568_v57, %v3994_v41 }
  0xcf   : > { %v1010_v47 = vrot.slane %v953_v39, 1  ;;  %v1077_v31 = vmul.f32 %v3994_v41, %v4576_v2  ;;  %v1131_v48 = vrot.slane %v1075_v40, 2  ;;  %v3580_v12 = vpop.eup %3579  ;;  %v2264_v58 = vadd.f32 1.0, %v3578_v26 }
  0xd0   : > { %v926_v23 = vadd.f32 %v910_v21, %v888_v34  ;;  %v927_v59 = vadd.f32 %v911_v28, %v889_v35  ;;  %v1009_v56 = vsel %vm411_vm0, %v1007_v45, %v1008_v46  ;;  %v2265_v60 = vadd.f32 1.0, %v3580_v12 }
  0xd1   : > { %v1011_v61 = vsel %vm411_vm0, %v1008_v46, %v1010_v47  ;;  %v1132_v3 = vrot.slane %v1076_v27, 2  ;;  %v1134_v6 = vrot.slane %v1077_v31, 2  ;;  %3581 = vrcp.f32 %v2264_v58 }
  0xd2   : > { %v1051_v11 = vadd.f32 %v1009_v56, %v926_v23  ;;  %v1052_v0 = vadd.f32 %v1011_v61, %v927_v59  ;;  %v4643_v16 = vunpack.c.l.bf16 %v3383_v5  ;;  %3583 = vrcp.f32 %v2265_v60 }
  0xd3   : > { %v1133_v18 = vsel %vm536_vm1, %v1131_v48, %v1132_v3  ;;  %v1135_v9 = vsel %vm536_vm1, %v1132_v3, %v1134_v6  ;;  %v4648_v37 = vunpack.c.h.bf16 %v3383_v5  ;;  %v1388_v19 = vmul.f32 %v4326_v63, %v3886_v13 }
  0xd4   : > { %v1175_v17 = vadd.f32 %v1133_v18, %v1051_v11  ;;  %v1176_v8 = vadd.f32 %v1135_v9, %v1052_v0  ;;  %v1389_v33 = vmul.f32 %v4331_v44, %v3886_v13  ;;  %v4654_v10 = vunpack.c.l.bf16 %v3122_v52 }
  0xd5   : > { %v1416_v36 = vmul.f32 %v4326_v63, %v3889_v14  ;;  %v1417_v21 = vmul.f32 %v4331_v44, %v3889_v14  ;;  %v1418_v28 = vmul.f32 %v4337_v4, %v3889_v14  ;;  %v1536_v43 = vmul.f32 %v4326_v63, %v3892_v15 }
  0xd6   : > { %v4663_v25 = vadd.f32 %v4504_v42, %v1175_v17  ;;  %v4666_v29 = vadd.f32 %v4504_v42, %v1176_v8  ;;  %v1537_v38 = vmul.f32 %v4331_v44, %v3892_v15  ;;  %v1538_v35 = vmul.f32 %v4337_v4, %v3892_v15 }
  0xd7   : > { %v1472_v39 = vrot.slane %v1416_v36, 1  ;;  %v1473_v40 = vrot.slane %v1417_v21, 1  ;;  %v1475_v34 = vrot.slane %v1418_v28, 1  ;;  %v1592_v26 = vrot.slane %v1536_v43, 2 }
  0xd8   : > { %v3094_v45 = vmul.f32 -1.442695, %v4663_v25  ;;  %v3095_v46 = vmul.f32 -1.442695, %v4666_v29  ;;  %v1593_v47 = vrot.slane %v1537_v38, 2  ;;  %v1595_v63 = vrot.slane %v1538_v35, 2 }
  0xd9   : > { %v1474_v27 = vsel %vm411_vm0, %v1472_v39, %v1473_v40  ;;  %v1476_v31 = vsel %vm411_vm0, %v1473_v40, %v1475_v34  ;;  %v1654_v44 = vmul.f32 %v4483_v51, %v3898_v22  ;;  %v1655_v58 = vmul.f32 %v4487_v24, %v3898_v22 }
  0xda   : > { %3585 = vpow2.f32 %v3094_v45  ;;  %v1516_v48 = vadd.f32 %v1474_v27, %v1388_v19  ;;  %v1517_v5 = vadd.f32 %v1476_v31, %v1389_v33  ;;  %v1594_v12 = vsel %vm536_vm1, %v1592_v26, %v1593_v47 }
  0xdb   : > { %3587 = vpow2.f32 %v3095_v46  ;;  %v1596_v4 = vsel %vm536_vm1, %v1593_v47, %v1595_v63  ;;  %v1691_v23 = vmul.f32 %v4483_v51, %v3937_v49  ;;  %v3582_v59 = vpop.eup %3581  ;;  %v1692_v61 = vmul.f32 %v4487_v24, %v3937_v49 }
  0xdc   : > { %v1636_v56 = vadd.f32 %v1594_v12, %v1516_v48  ;;  %v1637_v60 = vadd.f32 %v1596_v4, %v1517_v5  ;;  %v1693_v3 = vmul.f32 %v4493_v32, %v3937_v49  ;;  %v3584_v6 = vpop.eup %3583  ;;  %v2312_v11 = vmul.f32 %v3582_v59, %v4589_v20 }
  0xdd   : > { %v1747_v0 = vrot.slane %v1691_v23, 1  ;;  %v1811_v52 = vmul.f32 %v4483_v51, %v3940_v50  ;;  %v1812_v18 = vmul.f32 %v4487_v24, %v3940_v50  ;;  %v2313_v9 = vmul.f32 %v3584_v6, %v4592_v30 }
  0xde   : > { %v1670_v17 = vadd.f32 %v1654_v44, %v1636_v56  ;;  %v1671_v8 = vadd.f32 %v1655_v58, %v1637_v60  ;;  %v1748_v19 = vrot.slane %v1692_v61, 1  ;;  %v1750_v33 = vrot.slane %v1693_v3, 1  ;;  %v306_v3 = vld [vmem:[%s3868_s6 + $0x54] sm:$0xff]  }
  0xdf   : > { %v1813_v36 = vmul.f32 %v4493_v32, %v3940_v50  ;;  %v1867_v21 = vrot.slane %v1811_v52, 2  ;;  %v1868_v28 = vrot.slane %v1812_v18, 2  ;;  %v2325_v43 = vpack.c.bf16 %v2313_v9, %v2312_v11 }
  0xe0   : > { %v1749_v20 = vsel %vm411_vm0, %v1747_v0, %v1748_v19  ;;  %v1929_v38 = vmul.f32 %v4643_v16, %v3947_v54  ;;  %v1930_v39 = vmul.f32 %v4648_v37, %v3947_v54  ;;  %v1751_v30 = vsel %vm411_vm0, %v1748_v19, %v1750_v33 }
  0xe1   : > { %v1791_v40 = vadd.f32 %v1749_v20, %v1670_v17  ;;  %v1869_v34 = vsel %vm536_vm1, %v1867_v21, %v1868_v28  ;;  %v1870_v35 = vrot.slane %v1813_v36, 2  ;;  %3461 = vmatmul.mubr.bf16.gmra.mrb[4].mxu1 %v2325_v43  ;;  %v1792_v45 = vadd.f32 %v1751_v30, %v1671_v8  ;;  %v308_v8 = vld [vmem:[%s3868_s6 + $0x5c] sm:$0x1] }
  0xe2   : > { %v1966_v46 = vmul.f32 %v4643_v16, %v3951_v55  ;;  %v1967_v26 = vmul.f32 %v4648_v37, %v3951_v55  ;;  %v1968_v47 = vmul.f32 %v4654_v10, %v3951_v55  ;;  %v2086_v63 = vmul.f32 %v4643_v16, %v3994_v41 }
  0xe3   : > { %v1871_v27 = vsel %vm536_vm1, %v1868_v28, %v1870_v35  ;;  %v1911_v31 = vadd.f32 %v1869_v34, %v1791_v40  ;;  %v2087_v44 = vmul.f32 %v4648_v37, %v3994_v41  ;;  %v2088_v60 = vmul.f32 %v4654_v10, %v3994_v41 }
  0xe4   : > { %v3586_v48 = vpop.eup %3585  ;;  %v1912_v5 = vadd.f32 %v1871_v27, %v1792_v45  ;;  %v2022_v12 = vrot.slane %v1966_v46, 1  ;;  %v2023_v4 = vrot.slane %v1967_v26, 1  ;;  %v2025_v58 = vrot.slane %v1968_v47, 1 }
  0xe5   : > { %v3588_v23 = vpop.eup %3587  ;;  %v1261_v59 = vadd.f32 1.0, %v3586_v48  ;;  %v1945_v56 = vadd.f32 %v1929_v38, %v1911_v31  ;;  %v2142_v61 = vrot.slane %v2086_v63, 2  ;;  %v2143_v9 = vrot.slane %v2087_v44, 2 }
  0xe6   : > { %v1262_v6 = vadd.f32 1.0, %v3588_v23  ;;  %v1946_v11 = vadd.f32 %v1930_v39, %v1912_v5  ;;  %v2024_v0 = vsel %vm411_vm0, %v2022_v12, %v2023_v4  ;;  %v2026_v52 = vsel %vm411_vm0, %v2023_v4, %v2025_v58 }
  0xe7   : > { %3589 = vrcp.f32 %v1261_v59  ;;  %v2066_v18 = vadd.f32 %v2024_v0, %v1945_v56  ;;  %v2145_v17 = vrot.slane %v2088_v60, 2  ;;  %v4722_v33 = vunpack.c.l.bf16 %v306_v3 }
  0xe8   : > { %3591 = vrcp.f32 %v1262_v6  ;;  %v2067_v19 = vadd.f32 %v2026_v52, %v1946_v11  ;;  %v4724_v36 = vunpack.c.h.bf16 %v306_v3  ;;  %v2144_v21 = vsel %vm536_vm1, %v2142_v61, %v2143_v9 }
  0xe9   : > { %v2146_v28 = vsel %vm536_vm1, %v2143_v9, %v2145_v17  ;;  %v345_v43 = vmul.f32 %v3886_v13, %v4405_v53  ;;  %v346_v20 = vmul.f32 %v3886_v13, %v4407_v1  ;;  %v2186_v38 = vadd.f32 %v2144_v21, %v2066_v18 }
  0xea   : > { %v2187_v39 = vadd.f32 %v2146_v28, %v2067_v19  ;;  %v4732_v30 = vunpack.c.l.bf16 %v308_v8  ;;  %v378_v40 = vmul.f32 %v3889_v14, %v4405_v53  ;;  %v379_v34 = vmul.f32 %v3889_v14, %v4407_v1 }
  0xeb   : > { %v380_v35 = vmul.f32 %v3889_v14, %v4415_v7  ;;  %v503_v45 = vmul.f32 %v3892_v15, %v4405_v53  ;;  %v504_v46 = vmul.f32 %v3892_v15, %v4407_v1  ;;  %v4745_v26 = vadd.f32 %v4504_v42, %v2186_v38 }
  0xec   : > { %v4748_v47 = vadd.f32 %v4504_v42, %v2187_v39  ;;  %v437_v27 = vrot.slane %v378_v40, 1  ;;  %v505_v31 = vmul.f32 %v3892_v15, %v4415_v7  ;;  %v438_v63 = vrot.slane %v379_v34, 1 }
  0xed   : > { %v440_v44 = vrot.slane %v380_v35, 1  ;;  %v562_v48 = vrot.slane %v503_v45, 2  ;;  %v563_v5 = vrot.slane %v504_v46, 2  ;;  %v3140_v12 = vmul.f32 -1.442695, %v4745_v26 }
  0xee   : > { %v3141_v53 = vmul.f32 -1.442695, %v4748_v47  ;;  %v565_v4 = vrot.slane %v505_v31, 2  ;;  %v625_v1 = vmul.f32 %v4566_v62, %v3898_v22  ;;  %v439_v58 = vsel %vm411_vm0, %v437_v27, %v438_v63 }
  0xef   : > { %v441_v23 = vsel %vm411_vm0, %v438_v63, %v440_v44  ;;  %v564_v59 = vsel %vm536_vm1, %v562_v48, %v563_v5  ;;  %v626_v7 = vmul.f32 %v4568_v57, %v3898_v22  ;;  %3593 = vpow2.f32 %v3140_v12 }
  0xf0   : > { %v478_v56 = vadd.f32 %v439_v58, %v345_v43  ;;  %v479_v60 = vadd.f32 %v441_v23, %v346_v20  ;;  %v566_v61 = vsel %vm536_vm1, %v563_v5, %v565_v4  ;;  %3595 = vpow2.f32 %v3141_v53 }
  0xf1   : > { %v3590_v3 = vpop.eup %3589  ;;  %v667_v6 = vmul.f32 %v4566_v62, %v3937_v49  ;;  %v668_v11 = vmul.f32 %v4568_v57, %v3937_v49  ;;  %v669_v0 = vmul.f32 %v3937_v49, %v4576_v2  ;;  %v791_v8 = vmul.f32 %v4566_v62, %v3940_v50 }
  0xf2   : > { %v3592_v52 = vpop.eup %3591  ;;  %v1309_v18 = vmul.f32 %v3590_v3, %v4663_v25  ;;  %v603_v9 = vadd.f32 %v564_v59, %v478_v56  ;;  %v604_v17 = vadd.f32 %v566_v61, %v479_v60  ;;  %v792_v39 = vmul.f32 %v4568_v57, %v3940_v50 }
  0xf3   : > { %v1310_v19 = vmul.f32 %v3592_v52, %v4666_v29  ;;  %v725_v21 = vrot.slane %v667_v6, 1  ;;  %v726_v28 = vrot.slane %v668_v11, 1  ;;  %v728_v43 = vrot.slane %v669_v0, 1  ;;  %v3123_v11 = vld [vmem:[%s3868_s6 + $0xb4] sm:$0xff]  }
  0xf4   : > { %v641_v20 = vadd.f32 %v625_v1, %v603_v9  ;;  %v642_v38 = vadd.f32 %v626_v7, %v604_v17  ;;  %v793_v40 = vmul.f32 %v3940_v50, %v4576_v2  ;;  %v849_v45 = vrot.slane %v791_v8, 2 }
  0xf5   : > { %v1321_v34 = vpack.c.bf16 %v1310_v19, %v1309_v18  ;;  %v727_v25 = vsel %vm411_vm0, %v725_v21, %v726_v28  ;;  %v729_v35 = vsel %vm411_vm0, %v726_v28, %v728_v43  ;;  %v850_v29 = vrot.slane %v792_v39, 2 }
  0xf6   : > { %v766_v46 = vadd.f32 %v727_v25, %v641_v20  ;;  %v767_v27 = vadd.f32 %v729_v35, %v642_v38  ;;  %v852_v31 = vrot.slane %v793_v40, 2  ;;  %v912_v63 = vmul.f32 %v3947_v54, %v4722_v33  ;;  %v3125_v38 = vld [vmem:[%s3868_s6 + $0xbc] sm:$0x1] }
  0xf7   : > { %3448 = vmatprep.mubr.bf16.mxu0 %v1321_v34  ;;  %v913_v44 = vmul.f32 %v3947_v54, %v4724_v36  ;;  %v954_v48 = vmul.f32 %v3951_v55, %v4722_v33  ;;  %v955_v5 = vmul.f32 %v3951_v55, %v4724_v36  ;;  %v851_v12 = vsel %vm536_vm1, %v849_v45, %v850_v29 }
  0xf8   : > { %v853_v53 = vsel %vm536_vm1, %v850_v29, %v852_v31  ;;  %v956_v4 = vmul.f32 %v3951_v55, %v4732_v30  ;;  %v1078_v1 = vmul.f32 %v3994_v41, %v4722_v33  ;;  %v890_v58 = vadd.f32 %v851_v12, %v766_v46 }
  0xf9   : > { %v891_v23 = vadd.f32 %v853_v53, %v767_v27  ;;  %v1012_v59 = vrot.slane %v954_v48, 1  ;;  %v1013_v7 = vrot.slane %v955_v5, 1  ;;  %v3594_v56 = vpop.eup %3593  ;;  %v1079_v61 = vmul.f32 %v3994_v41, %v4724_v36 }
  0xfa   : > { %v1015_v60 = vrot.slane %v956_v4, 1  ;;  %v1080_v3 = vmul.f32 %v3994_v41, %v4732_v30  ;;  %v1136_v6 = vrot.slane %v1078_v1, 2  ;;  %v3596_v0 = vpop.eup %3595  ;;  %v2266_v52 = vadd.f32 1.0, %v3594_v56 }
  0xfb   : > { %v928_v18 = vadd.f32 %v912_v63, %v890_v58  ;;  %v929_v9 = vadd.f32 %v913_v44, %v891_v23  ;;  %v1014_v17 = vsel %vm411_vm0, %v1012_v59, %v1013_v7  ;;  %v2267_v8 = vadd.f32 1.0, %v3596_v0 }
  0xfc   : > { %v1016_v19 = vsel %vm411_vm0, %v1013_v7, %v1015_v60  ;;  %v1137_v21 = vrot.slane %v1079_v61, 2  ;;  %v1139_v28 = vrot.slane %v1080_v3, 2  ;;  %3597 = vrcp.f32 %v2266_v52 }
  0xfd   : > { %v1053_v43 = vadd.f32 %v1014_v17, %v928_v18  ;;  %v1054_v20 = vadd.f32 %v1016_v19, %v929_v9  ;;  %v4800_v39 = vunpack.c.l.bf16 %v3123_v11  ;;  %3599 = vrcp.f32 %v2267_v8 }
  0xfe   : > { %v1138_v40 = vsel %vm536_vm1, %v1136_v6, %v1137_v21  ;;  %v1140_v34 = vsel %vm536_vm1, %v1137_v21, %v1139_v28  ;;  %v4804_v25 = vunpack.c.h.bf16 %v3123_v11  ;;  %v1390_v46 = vmul.f32 %v4483_v51, %v3886_v13 }
  0xff   : > { %v1177_v35 = vadd.f32 %v1138_v40, %v1053_v43  ;;  %v1178_v45 = vadd.f32 %v1140_v34, %v1054_v20  ;;  %v1391_v27 = vmul.f32 %v4487_v24, %v3886_v13  ;;  %v4810_v29 = vunpack.c.l.bf16 %v3125_v38 }
 0x100   : > { %v1419_v31 = vmul.f32 %v4483_v51, %v3889_v14  ;;  %v1420_v63 = vmul.f32 %v4487_v24, %v3889_v14  ;;  %v1421_v44 = vmul.f32 %v4493_v32, %v3889_v14  ;;  %v1539_v12 = vmul.f32 %v4483_v51, %v3892_v15 }
 0x101   : > { %v4819_v48 = vadd.f32 %v4504_v42, %v1177_v35  ;;  %v4822_v5 = vadd.f32 %v4504_v42, %v1178_v45  ;;  %v1540_v53 = vmul.f32 %v4487_v24, %v3892_v15  ;;  %v1541_v23 = vmul.f32 %v4493_v32, %v3892_v15 }
 0x102   : > { %v1477_v4 = vrot.slane %v1419_v31, 1  ;;  %v1478_v1 = vrot.slane %v1420_v63, 1  ;;  %v1480_v58 = vrot.slane %v1421_v44, 1  ;;  %v1597_v56 = vrot.slane %v1539_v12, 2 }
 0x103   : > { %v3096_v59 = vmul.f32 -1.442695, %v4819_v48  ;;  %v3097_v7 = vmul.f32 -1.442695, %v4822_v5  ;;  %v1598_v60 = vrot.slane %v1540_v53, 2  ;;  %v1600_v51 = vrot.slane %v1541_v23, 2 }
 0x104   : > { %v1479_v61 = vsel %vm411_vm0, %v1477_v4, %v1478_v1  ;;  %v1481_v3 = vsel %vm411_vm0, %v1478_v1, %v1480_v58  ;;  %v1656_v24 = vmul.f32 %v4643_v16, %v3898_v22  ;;  %v1657_v52 = vmul.f32 %v4648_v37, %v3898_v22 }
 0x105   : > { %3601 = vpow2.f32 %v3096_v59  ;;  %v1518_v6 = vadd.f32 %v1479_v61, %v1390_v46  ;;  %v1519_v11 = vadd.f32 %v1481_v3, %v1391_v27  ;;  %v1599_v0 = vsel %vm536_vm1, %v1597_v56, %v1598_v60 }
 0x106   : > { %3603 = vpow2.f32 %v3097_v7  ;;  %v1601_v32 = vsel %vm536_vm1, %v1598_v60, %v1600_v51  ;;  %v1694_v18 = vmul.f32 %v4643_v16, %v3937_v49  ;;  %v3598_v9 = vpop.eup %3597  ;;  %v1695_v19 = vmul.f32 %v4648_v37, %v3937_v49 }
 0x107   : > { %v1638_v17 = vadd.f32 %v1599_v0, %v1518_v6  ;;  %v1639_v8 = vadd.f32 %v1601_v32, %v1519_v11  ;;  %v1696_v21 = vmul.f32 %v4654_v10, %v3937_v49  ;;  %v3600_v28 = vpop.eup %3599  ;;  %v2314_v43 = vmul.f32 %v3598_v9, %v4745_v26 }
 0x108   : > { %v1752_v20 = vrot.slane %v1694_v18, 1  ;;  %v1814_v38 = vmul.f32 %v4643_v16, %v3940_v50  ;;  %v1815_v40 = vmul.f32 %v4648_v37, %v3940_v50  ;;  %v2315_v34 = vmul.f32 %v3600_v28, %v4748_v47 }
 0x109   : > { %v1672_v35 = vadd.f32 %v1656_v24, %v1638_v17  ;;  %v1673_v45 = vadd.f32 %v1657_v52, %v1639_v8  ;;  %v1753_v46 = vrot.slane %v1695_v19, 1  ;;  %v1755_v27 = vrot.slane %v1696_v21, 1  ;;  %v3379_v21 = vld [vmem:[%s3868_s6 + $0x60] sm:$0xff]  }
 0x10a   : > { %v1816_v31 = vmul.f32 %v4654_v10, %v3940_v50  ;;  %v1872_v63 = vrot.slane %v1814_v38, 2  ;;  %v1873_v44 = vrot.slane %v1815_v40, 2  ;;  %v2326_v12 = vpack.c.bf16 %v2315_v34, %v2314_v43 }
 0x10b   : > { %v1754_v26 = vsel %vm411_vm0, %v1752_v20, %v1753_v46  ;;  %v1931_v53 = vmul.f32 %v4800_v39, %v3947_v54  ;;  %v1932_v4 = vmul.f32 %v4804_v25, %v3947_v54  ;;  %v1756_v47 = vsel %vm411_vm0, %v1753_v46, %v1755_v27 }
 0x10c   : > { %v1793_v1 = vadd.f32 %v1754_v26, %v1672_v35  ;;  %v1874_v58 = vsel %vm536_vm1, %v1872_v63, %v1873_v44  ;;  %v1875_v23 = vrot.slane %v1816_v31, 2  ;;  %3464 = vmatprep.mubr.bf16.mxu1 %v2326_v12  ;;  %v1794_v59 = vadd.f32 %v1756_v47, %v1673_v45 }
 0x10d   : > { %v1969_v7 = vmul.f32 %v4800_v39, %v3951_v55  ;;  %v1970_v56 = vmul.f32 %v4804_v25, %v3951_v55  ;;  %v1971_v60 = vmul.f32 %v4810_v29, %v3951_v55  ;;  %v2089_v51 = vmul.f32 %v4800_v39, %v3994_v41 }
 0x10e   : > { %v1876_v61 = vsel %vm536_vm1, %v1873_v44, %v1875_v23  ;;  %v1913_v3 = vadd.f32 %v1874_v58, %v1793_v1  ;;  %v2090_v24 = vmul.f32 %v4804_v25, %v3994_v41  ;;  %v2091_v8 = vmul.f32 %v4810_v29, %v3994_v41 }
 0x10f   : > { %v3602_v6 = vpop.eup %3601  ;;  %v1914_v11 = vadd.f32 %v1876_v61, %v1794_v59  ;;  %v2027_v0 = vrot.slane %v1969_v7, 1  ;;  %v2028_v32 = vrot.slane %v1970_v56, 1  ;;  %v2030_v52 = vrot.slane %v1971_v60, 1 }
 0x110   : > { %v3604_v18 = vpop.eup %3603  ;;  %v1263_v9 = vadd.f32 1.0, %v3602_v6  ;;  %v1947_v17 = vadd.f32 %v1931_v53, %v1913_v3  ;;  %v2147_v19 = vrot.slane %v2089_v51, 2  ;;  %v2148_v34 = vrot.slane %v2090_v24, 2  ;;  %v311_v3 = vld [vmem:[%s3868_s6 + $0x68] sm:$0x1] }
 0x111   : > { %v1264_v28 = vadd.f32 1.0, %v3604_v18  ;;  %v1948_v43 = vadd.f32 %v1932_v4, %v1914_v11  ;;  %v2029_v20 = vsel %vm411_vm0, %v2027_v0, %v2028_v32  ;;  %v2031_v38 = vsel %vm411_vm0, %v2028_v32, %v2030_v52 }
 0x112   : > { %3605 = vrcp.f32 %v1263_v9  ;;  %v2068_v40 = vadd.f32 %v2029_v20, %v1947_v17  ;;  %v2150_v35 = vrot.slane %v2091_v8, 2  ;;  %v4877_v46 = vunpack.c.l.bf16 %v3379_v21 }
 0x113   : > { %3607 = vrcp.f32 %v1264_v28  ;;  %v2069_v45 = vadd.f32 %v2031_v38, %v1948_v43  ;;  %v4879_v27 = vunpack.c.h.bf16 %v3379_v21  ;;  %v2149_v31 = vsel %vm536_vm1, %v2147_v19, %v2148_v34 }
 0x114   : > { %v2151_v63 = vsel %vm536_vm1, %v2148_v34, %v2150_v35  ;;  %v347_v44 = vmul.f32 %v4566_v62, %v3886_v13  ;;  %v348_v12 = vmul.f32 %v4568_v57, %v3886_v13  ;;  %v2188_v26 = vadd.f32 %v2149_v31, %v2068_v40 }
 0x115   : > { %v2189_v53 = vadd.f32 %v2151_v63, %v2069_v45  ;;  %v381_v4 = vmul.f32 %v4566_v62, %v3889_v14  ;;  %v382_v47 = vmul.f32 %v4568_v57, %v3889_v14  ;;  %v383_v1 = vmul.f32 %v3889_v14, %v4576_v2 }
 0x116   : > { %v506_v58 = vmul.f32 %v4566_v62, %v3892_v15  ;;  %v507_v23 = vmul.f32 %v4568_v57, %v3892_v15  ;;  %v508_v59 = vmul.f32 %v3892_v15, %v4576_v2  ;;  %v4900_v7 = vadd.f32 %v4504_v42, %v2188_v26 }
 0x117   : > { %v4903_v56 = vadd.f32 %v4504_v42, %v2189_v53  ;;  %v442_v60 = vrot.slane %v381_v4, 1  ;;  %v443_v61 = vrot.slane %v382_v47, 1  ;;  %v445_v51 = vrot.slane %v383_v1, 1 }
 0x118   : > { %v567_v24 = vrot.slane %v506_v58, 2  ;;  %v568_v6 = vrot.slane %v507_v23, 2  ;;  %v570_v11 = vrot.slane %v508_v59, 2  ;;  %v3142_v62 = vmul.f32 -1.442695, %v4900_v7 }
 0x119   : > { %v3143_v57 = vmul.f32 -1.442695, %v4903_v56  ;;  %v444_v0 = vsel %vm411_vm0, %v442_v60, %v443_v61  ;;  %v627_v2 = vmul.f32 %v3898_v22, %v4722_v33  ;;  %v446_v32 = vsel %vm411_vm0, %v443_v61, %v445_v51 }
 0x11a   : > { %v480_v42 = vadd.f32 %v444_v0, %v347_v44  ;;  %v569_v52 = vsel %vm536_vm1, %v567_v24, %v568_v6  ;;  %v571_v18 = vsel %vm536_vm1, %v568_v6, %v570_v11  ;;  %3609 = vpow2.f32 %v3142_v62 }
 0x11b   : > { %v481_v9 = vadd.f32 %v446_v32, %v348_v12  ;;  %v628_v17 = vmul.f32 %v3898_v22, %v4724_v36  ;;  %v4916_v8 = vunpack.c.l.bf16 %v311_v3  ;;  %3611 = vpow2.f32 %v3143_v57 }
 0x11c   : > { %v3606_v19 = vpop.eup %3605  ;;  %v605_v21 = vadd.f32 %v569_v52, %v480_v42  ;;  %v670_v28 = vmul.f32 %v3937_v49, %v4722_v33  ;;  %v671_v43 = vmul.f32 %v3937_v49, %v4724_v36  ;;  %v672_v34 = vmul.f32 %v3937_v49, %v4732_v30 }
 0x11d   : > { %v3608_v20 = vpop.eup %3607  ;;  %v1311_v38 = vmul.f32 %v3606_v19, %v4819_v48  ;;  %v606_v40 = vadd.f32 %v571_v18, %v481_v9  ;;  %v794_v35 = vmul.f32 %v3940_v50, %v4722_v33  ;;  %v795_v53 = vmul.f32 %v3940_v50, %v4724_v36 }
 0x11e   : > { %v1312_v45 = vmul.f32 %v3608_v20, %v4822_v5  ;;  %v643_v31 = vadd.f32 %v627_v2, %v605_v21  ;;  %v730_v63 = vrot.slane %v670_v28, 1  ;;  %v731_v44 = vrot.slane %v671_v43, 1  ;;  %v3384_v21 = vld [vmem:[%s3868_s6 + $0xc0] sm:$0xff]  }
 0x11f   : > { %v644_v12 = vadd.f32 %v628_v17, %v606_v40  ;;  %v733_v26 = vrot.slane %v672_v34, 1  ;;  %v796_v48 = vmul.f32 %v3940_v50, %v4732_v30  ;;  %v854_v1 = vrot.slane %v794_v35, 2 }
 0x120   : > { %v1322_v4 = vpack.c.bf16 %v1312_v45, %v1311_v38  ;;  %v732_v47 = vsel %vm411_vm0, %v730_v63, %v731_v44  ;;  %v914_v58 = vmul.f32 %v4877_v46, %v3947_v54  ;;  %v855_v59 = vrot.slane %v795_v53, 2 }
 0x121   : > { %v734_v5 = vsel %vm411_vm0, %v731_v44, %v733_v26  ;;  %v768_v23 = vadd.f32 %v732_v47, %v643_v31  ;;  %v857_v60 = vrot.slane %v796_v48, 2  ;;  %v915_v3 = vmul.f32 %v4879_v27, %v3947_v54 }
 0x122   : > { %3449 = vmatmul.mubr.bf16.gmra.mrb[8].mxu0 %v1322_v4  ;;  %v769_v61 = vadd.f32 %v734_v5, %v644_v12  ;;  %v957_v51 = vmul.f32 %v4877_v46, %v3951_v55  ;;  %v958_v24 = vmul.f32 %v4879_v27, %v3951_v55  ;;  %v856_v6 = vsel %vm536_vm1, %v854_v1, %v855_v59 }
 0x123   : > { %v858_v11 = vsel %vm536_vm1, %v855_v59, %v857_v60  ;;  %v959_v62 = vmul.f32 %v3951_v55, %v4916_v8  ;;  %v1081_v57 = vmul.f32 %v4877_v46, %v3994_v41  ;;  %v892_v0 = vadd.f32 %v856_v6, %v768_v23 }
 0x124   : > { %v893_v2 = vadd.f32 %v858_v11, %v769_v61  ;;  %v1017_v32 = vrot.slane %v957_v51, 1  ;;  %v1018_v42 = vrot.slane %v958_v24, 1  ;;  %v3610_v52 = vpop.eup %3609  ;;  %v1082_v9 = vmul.f32 %v4879_v27, %v3994_v41  ;;  %v4976_v61 = vld [vmem:[%s5285_s2] ss:$0 sm:$0xff]  ;;  %v3128_v11 = vld [vmem:[%s3868_s6 + $0xc8] sm:$0x1] }
 0x125   : > { %v1020_v18 = vrot.slane %v959_v62, 1  ;;  %v1083_v17 = vmul.f32 %v3994_v41, %v4916_v8  ;;  %v1141_v19 = vrot.slane %v1081_v57, 2  ;;  %v3612_v28 = vpop.eup %3611  ;;  %v2268_v43 = vadd.f32 1.0, %v3610_v52 }
 0x126   : > { %v930_v20 = vadd.f32 %v914_v58, %v892_v0  ;;  %v931_v38 = vadd.f32 %v915_v3, %v893_v2  ;;  %v1019_v40 = vsel %vm411_vm0, %v1017_v32, %v1018_v42  ;;  %v2269_v34 = vadd.f32 1.0, %v3612_v28 }
 0x127   : > { %v1021_v35 = vsel %vm411_vm0, %v1018_v42, %v1020_v18  ;;  %v1142_v45 = vrot.slane %v1082_v9, 2  ;;  %v1144_v31 = vrot.slane %v1083_v17, 2  ;;  %3613 = vrcp.f32 %v2268_v43 }
 0x128   : > { %v1055_v63 = vadd.f32 %v1019_v40, %v930_v20  ;;  %v1056_v44 = vadd.f32 %v1021_v35, %v931_v38  ;;  %v4955_v12 = vunpack.c.l.bf16 %v3384_v21  ;;  %3615 = vrcp.f32 %v2269_v34 }
 0x129   : > { %v1143_v26 = vsel %vm536_vm1, %v1141_v19, %v1142_v45  ;;  %v1145_v53 = vsel %vm536_vm1, %v1142_v45, %v1144_v31  ;;  %v4959_v48 = vunpack.c.h.bf16 %v3384_v21  ;;  %v1392_v1 = vmul.f32 %v4643_v16, %v3886_v13 }
 0x12a   : > { %v1179_v4 = vadd.f32 %v1143_v26, %v1055_v63  ;;  %v1180_v47 = vadd.f32 %v1145_v53, %v1056_v44  ;;  %v1393_v58 = vmul.f32 %v4648_v37, %v3886_v13  ;;  %v1422_v5 = vmul.f32 %v4643_v16, %v3889_v14 }
 0x12b   : > { %v1423_v23 = vmul.f32 %v4648_v37, %v3889_v14  ;;  %v1424_v59 = vmul.f32 %v4654_v10, %v3889_v14  ;;  %v1542_v60 = vmul.f32 %v4643_v16, %v3892_v15  ;;  %v1543_v24 = vmul.f32 %v4648_v37, %v3892_v15 }
 0x12c   : > { %v4979_v3 = vadd.f32 %v4976_v61, %v1179_v4  ;;  %v4982_v51 = vadd.f32 %v4976_v61, %v1180_v47  ;;  %v1544_v6 = vmul.f32 %v4654_v10, %v3892_v15  ;;  %v1482_v62 = vrot.slane %v1422_v5, 1 }
 0x12d   : > { %v1483_v16 = vrot.slane %v1423_v23, 1  ;;  %v1485_v57 = vrot.slane %v1424_v59, 1  ;;  %v1602_v0 = vrot.slane %v1542_v60, 2  ;;  %v1603_v42 = vrot.slane %v1543_v24, 2 }
 0x12e   : > { %v3098_v2 = vmul.f32 -1.442695, %v4979_v3  ;;  %v3099_v32 = vmul.f32 -1.442695, %v4982_v51  ;;  %v1605_v52 = vrot.slane %v1544_v6, 2  ;;  %v1658_v37 = vmul.f32 %v4800_v39, %v3898_v22 }
 0x12f   : > { %v1484_v18 = vsel %vm411_vm0, %v1482_v62, %v1483_v16  ;;  %v1486_v9 = vsel %vm411_vm0, %v1483_v16, %v1485_v57  ;;  %v1659_v10 = vmul.f32 %v4804_v25, %v3898_v22  ;;  %v1604_v21 = vsel %vm536_vm1, %v1602_v0, %v1603_v42 }
 0x130   : > { %3617 = vpow2.f32 %v3098_v2  ;;  %v1520_v17 = vadd.f32 %v1484_v18, %v1392_v1  ;;  %v1521_v19 = vadd.f32 %v1486_v9, %v1393_v58  ;;  %v1606_v28 = vsel %vm536_vm1, %v1603_v42, %v1605_v52 }
 0x131   : > { %3619 = vpow2.f32 %v3099_v32  ;;  %v4999_v43 = vunpack.c.l.bf16 %v3128_v11  ;;  %v1697_v20 = vmul.f32 %v4800_v39, %v3937_v49  ;;  %v3614_v38 = vpop.eup %3613  ;;  %v1698_v35 = vmul.f32 %v4804_v25, %v3937_v49 }
 0x132   : > { %v1640_v40 = vadd.f32 %v1604_v21, %v1520_v17  ;;  %v1641_v34 = vadd.f32 %v1606_v28, %v1521_v19  ;;  %v1699_v45 = vmul.f32 %v4810_v29, %v3937_v49  ;;  %v3616_v31 = vpop.eup %3615  ;;  %v2316_v63 = vmul.f32 %v3614_v38, %v4900_v7 }
 0x133   : > { %v1757_v44 = vrot.slane %v1697_v20, 1  ;;  %v1817_v26 = vmul.f32 %v4800_v39, %v3940_v50  ;;  %v1818_v53 = vmul.f32 %v4804_v25, %v3940_v50  ;;  %v2317_v4 = vmul.f32 %v3616_v31, %v4903_v56 }
 0x134   : > { %v1674_v47 = vadd.f32 %v1658_v37, %v1640_v40  ;;  %v1675_v1 = vadd.f32 %v1659_v10, %v1641_v34  ;;  %v1758_v58 = vrot.slane %v1698_v35, 1  ;;  %v1760_v5 = vrot.slane %v1699_v45, 1 }
 0x135   : > { %v1819_v23 = vmul.f32 %v4810_v29, %v3940_v50  ;;  %v1877_v59 = vrot.slane %v1817_v26, 2  ;;  %v1878_v60 = vrot.slane %v1818_v53, 2  ;;  %v2327_v24 = vpack.c.bf16 %v2317_v4, %v2316_v63 }
 0x136   : > { %v1759_v7 = vsel %vm411_vm0, %v1757_v44, %v1758_v58  ;;  %v1933_v6 = vmul.f32 %v4955_v12, %v3947_v54  ;;  %v1934_v11 = vmul.f32 %v4959_v48, %v3947_v54  ;;  %v1761_v56 = vsel %vm411_vm0, %v1758_v58, %v1760_v5 }
 0x137   : > { %v1795_v62 = vadd.f32 %v1759_v7, %v1674_v47  ;;  %v1879_v16 = vsel %vm536_vm1, %v1877_v59, %v1878_v60  ;;  %v1880_v57 = vrot.slane %v1819_v23, 2  ;;  %3465 = vmatmul.mubr.bf16.gmra.mrb[8].mxu1 %v2327_v24  ;;  %v1796_v0 = vadd.f32 %v1761_v56, %v1675_v1 }
 0x138   : > { %v1972_v2 = vmul.f32 %v4955_v12, %v3951_v55  ;;  %v1973_v32 = vmul.f32 %v4959_v48, %v3951_v55  ;;  %v1974_v42 = vmul.f32 %v4999_v43, %v3951_v55  ;;  %v2092_v9 = vmul.f32 %v4955_v12, %v3994_v41 }
 0x139   : > { %v1881_v52 = vsel %vm536_vm1, %v1878_v60, %v1880_v57  ;;  %v1915_v18 = vadd.f32 %v1879_v16, %v1795_v62  ;;  %v2093_v37 = vmul.f32 %v4959_v48, %v3994_v41  ;;  %v2094_v34 = vmul.f32 %v4999_v43, %v3994_v41 }
 0x13a   : > { %v3618_v10 = vpop.eup %3617  ;;  %v1916_v17 = vadd.f32 %v1881_v52, %v1796_v0  ;;  %v2032_v19 = vrot.slane %v1972_v2, 1  ;;  %v2033_v21 = vrot.slane %v1973_v32, 1  ;;  %v2035_v28 = vrot.slane %v1974_v42, 1 }
 0x13b   : > { %v3620_v20 = vpop.eup %3619  ;;  %v1265_v38 = vadd.f32 1.0, %v3618_v10  ;;  %v1949_v40 = vadd.f32 %v1933_v6, %v1915_v18  ;;  %v2152_v35 = vrot.slane %v2092_v9, 2  ;;  %v2153_v53 = vrot.slane %v2093_v37, 2 }
 0x13c   : > { %v1266_v45 = vadd.f32 1.0, %v3620_v20  ;;  %v1950_v31 = vadd.f32 %v1934_v11, %v1916_v17  ;;  %v2034_v63 = vsel %vm411_vm0, %v2032_v19, %v2033_v21  ;;  %v2036_v44 = vsel %vm411_vm0, %v2033_v21, %v2035_v28 }
 0x13d   : > { %3621 = vrcp.f32 %v1265_v38  ;;  %v2070_v26 = vadd.f32 %v2034_v63, %v1949_v40  ;;  %v2155_v4 = vrot.slane %v2094_v34, 2  ;;  %v349_v1 = vmul.f32 %v3886_v13, %v4722_v33 }
 0x13e   : > { %3623 = vrcp.f32 %v1266_v45  ;;  %v2071_v47 = vadd.f32 %v2036_v44, %v1950_v31  ;;  %v350_v58 = vmul.f32 %v3886_v13, %v4724_v36  ;;  %v2154_v5 = vsel %vm536_vm1, %v2152_v35, %v2153_v53  ;;  %v312_v35 = vld [vmem:[%s3868_s6 + $0x6c] sm:$0xff]  }
 0x13f   : > { %v2156_v23 = vsel %vm536_vm1, %v2153_v53, %v2155_v4  ;;  %v384_v59 = vmul.f32 %v3889_v14, %v4722_v33  ;;  %v385_v60 = vmul.f32 %v3889_v14, %v4724_v36  ;;  %v2190_v24 = vadd.f32 %v2154_v5, %v2070_v26 }
 0x140   : > { %v2191_v7 = vadd.f32 %v2156_v23, %v2071_v47  ;;  %v386_v6 = vmul.f32 %v3889_v14, %v4732_v30  ;;  %v509_v11 = vmul.f32 %v3892_v15, %v4722_v33  ;;  %v510_v16 = vmul.f32 %v3892_v15, %v4724_v36 }
 0x141   : > { %v447_v56 = vrot.slane %v384_v59, 1  ;;  %v448_v62 = vrot.slane %v385_v60, 1  ;;  %v511_v57 = vmul.f32 %v3892_v15, %v4732_v30  ;;  %v5056_v0 = vadd.f32 %v4976_v61, %v2190_v24  ;;  %v314_v60 = vld [vmem:[%s3868_s6 + $0x74] sm:$0x1] }
 0x142   : > { %v5059_v2 = vadd.f32 %v4976_v61, %v2191_v7  ;;  %v450_v32 = vrot.slane %v386_v6, 1  ;;  %v572_v42 = vrot.slane %v509_v11, 2  ;;  %v573_v18 = vrot.slane %v510_v16, 2 }
 0x143   : > { %v449_v52 = vsel %vm411_vm0, %v447_v56, %v448_v62  ;;  %v575_v33 = vrot.slane %v511_v57, 2  ;;  %v629_v9 = vmul.f32 %v4877_v46, %v3898_v22  ;;  %v3144_v36 = vmul.f32 -1.442695, %v5056_v0 }
 0x144   : > { %v3145_v30 = vmul.f32 -1.442695, %v5059_v2  ;;  %v451_v37 = vsel %vm411_vm0, %v448_v62, %v450_v32  ;;  %v482_v10 = vadd.f32 %v449_v52, %v349_v1  ;;  %v574_v19 = vsel %vm536_vm1, %v572_v42, %v573_v18 }
 0x145   : > { %v483_v17 = vadd.f32 %v451_v37, %v350_v58  ;;  %v576_v21 = vsel %vm536_vm1, %v573_v18, %v575_v33  ;;  %v630_v28 = vmul.f32 %v4879_v27, %v3898_v22  ;;  %3625 = vpow2.f32 %v3144_v36 }
 0x146   : > { %v607_v20 = vadd.f32 %v574_v19, %v482_v10  ;;  %v673_v38 = vmul.f32 %v4877_v46, %v3937_v49  ;;  %v674_v40 = vmul.f32 %v4879_v27, %v3937_v49  ;;  %3627 = vpow2.f32 %v3145_v30 }
 0x147   : > { %v3622_v34 = vpop.eup %3621  ;;  %v608_v45 = vadd.f32 %v576_v21, %v483_v17  ;;  %v675_v31 = vmul.f32 %v3937_v49, %v4916_v8  ;;  %v797_v63 = vmul.f32 %v4877_v46, %v3940_v50  ;;  %v798_v23 = vmul.f32 %v4879_v27, %v3940_v50 }
 0x148   : > { %v3624_v44 = vpop.eup %3623  ;;  %v1313_v26 = vmul.f32 %v3622_v34, %v4979_v3  ;;  %v645_v53 = vadd.f32 %v629_v9, %v607_v20  ;;  %v735_v4 = vrot.slane %v673_v38, 1  ;;  %v736_v47 = vrot.slane %v674_v40, 1 }
 0x149   : > { %v1314_v1 = vmul.f32 %v3624_v44, %v4982_v51  ;;  %v646_v58 = vadd.f32 %v630_v28, %v608_v45  ;;  %v738_v5 = vrot.slane %v675_v31, 1  ;;  %v5084_v59 = vpop.f32.mrb[0].mxu0  ;;  %v799_v46 = vmul.f32 %v3940_v50, %v4916_v8 }
 0x14a   : > { %v737_v24 = vsel %vm411_vm0, %v735_v4, %v736_v47  ;;  %v859_v7 = vrot.slane %v797_v63, 2  ;;  %v896_v3 = vunpack.c.l.bf16 %v312_v35  ;;  %v5090_v6 = vpop.f32.mrb[1].mxu0  ;;  %v860_v62 = vrot.slane %v798_v23, 2 }
 0x14b   : > { %v1323_v11 = vpack.c.bf16 %v1314_v1, %v1313_v26  ;;  %v739_v51 = vsel %vm411_vm0, %v736_v47, %v738_v5  ;;  %v770_v56 = vadd.f32 %v737_v24, %v645_v53  ;;  %v5093_v16 = vpop.f32.mrb[2].mxu0  ;;  %v862_v57 = vrot.slane %v799_v46, 2 }
 0x14c   : > { %v771_v27 = vadd.f32 %v739_v51, %v646_v58  ;;  %v897_v32 = vunpack.c.h.bf16 %v312_v35  ;;  %v916_v42 = vmul.f32 %v3947_v54, %v896_v3  ;;  %v5096_v52 = vpop.f32.mrb[3].mxu0  ;;  %v861_v8 = vsel %vm536_vm1, %v859_v7, %v860_v62 }
 0x14d   : > { %3452 = vmatprep.mubr.bf16.mxu0 %v1323_v11  ;;  %v934_v18 = vunpack.c.l.bf16 %v314_v60  ;;  %v960_v33 = vmul.f32 %v3951_v55, %v896_v3  ;;  %v1084_v9 = vmul.f32 %v3994_v41, %v896_v3  ;;  %v863_v36 = vsel %vm536_vm1, %v860_v62, %v862_v57 }
 0x14e   : > { %v894_v30 = vadd.f32 %v861_v8, %v770_v56  ;;  %v917_v37 = vmul.f32 %v3947_v54, %v897_v32  ;;  %v961_v10 = vmul.f32 %v3951_v55, %v897_v32  ;;  %v895_v17 = vadd.f32 %v863_v36, %v771_v27 }
 0x14f   : > { %v962_v19 = vmul.f32 %v3951_v55, %v934_v18  ;;  %v1022_v21 = vrot.slane %v960_v33, 1  ;;  %v1085_v28 = vmul.f32 %v3994_v41, %v897_v32  ;;  %v3626_v20 = vpop.eup %3625  ;;  %v1086_v34 = vmul.f32 %v3994_v41, %v934_v18 }
 0x150   : > { %v932_v38 = vadd.f32 %v916_v42, %v894_v30  ;;  %v1023_v40 = vrot.slane %v961_v10, 1  ;;  %v1146_v35 = vrot.slane %v1084_v9, 2  ;;  %v3628_v45 = vpop.eup %3627  ;;  %v2270_v31 = vadd.f32 1.0, %v3626_v20 }
 0x151   : > { %v933_v63 = vadd.f32 %v917_v37, %v895_v17  ;;  %v1025_v44 = vrot.slane %v962_v19, 1  ;;  %v1147_v26 = vrot.slane %v1085_v28, 2  ;;  %v2271_v53 = vadd.f32 1.0, %v3628_v45 }
 0x152   : > { %v1024_v4 = vsel %vm411_vm0, %v1022_v21, %v1023_v40  ;;  %v1149_v47 = vrot.slane %v1086_v34, 2  ;;  %v1394_v1 = vmul.f32 %v4800_v39, %v3886_v13  ;;  %3629 = vrcp.f32 %v2270_v31  ;;  %v3129_v34 = vld [vmem:[%s3868_s6 + $0xcc] sm:$0xff]  }
 0x153   : > { %v1026_v58 = vsel %vm411_vm0, %v1023_v40, %v1025_v44  ;;  %v1057_v5 = vadd.f32 %v1024_v4, %v932_v38  ;;  %v1148_v23 = vsel %vm536_vm1, %v1146_v35, %v1147_v26  ;;  %3631 = vrcp.f32 %v2271_v53 }
 0x154   : > { %v1058_v60 = vadd.f32 %v1026_v58, %v933_v63  ;;  %v1150_v24 = vsel %vm536_vm1, %v1147_v26, %v1149_v47  ;;  %v1395_v46 = vmul.f32 %v4804_v25, %v3886_v13  ;;  %v1425_v3 = vmul.f32 %v4800_v39, %v3889_v14 }
 0x155   : > { %v1181_v7 = vadd.f32 %v1148_v23, %v1057_v5  ;;  %v1426_v11 = vmul.f32 %v4804_v25, %v3889_v14  ;;  %v1427_v51 = vmul.f32 %v4810_v29, %v3889_v14  ;;  %v1545_v62 = vmul.f32 %v4800_v39, %v3892_v15  ;;  %v3131_v23 = vld [vmem:[%s3868_s6 + $0xd4] sm:$0x1] }
 0x156   : > { %v1182_v56 = vadd.f32 %v1150_v24, %v1058_v60  ;;  %v1546_v27 = vmul.f32 %v4804_v25, %v3892_v15  ;;  %v1547_v13 = vmul.f32 %v4810_v29, %v3892_v15  ;;  %v1487_v32 = vrot.slane %v1425_v3, 1 }
 0x157   : > { %v5128_v57 = vadd.f32 %v4976_v61, %v1181_v7  ;;  %v1488_v42 = vrot.slane %v1426_v11, 1  ;;  %v1490_v8 = vrot.slane %v1427_v51, 1  ;;  %v1607_v14 = vrot.slane %v1545_v62, 2 }
 0x158   : > { %v5131_v18 = vadd.f32 %v4976_v61, %v1182_v56  ;;  %v1608_v33 = vrot.slane %v1546_v27, 2  ;;  %v1610_v9 = vrot.slane %v1547_v13, 2  ;;  %v1660_v15 = vmul.f32 %v4955_v12, %v3898_v22 }
 0x159   : > { %v3100_v39 = vmul.f32 -1.442695, %v5128_v57  ;;  %v1489_v36 = vsel %vm411_vm0, %v1487_v32, %v1488_v42  ;;  %v1491_v25 = vsel %vm411_vm0, %v1488_v42, %v1490_v8  ;;  %v1661_v19 = vmul.f32 %v4959_v48, %v3898_v22 }
 0x15a   : > { %v3101_v29 = vmul.f32 -1.442695, %v5131_v18  ;;  %v1522_v30 = vadd.f32 %v1489_v36, %v1394_v1  ;;  %v1523_v37 = vadd.f32 %v1491_v25, %v1395_v46  ;;  %v1609_v10 = vsel %vm536_vm1, %v1607_v14, %v1608_v33 }
 0x15b   : > { %3633 = vpow2.f32 %v3100_v39  ;;  %v1611_v17 = vsel %vm536_vm1, %v1608_v33, %v1610_v9  ;;  %v1700_v21 = vmul.f32 %v4955_v12, %v3937_v49  ;;  %v1701_v38 = vmul.f32 %v4959_v48, %v3937_v49 }
 0x15c   : > { %3635 = vpow2.f32 %v3101_v29  ;;  %v1642_v28 = vadd.f32 %v1609_v10, %v1522_v30  ;;  %v1643_v20 = vadd.f32 %v1611_v17, %v1523_v37  ;;  %v3630_v40 = vpop.eup %3629  ;;  %v1702_v35 = vmul.f32 %v4999_v43, %v3937_v49  ;;  %v5174_v29 = vld [vmem:[%s5287_s4] ss:$0 sm:$0xff] }
 0x15d   : > { %v1762_v45 = vrot.slane %v1700_v21, 1  ;;  %v1820_v31 = vmul.f32 %v4955_v12, %v3940_v50  ;;  %v1821_v22 = vmul.f32 %v4959_v48, %v3940_v50  ;;  %v3632_v63 = vpop.eup %3631  ;;  %v2318_v44 = vmul.f32 %v3630_v40, %v5056_v0 }
 0x15e   : > { %v1676_v26 = vadd.f32 %v1660_v15, %v1642_v28  ;;  %v1677_v53 = vadd.f32 %v1661_v19, %v1643_v20  ;;  %v1763_v4 = vrot.slane %v1701_v38, 1  ;;  %v2319_v47 = vmul.f32 %v3632_v63, %v5059_v2  ;;  %v3458_v5 = vpop.f32.mrb[0].mxu1 }
 0x15f   : > { %v1765_v1 = vrot.slane %v1702_v35, 1  ;;  %v1822_v58 = vmul.f32 %v4999_v43, %v3940_v50  ;;  %v1882_v49 = vrot.slane %v1820_v31, 2  ;;  %v1883_v60 = vrot.slane %v1821_v22, 2  ;;  %v2523_v46 = vpop.f32.mrb[1].mxu1 }
 0x160   : > { %v1764_v12 = vsel %vm411_vm0, %v1762_v45, %v1763_v4  ;;  %v1919_v24 = vunpack.c.l.bf16 %v3129_v34  ;;  %v1920_v48 = vunpack.c.h.bf16 %v3129_v34  ;;  %v2328_v7 = vpack.c.bf16 %v2319_v47, %v2318_v44  ;;  %v3459_v51 = vpop.f32.mrb[2].mxu1 }
 0x161   : > { %v1766_v0 = vsel %vm411_vm0, %v1763_v4, %v1765_v1  ;;  %v1797_v3 = vadd.f32 %v1764_v12, %v1676_v26  ;;  %v1885_v11 = vrot.slane %v1822_v58, 2  ;;  %v1884_v56 = vsel %vm536_vm1, %v1882_v49, %v1883_v60  ;;  %v2526_v62 = vpop.f32.mrb[3].mxu1 }
 0x162   : > { %v1798_v2 = vadd.f32 %v1766_v0, %v1677_v53  ;;  %v1935_v50 = vmul.f32 %v1919_v24, %v3947_v54  ;;  %v1936_v43 = vmul.f32 %v1920_v48, %v3947_v54  ;;  %3468 = vmatprep.mubr.bf16.mxu1 %v2328_v7  ;;  %v1953_v32 = vunpack.c.l.bf16 %v3131_v23 }
 0x163   : > { %v1886_v27 = vsel %vm536_vm1, %v1883_v60, %v1885_v11  ;;  %v1917_v13 = vadd.f32 %v1884_v56, %v1797_v3  ;;  %v1975_v42 = vmul.f32 %v1919_v24, %v3951_v55  ;;  %v1976_v14 = vmul.f32 %v1920_v48, %v3951_v55 }
 0x164   : > { %v1918_v8 = vadd.f32 %v1886_v27, %v1798_v2  ;;  %v2095_v33 = vmul.f32 %v1919_v24, %v3994_v41  ;;  %v2096_v9 = vmul.f32 %v1920_v48, %v3994_v41  ;;  %v1977_v25 = vmul.f32 %v1953_v32, %v3951_v55 }
 0x165   : > { %v3634_v39 = vpop.eup %3633  ;;  %v1951_v36 = vadd.f32 %v1935_v50, %v1917_v13  ;;  %v2037_v54 = vrot.slane %v1975_v42, 1  ;;  %v2097_v15 = vmul.f32 %v1953_v32, %v3994_v41  ;;  %v2038_v17 = vrot.slane %v1976_v14, 1 }
 0x166   : > { %v3636_v30 = vpop.eup %3635  ;;  %v1267_v37 = vadd.f32 1.0, %v3634_v39  ;;  %v1952_v10 = vadd.f32 %v1936_v43, %v1918_v8  ;;  %v2157_v19 = vrot.slane %v2095_v33, 2  ;;  %v2040_v28 = vrot.slane %v1977_v25, 1 }
 0x167   : > { %v1268_v21 = vadd.f32 1.0, %v3636_v30  ;;  %v2158_v20 = vrot.slane %v2096_v9, 2  ;;  %v2160_v38 = vrot.slane %v2097_v15, 2  ;;  %v2039_v55 = vsel %vm411_vm0, %v2037_v54, %v2038_v17 }
 0x168   : > { %3637 = vrcp.f32 %v1267_v37  ;;  %v5179_v41 = vadd.f32 %v5084_v59, %v5174_v29  ;;  %v5182_v40 = vadd.f32 %v3458_v5, %v5174_v29  ;;  %v2041_v34 = vsel %vm411_vm0, %v2038_v17, %v2040_v28 }
 0x169   : > { %3639 = vrcp.f32 %v1268_v21  ;;  %v2072_v35 = vadd.f32 %v2039_v55, %v1951_v36  ;;  %v2159_v45 = vsel %vm536_vm1, %v2157_v19, %v2158_v20  ;;  %v2073_v31 = vadd.f32 %v2041_v34, %v1952_v10 }
 0x16a   : > { %v2161_v22 = vsel %vm536_vm1, %v2158_v20, %v2160_v38  ;;  %v3159_v63 = vmul.f32 -1.442695, %v5179_v41  ;;  %v3175_v44 = vmul.f32 -1.442695, %v5182_v40  ;;  %v5191_v59 = vadd.f32 %v5174_v29, %v5090_v6 }
 0x16b   : > { %v2192_v26 = vadd.f32 %v2159_v45, %v2072_v35  ;;  %v5194_v53 = vadd.f32 %v5174_v29, %v2523_v46  ;;  %v5198_v4 = vadd.f32 %v5093_v16, %v5174_v29  ;;  %v2193_v47 = vadd.f32 %v2161_v22, %v2073_v31 }
 0x16c   : > { %3641 = vpow2.f32 %v3159_v63  ;;  %v5201_v1 = vadd.f32 %v3459_v51, %v5174_v29  ;;  %v5205_v58 = vadd.f32 %v5174_v29, %v5096_v52  ;;  %v3157_v6 = vmul.f32 -1.442695, %v5191_v59 }
 0x16d   : > { %v2208_v49 = vadd.f32 %v4976_v61, %v2192_v26  ;;  %3643 = vpow2.f32 %v3175_v44  ;;  %v3173_v5 = vmul.f32 -1.442695, %v5194_v53  ;;  %v2209_v23 = vadd.f32 %v4976_v61, %v2193_v47 }
 0x16e   : > { %3645 = vpow2.f32 %v3157_v6  ;;  %v3160_v12 = vmul.f32 -1.442695, %v5198_v4  ;;  %v5213_v60 = vadd.f32 %v5174_v29, %v2526_v62  ;;  %v3176_v52 = vmul.f32 -1.442695, %v5201_v1 }
 0x16f   : > { %v3146_v16 = vmul.f32 -1.442695, %v2208_v49  ;;  %v3147_v24 = vmul.f32 -1.442695, %v2209_v23  ;;  %3647 = vpow2.f32 %v3173_v5  ;;  %v3158_v48 = vmul.f32 -1.442695, %v5205_v58 }
 0x170   : > { %v3174_v7 = vmul.f32 -1.442695, %v5213_v60 }
 0x171   : > { %3649 = vpow2.f32 %v3146_v16 }
 0x172   : > { %v3638_v46 = vpop.eup %3637  ;;  %3651 = vpow2.f32 %v3147_v24 }
 0x173   : > { %v3640_v0 = vpop.eup %3639  ;;  %v1315_v61 = vmul.f32 %v3638_v46, %v5128_v57  ;;  %3653 = vpow2.f32 %v3160_v12 }
 0x174   : > { %v1316_v3 = vmul.f32 %v3640_v0, %v5131_v18  ;;  %3655 = vpow2.f32 %v3176_v52 }
 0x175   : > { %3657 = vpow2.f32 %v3158_v48 }
 0x176   : > { %v3642_v11 = vpop.eup %3641  ;;  %v1324_v51 = vpack.c.bf16 %v1316_v3, %v1315_v61  ;;  %3659 = vpow2.f32 %v3174_v7 }
 0x177   : > { %v3644_v2 = vpop.eup %3643  ;;  %v2684_v56 = vadd.f32 1.0, %v3642_v11 }
 0x178   : > { %3453 = vmatmul.mubr.bf16.gmra.mrb[12].mxu0 %v1324_v51  ;;  %v2700_v50 = vadd.f32 1.0, %v3644_v2  ;;  %v3646_v43 = vpop.eup %3645 }
 0x179   : > { %v3648_v62 = vpop.eup %3647  ;;  %3661 = vrcp.f32 %v2684_v56  ;;  %v2682_v27 = vadd.f32 1.0, %v3646_v43 }
 0x17a   : > { %3663 = vrcp.f32 %v2700_v50  ;;  %v2698_v32 = vadd.f32 1.0, %v3648_v62 }
 0x17b   : > { %v3650_v13 = vpop.eup %3649  ;;  %3665 = vrcp.f32 %v2682_v27 }
 0x17c   : > { %v3652_v57 = vpop.eup %3651  ;;  %v2272_v42 = vadd.f32 1.0, %v3650_v13  ;;  %3667 = vrcp.f32 %v2698_v32 }
 0x17d   : > { %v3654_v18 = vpop.eup %3653  ;;  %v2273_v8 = vadd.f32 1.0, %v3652_v57 }
 0x17e   : > { %v3656_v14 = vpop.eup %3655  ;;  %3669 = vrcp.f32 %v2272_v42  ;;  %v2685_v33 = vadd.f32 1.0, %v3654_v18 }
 0x17f   : > { %v3658_v9 = vpop.eup %3657  ;;  %3671 = vrcp.f32 %v2273_v8  ;;  %v2701_v39 = vadd.f32 1.0, %v3656_v14 }
 0x180   : > { %v3660_v36 = vpop.eup %3659  ;;  %3673 = vrcp.f32 %v2685_v33  ;;  %v2683_v25 = vadd.f32 1.0, %v3658_v9 }
 0x181   : > { %3675 = vrcp.f32 %v2701_v39  ;;  %v2699_v54 = vadd.f32 1.0, %v3660_v36 }
 0x182   : > { %3677 = vrcp.f32 %v2683_v25 }
 0x183   : > { %3679 = vrcp.f32 %v2699_v54  ;;  %v3662_v15 = vpop.eup %3661 }
 0x184   : > { %v3664_v30 = vpop.eup %3663  ;;  %v2780_v55 = vmul.f32 %v3662_v15, %v5179_v41 }
 0x185   : > { %v3666_v37 = vpop.eup %3665  ;;  %v2796_v31 = vmul.f32 %v3664_v30, %v5182_v40 }
 0x186   : > { %v3668_v10 = vpop.eup %3667  ;;  %v2778_v41 = vmul.f32 %v3666_v37, %v5191_v59 }
 0x187   : > { %v2794_v40 = vmul.f32 %v3668_v10, %v5194_v53 }
 0x188   : > { %v3670_v17 = vpop.eup %3669 }
 0x189   : > { %v3672_v19 = vpop.eup %3671  ;;  %v2320_v21 = vmul.f32 %v3670_v17, %v2208_v49 }
 0x18a   : > { %v3674_v28 = vpop.eup %3673  ;;  %v2321_v20 = vmul.f32 %v3672_v19, %v2209_v23 }
 0x18b   : > { %v3676_v38 = vpop.eup %3675  ;;  %v2781_v34 = vmul.f32 %v3674_v28, %v5198_v4 }
 0x18c   : > { %v3678_v35 = vpop.eup %3677  ;;  %v2329_v45 = vpack.c.bf16 %v2321_v20, %v2320_v21  ;;  %v2797_v22 = vmul.f32 %v3676_v38, %v5201_v1 }
 0x18d   : > { %v3680_v63 = vpop.eup %3679  ;;  %v3304_v44 = vpack.c.bf16 %v2781_v34, %v2780_v55  ;;  %v2779_v26 = vmul.f32 %v3678_v35, %v5205_v58 }
 0x18e   : > { %3469 = vmatmul.mubr.bf16.gmra.mrb[12].mxu1 %v2329_v45  ;;  %v3344_v4 = vpack.c.bf16 %v2797_v22, %v2796_v31  ;;  %v2795_v47 = vmul.f32 %v3680_v63, %v5213_v60 }
 0x18f   : > { %3385 = vst [vmem:[%s5227_s13 + $0x8] sm:$0xff] %v3304_v44   ;;  %v3299_v49 = vpack.c.bf16 %v2779_v26, %v2778_v41 }
 0x190   : > { %3393 = vst [vmem:[%s5227_s13 + $0x48] sm:$0xff] %v3344_v4   ;;  %v3339_v6 = vpack.c.bf16 %v2795_v47, %v2794_v40 }
 0x191   : > { %3300 = vst [vmem:[%s5227_s13] sm:$0xff] %v3299_v49  }
 0x192   : > { %3392 = vst [vmem:[%s5227_s13 + $0x40] sm:$0xff] %v3339_v6  }
 0x19f   : > { %v3446_v5 = vpop.f32.mrb[4].mxu0 }
 0x1a0   : > { %v2484_v1 = vadd.f32 %v3446_v5, %v5174_v29  ;;  %v2475_v23 = vpop.f32.mrb[5].mxu0 }
 0x1a1   : > { %v2476_v59 = vadd.f32 %v5174_v29, %v2475_v23  ;;  %v3447_v16 = vpop.f32.mrb[6].mxu0 }
 0x1a2   : > { %v3163_v58 = vmul.f32 -1.442695, %v2484_v1  ;;  %v2487_v12 = vadd.f32 %v3447_v16, %v5174_v29  ;;  %v2478_v53 = vpop.f32.mrb[7].mxu0 }
 0x1a3   : > { %v3161_v24 = vmul.f32 -1.442695, %v2476_v59  ;;  %v2479_v60 = vadd.f32 %v5174_v29, %v2478_v53 }
 0x1a4   : > { %3681 = vpow2.f32 %v3163_v58  ;;  %v3164_v52 = vmul.f32 -1.442695, %v2487_v12 }
 0x1a5   : > { %3683 = vpow2.f32 %v3161_v24  ;;  %v3162_v48 = vmul.f32 -1.442695, %v2479_v60 }
 0x1a6   : > { %3685 = vpow2.f32 %v3164_v52 }
 0x1a7   : > { %3687 = vpow2.f32 %v3162_v48 }
 0x1ae   : > { %v3682_v46 = vpop.eup %3681 }
 0x1af   : > { %v3684_v7 = vpop.eup %3683  ;;  %v2688_v0 = vadd.f32 1.0, %v3682_v46 }
 0x1b0   : > { %v3686_v61 = vpop.eup %3685  ;;  %v2686_v3 = vadd.f32 1.0, %v3684_v7 }
 0x1b1   : > { %v3688_v11 = vpop.eup %3687  ;;  %3689 = vrcp.f32 %v2688_v0  ;;  %v2689_v51 = vadd.f32 1.0, %v3686_v61 }
 0x1b2   : > { %3691 = vrcp.f32 %v2686_v3  ;;  %v2687_v2 = vadd.f32 1.0, %v3688_v11 }
 0x1b3   : > { %3693 = vrcp.f32 %v2689_v51 }
 0x1b4   : > { %3695 = vrcp.f32 %v2687_v2  ;;  %v3462_v56 = vpop.f32.mrb[4].mxu1 }
 0x1b5   : > { %v2548_v50 = vadd.f32 %v3462_v56, %v5174_v29  ;;  %v2539_v43 = vpop.f32.mrb[5].mxu1 }
 0x1b6   : > { %v2540_v62 = vadd.f32 %v5174_v29, %v2539_v43  ;;  %v3463_v27 = vpop.f32.mrb[6].mxu1 }
 0x1b7   : > { %v3179_v13 = vmul.f32 -1.442695, %v2548_v50  ;;  %v2551_v32 = vadd.f32 %v3463_v27, %v5174_v29  ;;  %v2542_v57 = vpop.f32.mrb[7].mxu1 }
 0x1b8   : > { %v3177_v42 = vmul.f32 -1.442695, %v2540_v62  ;;  %v2543_v18 = vadd.f32 %v5174_v29, %v2542_v57 }
 0x1b9   : > { %3697 = vpow2.f32 %v3179_v13  ;;  %v3180_v8 = vmul.f32 -1.442695, %v2551_v32 }
 0x1ba   : > { %3699 = vpow2.f32 %v3177_v42  ;;  %v3178_v33 = vmul.f32 -1.442695, %v2543_v18 }
 0x1bb   : > { %v3690_v14 = vpop.eup %3689  ;;  %3701 = vpow2.f32 %v3180_v8 }
 0x1bc   : > { %v3692_v9 = vpop.eup %3691  ;;  %3703 = vpow2.f32 %v3178_v33  ;;  %v2784_v25 = vmul.f32 %v3690_v14, %v2484_v1 }
 0x1bd   : > { %v3694_v39 = vpop.eup %3693  ;;  %v2782_v15 = vmul.f32 %v3692_v9, %v2476_v59 }
 0x1be   : > { %v3696_v36 = vpop.eup %3695  ;;  %v2785_v54 = vmul.f32 %v3694_v39, %v2487_v12 }
 0x1bf   : > { %v2783_v30 = vmul.f32 %v3696_v36, %v2479_v60 }
 0x1c0   : > { %v3314_v37 = vpack.c.bf16 %v2785_v54, %v2784_v25 }
 0x1c1   : > { %v3309_v10 = vpack.c.bf16 %v2783_v30, %v2782_v15 }
 0x1c2   : > { %3387 = vst [vmem:[%s5227_s13 + $0x18] sm:$0xff] %v3314_v37  }
 0x1c3   : > { %3386 = vst [vmem:[%s5227_s13 + $0x10] sm:$0xff] %v3309_v10   ;;  %v3698_v17 = vpop.eup %3697 }
 0x1c4   : > { %v3700_v19 = vpop.eup %3699  ;;  %v2704_v21 = vadd.f32 1.0, %v3698_v17 }
 0x1c5   : > { %v3702_v28 = vpop.eup %3701  ;;  %v2702_v20 = vadd.f32 1.0, %v3700_v19 }
 0x1c6   : > { %v3704_v38 = vpop.eup %3703  ;;  %3705 = vrcp.f32 %v2704_v21  ;;  %v2705_v55 = vadd.f32 1.0, %v3702_v28 }
 0x1c7   : > { %3707 = vrcp.f32 %v2702_v20  ;;  %v2703_v34 = vadd.f32 1.0, %v3704_v38 }
 0x1c8   : > { %3709 = vrcp.f32 %v2705_v55 }
 0x1c9   : > { %3711 = vrcp.f32 %v2703_v34 }
 0x1d0   : > { %v3706_v35 = vpop.eup %3705 }
 0x1d1   : > { %v3708_v45 = vpop.eup %3707  ;;  %v2800_v63 = vmul.f32 %v3706_v35, %v2548_v50 }
 0x1d2   : > { %v3710_v31 = vpop.eup %3709  ;;  %v2798_v44 = vmul.f32 %v3708_v45, %v2540_v62 }
 0x1d3   : > { %v3712_v22 = vpop.eup %3711  ;;  %v2801_v41 = vmul.f32 %v3710_v31, %v2551_v32 }
 0x1d4   : > { %v2799_v26 = vmul.f32 %v3712_v22, %v2543_v18 }
 0x1d5   : > { %v3354_v40 = vpack.c.bf16 %v2801_v41, %v2800_v63 }
 0x1d6   : > { %v3349_v4 = vpack.c.bf16 %v2799_v26, %v2798_v44 }
 0x1d7   : > { %3395 = vst [vmem:[%s5227_s13 + $0x58] sm:$0xff] %v3354_v40  }
 0x1d8   : > { %3394 = vst [vmem:[%s5227_s13 + $0x50] sm:$0xff] %v3349_v4  }
 0x1f5   : > { %v3450_v47 = vpop.f32.mrb[8].mxu0 }
 0x1f6   : > { %v2500_v49 = vadd.f32 %v3450_v47, %v5174_v29  ;;  %v2491_v6 = vpop.f32.mrb[9].mxu0 }
 0x1f7   : > { %v2492_v5 = vadd.f32 %v5174_v29, %v2491_v6  ;;  %v3451_v1 = vpop.f32.mrb[10].mxu0 }
 0x1f8   : > { %v3167_v23 = vmul.f32 -1.442695, %v2500_v49  ;;  %v2503_v59 = vadd.f32 %v3451_v1, %v5174_v29  ;;  %v2494_v16 = vpop.f32.mrb[11].mxu0 }
 0x1f9   : > { %v3165_v58 = vmul.f32 -1.442695, %v2492_v5  ;;  %v2495_v12 = vadd.f32 %v5174_v29, %v2494_v16 }
 0x1fa   : > { %3713 = vpow2.f32 %v3167_v23  ;;  %v3168_v53 = vmul.f32 -1.442695, %v2503_v59 }
 0x1fb   : > { %3715 = vpow2.f32 %v3165_v58  ;;  %v3166_v24 = vmul.f32 -1.442695, %v2495_v12 }
 0x1fc   : > { %3717 = vpow2.f32 %v3168_v53 }
 0x1fd   : > { %3719 = vpow2.f32 %v3166_v24 }
 0x204   : > { %v3714_v60 = vpop.eup %3713 }
 0x205   : > { %v3716_v52 = vpop.eup %3715  ;;  %v2692_v48 = vadd.f32 1.0, %v3714_v60 }
 0x206   : > { %v3718_v46 = vpop.eup %3717  ;;  %v2690_v7 = vadd.f32 1.0, %v3716_v52 }
 0x207   : > { %v3720_v0 = vpop.eup %3719  ;;  %3721 = vrcp.f32 %v2692_v48  ;;  %v2693_v61 = vadd.f32 1.0, %v3718_v46 }
 0x208   : > { %3723 = vrcp.f32 %v2690_v7  ;;  %v2691_v3 = vadd.f32 1.0, %v3720_v0 }
 0x209   : > { %3725 = vrcp.f32 %v2693_v61 }
 0x20a   : > { %3727 = vrcp.f32 %v2691_v3  ;;  %v3466_v11 = vpop.f32.mrb[8].mxu1 }
 0x20b   : > { %v2564_v51 = vadd.f32 %v3466_v11, %v5174_v29  ;;  %v2555_v2 = vpop.f32.mrb[9].mxu1 }
 0x20c   : > { %v2556_v56 = vadd.f32 %v5174_v29, %v2555_v2  ;;  %v3467_v50 = vpop.f32.mrb[10].mxu1 }
 0x20d   : > { %v3183_v43 = vmul.f32 -1.442695, %v2564_v51  ;;  %v2567_v62 = vadd.f32 %v3467_v50, %v5174_v29  ;;  %v2558_v27 = vpop.f32.mrb[11].mxu1 }
 0x20e   : > { %v3181_v13 = vmul.f32 -1.442695, %v2556_v56  ;;  %v2559_v32 = vadd.f32 %v5174_v29, %v2558_v27 }
 0x20f   : > { %3729 = vpow2.f32 %v3183_v43  ;;  %v3184_v57 = vmul.f32 -1.442695, %v2567_v62 }
 0x210   : > { %3731 = vpow2.f32 %v3181_v13  ;;  %v3182_v18 = vmul.f32 -1.442695, %v2559_v32 }
 0x211   : > { %v3722_v42 = vpop.eup %3721  ;;  %3733 = vpow2.f32 %v3184_v57 }
 0x212   : > { %v3724_v8 = vpop.eup %3723  ;;  %3735 = vpow2.f32 %v3182_v18  ;;  %v2788_v9 = vmul.f32 %v3722_v42, %v2500_v49 }
 0x213   : > { %v3726_v14 = vpop.eup %3725  ;;  %v2786_v36 = vmul.f32 %v3724_v8, %v2492_v5 }
 0x214   : > { %v3728_v33 = vpop.eup %3727  ;;  %v2789_v39 = vmul.f32 %v3726_v14, %v2503_v59 }
 0x215   : > { %v2787_v25 = vmul.f32 %v3728_v33, %v2495_v12 }
 0x216   : > { %v3324_v54 = vpack.c.bf16 %v2789_v39, %v2788_v9 }
 0x217   : > { %v3319_v15 = vpack.c.bf16 %v2787_v25, %v2786_v36 }
 0x218   : > { %3389 = vst [vmem:[%s5227_s13 + $0x28] sm:$0xff] %v3324_v54  }
 0x219   : > { %3388 = vst [vmem:[%s5227_s13 + $0x20] sm:$0xff] %v3319_v15   ;;  %v3730_v30 = vpop.eup %3729 }
 0x21a   : > { %v3732_v37 = vpop.eup %3731  ;;  %v2708_v10 = vadd.f32 1.0, %v3730_v30 }
 0x21b   : > { %v3734_v17 = vpop.eup %3733  ;;  %v2706_v19 = vadd.f32 1.0, %v3732_v37 }
 0x21c   : > { %v3736_v21 = vpop.eup %3735  ;;  %3737 = vrcp.f32 %v2708_v10  ;;  %v2709_v28 = vadd.f32 1.0, %v3734_v17 }
 0x21d   : > { %3739 = vrcp.f32 %v2706_v19  ;;  %v2707_v20 = vadd.f32 1.0, %v3736_v21 }
 0x21e   : > { %3741 = vrcp.f32 %v2709_v28 }
 0x21f   : > { %3743 = vrcp.f32 %v2707_v20 }
 0x226   : > { %v3738_v38 = vpop.eup %3737 }
 0x227   : > { %v3740_v55 = vpop.eup %3739  ;;  %v2804_v45 = vmul.f32 %v3738_v38, %v2564_v51 }
 0x228   : > { %v3742_v34 = vpop.eup %3741  ;;  %v2802_v22 = vmul.f32 %v3740_v55, %v2556_v56 }
 0x229   : > { %v3744_v35 = vpop.eup %3743  ;;  %v2805_v31 = vmul.f32 %v3742_v34, %v2567_v62 }
 0x22a   : > { %v2803_v63 = vmul.f32 %v3744_v35, %v2559_v32 }
 0x22b   : > { %v3364_v41 = vpack.c.bf16 %v2805_v31, %v2804_v45 }
 0x22c   : > { %v3359_v44 = vpack.c.bf16 %v2803_v63, %v2802_v22 }
 0x22d   : > { %3397 = vst [vmem:[%s5227_s13 + $0x68] sm:$0xff] %v3364_v41  }
 0x22e   : > { %3396 = vst [vmem:[%s5227_s13 + $0x60] sm:$0xff] %v3359_v44  }
 0x24b   : > { %v3454_v26 = vpop.f32.mrb[12].mxu0 }
 0x24c   : > { %v2516_v40 = vadd.f32 %v3454_v26, %v5174_v29  ;;  %v2507_v4 = vpop.f32.mrb[13].mxu0 }
 0x24d   : > { %v2508_v47 = vadd.f32 %v5174_v29, %v2507_v4  ;;  %v3455_v49 = vpop.f32.mrb[14].mxu0 }
 0x24e   : > { %v3171_v6 = vmul.f32 -1.442695, %v2516_v40  ;;  %v2519_v5 = vadd.f32 %v3455_v49, %v5174_v29  ;;  %v2510_v1 = vpop.f32.mrb[15].mxu0 }
 0x24f   : > { %v3169_v23 = vmul.f32 -1.442695, %v2508_v47  ;;  %v2511_v59 = vadd.f32 %v5174_v29, %v2510_v1 }
 0x250   : > { %3745 = vpow2.f32 %v3171_v6  ;;  %v3172_v16 = vmul.f32 -1.442695, %v2519_v5 }
 0x251   : > { %3747 = vpow2.f32 %v3169_v23  ;;  %v3170_v58 = vmul.f32 -1.442695, %v2511_v59 }
 0x252   : > { %3749 = vpow2.f32 %v3172_v16 }
 0x253   : > { %3751 = vpow2.f32 %v3170_v58 }
 0x25a   : > { %v3746_v12 = vpop.eup %3745 }
 0x25b   : > { %v3748_v53 = vpop.eup %3747  ;;  %v2696_v24 = vadd.f32 1.0, %v3746_v12 }
 0x25c   : > { %v3750_v60 = vpop.eup %3749  ;;  %v2694_v52 = vadd.f32 1.0, %v3748_v53 }
 0x25d   : > { %v3752_v48 = vpop.eup %3751  ;;  %3753 = vrcp.f32 %v2696_v24  ;;  %v2697_v46 = vadd.f32 1.0, %v3750_v60 }
 0x25e   : > { %3755 = vrcp.f32 %v2694_v52  ;;  %v2695_v7 = vadd.f32 1.0, %v3752_v48 }
 0x25f   : > { %3757 = vrcp.f32 %v2697_v46 }
 0x260   : > { %3759 = vrcp.f32 %v2695_v7 }
 0x261   : > { %v3470_v0 = vpop.f32.mrb[12].mxu1 }
 0x262   : > { %v2580_v61 = vadd.f32 %v3470_v0, %v5174_v29  ;;  %v2571_v3 = vpop.f32.mrb[13].mxu1 }
 0x263   : > { %v2572_v11 = vadd.f32 %v5174_v29, %v2571_v3  ;;  %v3471_v51 = vpop.f32.mrb[14].mxu1 }
 0x264   : > { %v3187_v2 = vmul.f32 -1.442695, %v2580_v61  ;;  %v2583_v56 = vadd.f32 %v3471_v51, %v5174_v29  ;;  %v2574_v50 = vpop.f32.mrb[15].mxu1 }
 0x265   : > { %v3185_v43 = vmul.f32 -1.442695, %v2572_v11  ;;  %v2575_v62 = vadd.f32 %v5174_v29, %v2574_v50 }
 0x266   : > { %3761 = vpow2.f32 %v3187_v2  ;;  %v3188_v27 = vmul.f32 -1.442695, %v2583_v56 }
 0x267   : > { %v3754_v13 = vpop.eup %3753  ;;  %3763 = vpow2.f32 %v3185_v43  ;;  %v3186_v32 = vmul.f32 -1.442695, %v2575_v62 }
 0x268   : > { %v3756_v57 = vpop.eup %3755  ;;  %3765 = vpow2.f32 %v3188_v27  ;;  %v2792_v8 = vmul.f32 %v3754_v13, %v2516_v40 }
 0x269   : > { %v3758_v42 = vpop.eup %3757  ;;  %3767 = vpow2.f32 %v3186_v32  ;;  %v2790_v33 = vmul.f32 %v3756_v57, %v2508_v47 }
 0x26a   : > { %v3760_v18 = vpop.eup %3759  ;;  %v2793_v14 = vmul.f32 %v3758_v42, %v2519_v5 }
 0x26b   : > { %v2791_v9 = vmul.f32 %v3760_v18, %v2511_v59 }
 0x26c   : > { %v3334_v39 = vpack.c.bf16 %v2793_v14, %v2792_v8 }
 0x26d   : > { %v3329_v36 = vpack.c.bf16 %v2791_v9, %v2790_v33 }
 0x26e   : > { %3391 = vst [vmem:[%s5227_s13 + $0x38] sm:$0xff] %v3334_v39  }
 0x26f   : > { %3390 = vst [vmem:[%s5227_s13 + $0x30] sm:$0xff] %v3329_v36  }
 0x270   : > { %v3762_v29 = vpop.eup %3761 }
 0x271   : > { %v3764_v25 = vpop.eup %3763  ;;  %v2712_v54 = vadd.f32 1.0, %v3762_v29 }
 0x272   : > { %v3766_v15 = vpop.eup %3765  ;;  %v2710_v30 = vadd.f32 1.0, %v3764_v25 }
 0x273   : > { %v3768_v37 = vpop.eup %3767  ;;  %3769 = vrcp.f32 %v2712_v54  ;;  %v2713_v10 = vadd.f32 1.0, %v3766_v15 }
 0x274   : > { %3771 = vrcp.f32 %v2710_v30  ;;  %v2711_v17 = vadd.f32 1.0, %v3768_v37 }
 0x275   : > { %3773 = vrcp.f32 %v2713_v10 }
 0x276   : > { %3775 = vrcp.f32 %v2711_v17 }
 0x27d   : > { %v3770_v19 = vpop.eup %3769 }
 0x27e   : > { %v3772_v21 = vpop.eup %3771  ;;  %v2808_v38 = vmul.f32 %v3770_v19, %v2580_v61 }
 0x27f   : > { %v3774_v28 = vpop.eup %3773  ;;  %v2806_v34 = vmul.f32 %v3772_v21, %v2572_v11 }
 0x280   : > { %v3776_v20 = vpop.eup %3775  ;;  %v2809_v55 = vmul.f32 %v3774_v28, %v2583_v56 }
 0x281   : > { %v2807_v35 = vmul.f32 %v3776_v20, %v2575_v62 }
 0x282   : > { %v3374_v45 = vpack.c.bf16 %v2809_v55, %v2808_v38 }
 0x283   : > { %v3369_v31 = vpack.c.bf16 %v2807_v35, %v2806_v34 }
 0x284   : > { %3399 = vst [vmem:[%s5227_s13 + $0x78] sm:$0xff] %v3374_v45  }
 0x285   : > { %3398 = vst [vmem:[%s5227_s13 + $0x70] sm:$0xff] %v3369_v31  }
 0x286 PF: > { %s15_s20 = sadd.s32 1, %s3801_s20   ;;  %s5289_s18 = smov %s3797_s19 }
 0x287   : > { %p12_p5 = scmp.ge.s32.totalorder %s15_s20, 4   ;;  %s5290_s19 = smov %s5292_s21 }
 0x289   :  { %14 = sbr.rel (!%p12_p5) target bundleno = 2 (0x2), region = 81 }

</bundles_post_ra>
